<compile_context>
chip_gen: v6e
topology: v6e:2x2x1
jax: 0.10.0
libtpu: 0.0.40
codegen_flags: <defaults>
</compile_context>

<pallas_src>
import jax
import jax.numpy as jnp
from jax.experimental import pallas as pl
from jax.experimental.pallas import tpu as pltpu

HIDDEN = 400        # logical hidden width of the PyTorch module
HIDDEN_PAD = 512    # padded to a multiple of 256 (also a multiple of 128)
SUBLANE = 8
LANE = 128


def _round_up(x, m):
    return (x + m - 1) // m * m


def _device_kind():
    try:
        return jax.devices()[0].device_kind.lower()
    except Exception:
        return ""


def _is_v7x(kind=None):
    kind = _device_kind() if kind is None else kind
    return "v7" in kind


def _lane_multiple(kind=None):
    kind = _device_kind() if kind is None else kind
    # v6e / v7x MXUs are 2x256x256 -> pad the big K/N dims to 256; 128 on older chips.
    return 256 if ("v6" in kind or "v7" in kind) else 128


def _generator_kernel(x_ref,
                      w1_ref, b1_ref,
                      w2_ref, b2_ref,
                      w3_ref, b3_ref,
                      w4_ref, b4_ref,
                      out_ref):
    # x arrives as bf16; matmuls accumulate in f32 (MXU), elementwise stays f32.
    x = x_ref[...]

    h = jnp.dot(x, w1_ref[...], preferred_element_type=jnp.float32) + b1_ref[...]
    h = jnp.maximum(h, 0.0)

    h = jnp.dot(h.astype(jnp.bfloat16), w2_ref[...],
                preferred_element_type=jnp.float32) + b2_ref[...]
    h = jnp.maximum(h, 0.0)

    h = jnp.dot(h.astype(jnp.bfloat16), w3_ref[...],
                preferred_element_type=jnp.float32) + b3_ref[...]
    h = jnp.maximum(h, 0.0)

    y = jnp.dot(h.astype(jnp.bfloat16), w4_ref[...],
                preferred_element_type=jnp.float32) + b4_ref[...]
    out_ref[...] = jnp.tanh(y).astype(out_ref.dtype)


def _batch_tiling(B, ic_pad, batch_tile, multi_core):
    """Balanced batch tiles: nbt = cdiv(B, tile), tb = round_up(cdiv(B, nbt), 8)."""
    if batch_tile is None:
        batch_tile = 512 if ic_pad <= 2048 else 256
    nbt = max(1, -(-B // batch_tile))
    # v7x has 2 TensorCores: give the "parallel" axis >=2 programs for mid batches.
    if multi_core and nbt == 1 and B > 128:
        nbt = 2
    tb = _round_up(-(-B // nbt), SUBLANE)
    return tb, nbt, tb * nbt


def generator_forward(x, prepared, *, batch_tile=None, out_dtype=jnp.float32):
    """x: [B, itemCount] float (or bf16). prepared: padded/bf16 params from prepare_params."""
    B, item_count = x.shape
    ic_pad = prepared["w1"].shape[0]
    assert ic_pad >= item_count and ic_pad % LANE == 0

    kind = _device_kind()
    tb, nbt, b_pad = _batch_tiling(B, ic_pad, batch_tile, _is_v7x(kind))

    # Fuse pad + bf16 cast; skip entirely when already aligned (no extra HBM round-trip).
    if b_pad == B and ic_pad == item_count:
        x_in = x.astype(jnp.bfloat16)
    else:
        x_in = (jnp.zeros((b_pad, ic_pad), jnp.bfloat16)
                .at[:B, :item_count].set(x.astype(jnp.bfloat16)))

    w1, b1 = prepared["w1"], prepared["b1"]
    w2, b2 = prepared["w2"], prepared["b2"]
    w3, b3 = prepared["w3"], prepared["b3"]
    w4, b4 = prepared["w4"], prepared["b4"]

    out_bytes = jnp.dtype(out_dtype).itemsize
    weight_bytes = sum(int(v.size) * v.dtype.itemsize for v in prepared.values())
    io_tile_bytes = 2 * tb * ic_pad * (2 + out_bytes)     # double-buffered x / out tiles
    act_bytes = 4 * tb * HIDDEN_PAD * 4                   # f32 activation temporaries
    vmem_cap = (48 << 20) if _is_v7x(kind) else (96 << 20)
    vmem_limit = int(min(max(weight_bytes + io_tile_bytes + act_bytes + (8 << 20),
                             32 << 20), vmem_cap))

    flops = 2 * b_pad * (ic_pad * HIDDEN_PAD
                         + 2 * HIDDEN_PAD * HIDDEN_PAD
                         + HIDDEN_PAD * ic_pad)
    bytes_accessed = weight_bytes + b_pad * ic_pad * (2 + out_bytes)
    cost = pl.CostEstimate(flops=flops,
                           transcendentals=b_pad * ic_pad,
                           bytes_accessed=bytes_accessed)

    def make_call(single_buffer_weights):
        def resident(shape):
            if single_buffer_weights:
                # Block index never changes across the grid -> one VMEM buffer suffices.
                return pl.BlockSpec(shape, lambda i: (0, 0),
                                    pipeline_mode=pl.Buffered(1))
            return pl.BlockSpec(shape, lambda i: (0, 0))

        return pl.pallas_call(
            _generator_kernel,
            out_shape=jax.ShapeDtypeStruct((b_pad, ic_pad), out_dtype),
            grid=(nbt,),
            in_specs=[
                pl.BlockSpec((tb, ic_pad), lambda i: (i, 0)),
                resident(w1.shape), resident(b1.shape),
                resident(w2.shape), resident(b2.shape),
                resident(w3.shape), resident(b3.shape),
                resident(w4.shape), resident(b4.shape),
            ],
            out_specs=pl.BlockSpec((tb, ic_pad), lambda i: (i, 0)),
            compiler_params=pltpu.CompilerParams(
                dimension_semantics=("parallel",),
                vmem_limit_bytes=vmem_limit,
            ),
            cost_estimate=cost,
        )

    args = (x_in, w1, b1, w2, b2, w3, b3, w4, b4)
    try:
        out = make_call(True)(*args)
    except Exception:
        # pipeline_mode=pl.Buffered(1) not supported on this jax/libtpu combo:
        # fall back to default double-buffering of the (constant-index) weights.
        out = make_call(False)(*args)

    return out[:B, :item_count]


def init_params(key, item_count):
    """Logical f32 params mirroring nn.Linear default init (U[-1/sqrt(fan_in), +1/sqrt(fan_in)]).

    Weights stored [in_features, out_features] for x @ W layout (PyTorch stores [out, in]).
    """
    dims = [(item_count, HIDDEN), (HIDDEN, HIDDEN), (HIDDEN, HIDDEN), (HIDDEN, item_count)]
    params = {}
    keys = jax.random.split(key, 2 * len(dims))
    for i, (fan_in, fan_out) in enumerate(dims):
        bound = 1.0 / float(fan_in) ** 0.5
        params[f"w{i + 1}"] = jax.random.uniform(
            keys[2 * i], (fan_in, fan_out), minval=-bound, maxval=bound, dtype=jnp.float32)
        params[f"b{i + 1}"] = jax.random.uniform(
            keys[2 * i + 1], (fan_out,), minval=-bound, maxval=bound, dtype=jnp.float32)
    return params


def prepare_params(params, item_count, *, lane_multiple=None):
    """Pad weights/biases to lane-aligned shapes; weights -> bf16, biases stay f32."""
    if lane_multiple is None:
        lane_multiple = _lane_multiple()
    ic_pad = _round_up(max(item_count, lane_multiple), lane_multiple)

    def pad_w(w, rows, cols):
        out = jnp.zeros((rows, cols), jnp.float32).at[:w.shape[0], :w.shape[1]].set(w)
        return out.astype(jnp.bfloat16)

    def pad_b(b, cols):
        return jnp.zeros((1, cols), jnp.float32).at[0, :b.shape[0]].set(b)

    return {
        "w1": pad_w(params["w1"], ic_pad, HIDDEN_PAD),
        "b1": pad_b(params["b1"], HIDDEN_PAD),
        "w2": pad_w(params["w2"], HIDDEN_PAD, HIDDEN_PAD),
        "b2": pad_b(params["b2"], HIDDEN_PAD),
        "w3": pad_w(params["w3"], HIDDEN_PAD, HIDDEN_PAD),
        "b3": pad_b(params["b3"], HIDDEN_PAD),
        "w4": pad_w(params["w4"], HIDDEN_PAD, ic_pad),
        "b4": pad_b(params["b4"], ic_pad),
    }


def _reference_forward_f32(x, params):
    h = jnp.maximum(x @ params["w1"] + params["b1"], 0.0)
    h = jnp.maximum(h @ params["w2"] + params["b2"], 0.0)
    h = jnp.maximum(h @ params["w3"] + params["b3"], 0.0)
    return jnp.tanh(h @ params["w4"] + params["b4"])


def _reference_forward_bf16(x, params):
    # Same bf16-input / f32-accumulation math as the kernel.
    def lin(h, w, b):
        return jnp.dot(h.astype(jnp.bfloat16), w.astype(jnp.bfloat16),
                       preferred_element_type=jnp.float32) + b
    h = jnp.maximum(lin(x, params["w1"], params["b1"]), 0.0)
    h = jnp.maximum(lin(h, params["w2"], params["b2"]), 0.0)
    h = jnp.maximum(lin(h, params["w3"], params["b3"]), 0.0)
    return jnp.tanh(lin(h, params["w4"], params["b4"]))


if __name__ == "__main__":
    key = jax.random.PRNGKey(0)
    item_count = 64   # itemCount
    batch = 8

    k_x, k_p = jax.random.split(key)
    x = jax.random.normal(k_x, (batch, item_count), dtype=jnp.float32)
    params = init_params(k_p, item_count)
    prepared = prepare_params(params, item_count)

    out = generator_forward(x, prepared)
    out = jax.block_until_ready(out)

    ref_bf16 = _reference_forward_bf16(x, params)
    ref_f32 = _reference_forward_f32(x, params)

    assert out.shape == (batch, item_count)
    assert jnp.allclose(out, ref_bf16, atol=1e-3, rtol=1e-3), "mismatch vs bf16 reference"
    assert jnp.allclose(out, ref_f32, atol=5e-2, rtol=5e-2), "mismatch vs f32 reference"

    print("KERNEL_OK")
</pallas_src>

<mosaic_0001>
module attributes {stable_mosaic.version = 11 : i64} {
  func.func @_generator_kernel(%arg0: i32, %arg1: memref<8x128xbf16, #tpu.memory_space<vmem>>, %arg2: memref<128x512xbf16, #tpu.memory_space<vmem>>, %arg3: memref<1x512xf32, #tpu.memory_space<vmem>>, %arg4: memref<512x512xbf16, #tpu.memory_space<vmem>>, %arg5: memref<1x512xf32, #tpu.memory_space<vmem>>, %arg6: memref<512x512xbf16, #tpu.memory_space<vmem>>, %arg7: memref<1x512xf32, #tpu.memory_space<vmem>>, %arg8: memref<512x128xbf16, #tpu.memory_space<vmem>>, %arg9: memref<1x128xf32, #tpu.memory_space<vmem>>, %arg10: memref<8x128xf32, #tpu.memory_space<vmem>>) attributes {dimension_semantics = [#tpu.dimension_semantics<parallel>], iteration_bounds = array<i64: 1>, scalar_prefetch = 0 : i64, scratch_operands = 0 : i64, tpu.core_type = #tpu.core_type<tc>, window_params = [{transform_indices = @transform_0, window_bounds = array<i64: 8, 128>}, {pipeline_mode = #tpu.pipeline_mode<synchronous>, transform_indices = @transform_1, window_bounds = array<i64: 128, 512>}, {pipeline_mode = #tpu.pipeline_mode<synchronous>, transform_indices = @transform_2, window_bounds = array<i64: 1, 512>}, {pipeline_mode = #tpu.pipeline_mode<synchronous>, transform_indices = @transform_3, window_bounds = array<i64: 512, 512>}, {pipeline_mode = #tpu.pipeline_mode<synchronous>, transform_indices = @transform_4, window_bounds = array<i64: 1, 512>}, {pipeline_mode = #tpu.pipeline_mode<synchronous>, transform_indices = @transform_5, window_bounds = array<i64: 512, 512>}, {pipeline_mode = #tpu.pipeline_mode<synchronous>, transform_indices = @transform_6, window_bounds = array<i64: 1, 512>}, {pipeline_mode = #tpu.pipeline_mode<synchronous>, transform_indices = @transform_7, window_bounds = array<i64: 512, 128>}, {pipeline_mode = #tpu.pipeline_mode<synchronous>, transform_indices = @transform_8, window_bounds = array<i64: 1, 128>}, {transform_indices = @transform_9, window_bounds = array<i64: 8, 128>}]} {
    %c0 = arith.constant 0 : index
    %c0_0 = arith.constant 0 : index
    %0 = vector.load %arg1[%c0, %c0_0] : memref<8x128xbf16, #tpu.memory_space<vmem>>, vector<8x128xbf16>
    %c0_1 = arith.constant 0 : index
    %c0_2 = arith.constant 0 : index
    %1 = vector.load %arg2[%c0_1, %c0_2] : memref<128x512xbf16, #tpu.memory_space<vmem>>, vector<128x512xbf16>
    %cst = arith.constant dense<0.000000e+00> : vector<8x512xf32>
    %2 = tpu.matmul %0, %1, %cst {dimension_numbers = #tpu.dot_dimension_numbers<[1], [0], [0], [1], [0, 0, 1, 1], [], []>} : vector<8x128xbf16>, vector<128x512xbf16>, vector<8x512xf32> -> vector<8x512xf32>
    %c0_3 = arith.constant 0 : index
    %c0_4 = arith.constant 0 : index
    %3 = vector.load %arg3[%c0_3, %c0_4] : memref<1x512xf32, #tpu.memory_space<vmem>>, vector<1x512xf32>
    %4 = vector.broadcast %3 : vector<1x512xf32> to vector<8x512xf32>
    %5 = arith.addf %2, %4 : vector<8x512xf32>
    %cst_5 = arith.constant 0.000000e+00 : f32
    %6 = vector.broadcast %cst_5 : f32 to vector<8x512xf32>
    %7 = arith.maximumf %5, %6 : vector<8x512xf32>
    %8 = arith.truncf %7 : vector<8x512xf32> to vector<8x512xbf16>
    %c0_6 = arith.constant 0 : index
    %c0_7 = arith.constant 0 : index
    %9 = vector.load %arg4[%c0_6, %c0_7] : memref<512x512xbf16, #tpu.memory_space<vmem>>, vector<512x512xbf16>
    %cst_8 = arith.constant dense<0.000000e+00> : vector<8x512xf32>
    %10 = tpu.matmul %8, %9, %cst_8 {dimension_numbers = #tpu.dot_dimension_numbers<[1], [0], [0], [1], [0, 0, 1, 1], [], []>} : vector<8x512xbf16>, vector<512x512xbf16>, vector<8x512xf32> -> vector<8x512xf32>
    %c0_9 = arith.constant 0 : index
    %c0_10 = arith.constant 0 : index
    %11 = vector.load %arg5[%c0_9, %c0_10] : memref<1x512xf32, #tpu.memory_space<vmem>>, vector<1x512xf32>
    %12 = vector.broadcast %11 : vector<1x512xf32> to vector<8x512xf32>
    %13 = arith.addf %10, %12 : vector<8x512xf32>
    %cst_11 = arith.constant 0.000000e+00 : f32
    %14 = vector.broadcast %cst_11 : f32 to vector<8x512xf32>
    %15 = arith.maximumf %13, %14 : vector<8x512xf32>
    %16 = arith.truncf %15 : vector<8x512xf32> to vector<8x512xbf16>
    %c0_12 = arith.constant 0 : index
    %c0_13 = arith.constant 0 : index
    %17 = vector.load %arg6[%c0_12, %c0_13] : memref<512x512xbf16, #tpu.memory_space<vmem>>, vector<512x512xbf16>
    %cst_14 = arith.constant dense<0.000000e+00> : vector<8x512xf32>
    %18 = tpu.matmul %16, %17, %cst_14 {dimension_numbers = #tpu.dot_dimension_numbers<[1], [0], [0], [1], [0, 0, 1, 1], [], []>} : vector<8x512xbf16>, vector<512x512xbf16>, vector<8x512xf32> -> vector<8x512xf32>
    %c0_15 = arith.constant 0 : index
    %c0_16 = arith.constant 0 : index
    %19 = vector.load %arg7[%c0_15, %c0_16] : memref<1x512xf32, #tpu.memory_space<vmem>>, vector<1x512xf32>
    %20 = vector.broadcast %19 : vector<1x512xf32> to vector<8x512xf32>
    %21 = arith.addf %18, %20 : vector<8x512xf32>
    %cst_17 = arith.constant 0.000000e+00 : f32
    %22 = vector.broadcast %cst_17 : f32 to vector<8x512xf32>
    %23 = arith.maximumf %21, %22 : vector<8x512xf32>
    %24 = arith.truncf %23 : vector<8x512xf32> to vector<8x512xbf16>
    %c0_18 = arith.constant 0 : index
    %c0_19 = arith.constant 0 : index
    %25 = vector.load %arg8[%c0_18, %c0_19] : memref<512x128xbf16, #tpu.memory_space<vmem>>, vector<512x128xbf16>
    %cst_20 = arith.constant dense<0.000000e+00> : vector<8x128xf32>
    %26 = tpu.matmul %24, %25, %cst_20 {dimension_numbers = #tpu.dot_dimension_numbers<[1], [0], [0], [1], [0, 0, 1, 1], [], []>} : vector<8x512xbf16>, vector<512x128xbf16>, vector<8x128xf32> -> vector<8x128xf32>
    %c0_21 = arith.constant 0 : index
    %c0_22 = arith.constant 0 : index
    %27 = vector.load %arg9[%c0_21, %c0_22] : memref<1x128xf32, #tpu.memory_space<vmem>>, vector<1x128xf32>
    %28 = vector.broadcast %27 : vector<1x128xf32> to vector<8x128xf32>
    %29 = arith.addf %26, %28 : vector<8x128xf32>
    %30 = math.tanh %29 : vector<8x128xf32>
    %c0_23 = arith.constant 0 : index
    %c0_24 = arith.constant 0 : index
    %31 = vector.load %arg10[%c0_23, %c0_24] : memref<8x128xf32, #tpu.memory_space<vmem>>, vector<8x128xf32>
    tpu.vector_store %arg10[%c0_23, %c0_24], %30 {strides = array<i32>} : memref<8x128xf32, #tpu.memory_space<vmem>>, vector<8x128xf32>,
    return
  }
  func.func @transform_0(%arg0: i32) -> (i32, i32) {
    %c0_i32 = arith.constant 0 : i32
    %c0_i32_0 = arith.constant 0 : i32
    return %arg0, %c0_i32 : i32, i32
  }
  func.func @transform_1(%arg0: i32) -> (i32, i32) {
    %c0_i32 = arith.constant 0 : i32
    %c0_i32_0 = arith.constant 0 : i32
    %c0_i32_1 = arith.constant 0 : i32
    return %c0_i32, %c0_i32_0 : i32, i32
  }
  func.func @transform_2(%arg0: i32) -> (i32, i32) {
    %c0_i32 = arith.constant 0 : i32
    %c0_i32_0 = arith.constant 0 : i32
    %c0_i32_1 = arith.constant 0 : i32
    return %c0_i32, %c0_i32_0 : i32, i32
  }
  func.func @transform_3(%arg0: i32) -> (i32, i32) {
    %c0_i32 = arith.constant 0 : i32
    %c0_i32_0 = arith.constant 0 : i32
    %c0_i32_1 = arith.constant 0 : i32
    return %c0_i32, %c0_i32_0 : i32, i32
  }
  func.func @transform_4(%arg0: i32) -> (i32, i32) {
    %c0_i32 = arith.constant 0 : i32
    %c0_i32_0 = arith.constant 0 : i32
    %c0_i32_1 = arith.constant 0 : i32
    return %c0_i32, %c0_i32_0 : i32, i32
  }
  func.func @transform_5(%arg0: i32) -> (i32, i32) {
    %c0_i32 = arith.constant 0 : i32
    %c0_i32_0 = arith.constant 0 : i32
    %c0_i32_1 = arith.constant 0 : i32
    return %c0_i32, %c0_i32_0 : i32, i32
  }
  func.func @transform_6(%arg0: i32) -> (i32, i32) {
    %c0_i32 = arith.constant 0 : i32
    %c0_i32_0 = arith.constant 0 : i32
    %c0_i32_1 = arith.constant 0 : i32
    return %c0_i32, %c0_i32_0 : i32, i32
  }
  func.func @transform_7(%arg0: i32) -> (i32, i32) {
    %c0_i32 = arith.constant 0 : i32
    %c0_i32_0 = arith.constant 0 : i32
    %c0_i32_1 = arith.constant 0 : i32
    return %c0_i32, %c0_i32_0 : i32, i32
  }
  func.func @transform_8(%arg0: i32) -> (i32, i32) {
    %c0_i32 = arith.constant 0 : i32
    %c0_i32_0 = arith.constant 0 : i32
    %c0_i32_1 = arith.constant 0 : i32
    return %c0_i32, %c0_i32_0 : i32, i32
  }
  func.func @transform_9(%arg0: i32) -> (i32, i32) {
    %c0_i32 = arith.constant 0 : i32
    %c0_i32_0 = arith.constant 0 : i32
    return %arg0, %c0_i32 : i32, i32
  }
}

module attributes {stable_mosaic.version = 11 : i64} {
  func.func @_generator_kernel(%arg0: i32, %arg1: memref<8x128xbf16, #tpu.memory_space<vmem>>, %arg2: memref<128x512xbf16, #tpu.memory_space<vmem>>, %arg3: memref<1x512xf32, #tpu.memory_space<vmem>>, %arg4: memref<512x512xbf16, #tpu.memory_space<vmem>>, %arg5: memref<1x512xf32, #tpu.memory_space<vmem>>, %arg6: memref<512x512xbf16, #tpu.memory_space<vmem>>, %arg7: memref<1x512xf32, #tpu.memory_space<vmem>>, %arg8: memref<512x128xbf16, #tpu.memory_space<vmem>>, %arg9: memref<1x128xf32, #tpu.memory_space<vmem>>, %arg10: memref<8x128xf32, #tpu.memory_space<vmem>>) attributes {dimension_semantics = [#tpu.dimension_semantics<parallel>], iteration_bounds = array<i64: 1>, scalar_prefetch = 0 : i64, scratch_operands = 0 : i64, tpu.core_type = #tpu.core_type<tc>, window_params = [{transform_indices = @transform_0, window_bounds = array<i64: 8, 128>}, {pipeline_mode = #tpu.pipeline_mode<synchronous>, transform_indices = @transform_1, window_bounds = array<i64: 128, 512>}, {pipeline_mode = #tpu.pipeline_mode<synchronous>, transform_indices = @transform_2, window_bounds = array<i64: 1, 512>}, {pipeline_mode = #tpu.pipeline_mode<synchronous>, transform_indices = @transform_3, window_bounds = array<i64: 512, 512>}, {pipeline_mode = #tpu.pipeline_mode<synchronous>, transform_indices = @transform_4, window_bounds = array<i64: 1, 512>}, {pipeline_mode = #tpu.pipeline_mode<synchronous>, transform_indices = @transform_5, window_bounds = array<i64: 512, 512>}, {pipeline_mode = #tpu.pipeline_mode<synchronous>, transform_indices = @transform_6, window_bounds = array<i64: 1, 512>}, {pipeline_mode = #tpu.pipeline_mode<synchronous>, transform_indices = @transform_7, window_bounds = array<i64: 512, 128>}, {pipeline_mode = #tpu.pipeline_mode<synchronous>, transform_indices = @transform_8, window_bounds = array<i64: 1, 128>}, {transform_indices = @transform_9, window_bounds = array<i64: 8, 128>}]} {
    %c0 = arith.constant 0 : index
    %c0_0 = arith.constant 0 : index
    %0 = vector.load %arg1[%c0, %c0_0] : memref<8x128xbf16, #tpu.memory_space<vmem>>, vector<8x128xbf16>
    %c0_1 = arith.constant 0 : index
    %c0_2 = arith.constant 0 : index
    %1 = vector.load %arg2[%c0_1, %c0_2] : memref<128x512xbf16, #tpu.memory_space<vmem>>, vector<128x512xbf16>
    %cst = arith.constant dense<0.000000e+00> : vector<8x512xf32>
    %2 = tpu.matmul %0, %1, %cst {dimension_numbers = #tpu.dot_dimension_numbers<[1], [0], [0], [1], [0, 0, 1, 1], [], []>} : vector<8x128xbf16>, vector<128x512xbf16>, vector<8x512xf32> -> vector<8x512xf32>
    %c0_3 = arith.constant 0 : index
    %c0_4 = arith.constant 0 : index
    %3 = vector.load %arg3[%c0_3, %c0_4] : memref<1x512xf32, #tpu.memory_space<vmem>>, vector<1x512xf32>
    %4 = vector.broadcast %3 : vector<1x512xf32> to vector<8x512xf32>
    %5 = arith.addf %2, %4 : vector<8x512xf32>
    %cst_5 = arith.constant 0.000000e+00 : f32
    %6 = vector.broadcast %cst_5 : f32 to vector<8x512xf32>
    %7 = arith.maximumf %5, %6 : vector<8x512xf32>
    %8 = arith.truncf %7 : vector<8x512xf32> to vector<8x512xbf16>
    %c0_6 = arith.constant 0 : index
    %c0_7 = arith.constant 0 : index
    %9 = vector.load %arg4[%c0_6, %c0_7] : memref<512x512xbf16, #tpu.memory_space<vmem>>, vector<512x512xbf16>
    %cst_8 = arith.constant dense<0.000000e+00> : vector<8x512xf32>
    %10 = tpu.matmul %8, %9, %cst_8 {dimension_numbers = #tpu.dot_dimension_numbers<[1], [0], [0], [1], [0, 0, 1, 1], [], []>} : vector<8x512xbf16>, vector<512x512xbf16>, vector<8x512xf32> -> vector<8x512xf32>
    %c0_9 = arith.constant 0 : index
    %c0_10 = arith.constant 0 : index
    %11 = vector.load %arg5[%c0_9, %c0_10] : memref<1x512xf32, #tpu.memory_space<vmem>>, vector<1x512xf32>
    %12 = vector.broadcast %11 : vector<1x512xf32> to vector<8x512xf32>
    %13 = arith.addf %10, %12 : vector<8x512xf32>
    %cst_11 = arith.constant 0.000000e+00 : f32
    %14 = vector.broadcast %cst_11 : f32 to vector<8x512xf32>
    %15 = arith.maximumf %13, %14 : vector<8x512xf32>
    %16 = arith.truncf %15 : vector<8x512xf32> to vector<8x512xbf16>
    %c0_12 = arith.constant 0 : index
    %c0_13 = arith.constant 0 : index
    %17 = vector.load %arg6[%c0_12, %c0_13] : memref<512x512xbf16, #tpu.memory_space<vmem>>, vector<512x512xbf16>
    %cst_14 = arith.constant dense<0.000000e+00> : vector<8x512xf32>
    %18 = tpu.matmul %16, %17, %cst_14 {dimension_numbers = #tpu.dot_dimension_numbers<[1], [0], [0], [1], [0, 0, 1, 1], [], []>} : vector<8x512xbf16>, vector<512x512xbf16>, vector<8x512xf32> -> vector<8x512xf32>
    %c0_15 = arith.constant 0 : index
    %c0_16 = arith.constant 0 : index
    %19 = vector.load %arg7[%c0_15, %c0_16] : memref<1x512xf32, #tpu.memory_space<vmem>>, vector<1x512xf32>
    %20 = vector.broadcast %19 : vector<1x512xf32> to vector<8x512xf32>
    %21 = arith.addf %18, %20 : vector<8x512xf32>
    %cst_17 = arith.constant 0.000000e+00 : f32
    %22 = vector.broadcast %cst_17 : f32 to vector<8x512xf32>
    %23 = arith.maximumf %21, %22 : vector<8x512xf32>
    %24 = arith.truncf %23 : vector<8x512xf32> to vector<8x512xbf16>
    %c0_18 = arith.constant 0 : index
    %c0_19 = arith.constant 0 : index
    %25 = vector.load %arg8[%c0_18, %c0_19] : memref<512x128xbf16, #tpu.memory_space<vmem>>, vector<512x128xbf16>
    %cst_20 = arith.constant dense<0.000000e+00> : vector<8x128xf32>
    %26 = tpu.matmul %24, %25, %cst_20 {dimension_numbers = #tpu.dot_dimension_numbers<[1], [0], [0], [1], [0, 0, 1, 1], [], []>} : vector<8x512xbf16>, vector<512x128xbf16>, vector<8x128xf32> -> vector<8x128xf32>
    %c0_21 = arith.constant 0 : index
    %c0_22 = arith.constant 0 : index
    %27 = vector.load %arg9[%c0_21, %c0_22] : memref<1x128xf32, #tpu.memory_space<vmem>>, vector<1x128xf32>
    %28 = vector.broadcast %27 : vector<1x128xf32> to vector<8x128xf32>
    %29 = arith.addf %26, %28 : vector<8x128xf32>
    %30 = math.tanh %29 : vector<8x128xf32>
    %c0_23 = arith.constant 0 : index
    %c0_24 = arith.constant 0 : index
    %31 = vector.load %arg10[%c0_23, %c0_24] : memref<8x128xf32, #tpu.memory_space<vmem>>, vector<8x128xf32>
    tpu.vector_store %arg10[%c0_23, %c0_24], %30 {strides = array<i32>} : memref<8x128xf32, #tpu.memory_space<vmem>>, vector<8x128xf32>,
    return
  }
  func.func @transform_0(%arg0: i32) -> (i32, i32) {
    %c0_i32 = arith.constant 0 : i32
    %c0_i32_0 = arith.constant 0 : i32
    return %arg0, %c0_i32 : i32, i32
  }
  func.func @transform_1(%arg0: i32) -> (i32, i32) {
    %c0_i32 = arith.constant 0 : i32
    %c0_i32_0 = arith.constant 0 : i32
    %c0_i32_1 = arith.constant 0 : i32
    return %c0_i32, %c0_i32_0 : i32, i32
  }
  func.func @transform_2(%arg0: i32) -> (i32, i32) {
    %c0_i32 = arith.constant 0 : i32
    %c0_i32_0 = arith.constant 0 : i32
    %c0_i32_1 = arith.constant 0 : i32
    return %c0_i32, %c0_i32_0 : i32, i32
  }
  func.func @transform_3(%arg0: i32) -> (i32, i32) {
    %c0_i32 = arith.constant 0 : i32
    %c0_i32_0 = arith.constant 0 : i32
    %c0_i32_1 = arith.constant 0 : i32
    return %c0_i32, %c0_i32_0 : i32, i32
  }
  func.func @transform_4(%arg0: i32) -> (i32, i32) {
    %c0_i32 = arith.constant 0 : i32
    %c0_i32_0 = arith.constant 0 : i32
    %c0_i32_1 = arith.constant 0 : i32
    return %c0_i32, %c0_i32_0 : i32, i32
  }
  func.func @transform_5(%arg0: i32) -> (i32, i32) {
    %c0_i32 = arith.constant 0 : i32
    %c0_i32_0 = arith.constant 0 : i32
    %c0_i32_1 = arith.constant 0 : i32
    return %c0_i32, %c0_i32_0 : i32, i32
  }
  func.func @transform_6(%arg0: i32) -> (i32, i32) {
    %c0_i32 = arith.constant 0 : i32
    %c0_i32_0 = arith.constant 0 : i32
    %c0_i32_1 = arith.constant 0 : i32
    return %c0_i32, %c0_i32_0 : i32, i32
  }
  func.func @transform_7(%arg0: i32) -> (i32, i32) {
    %c0_i32 = arith.constant 0 : i32
    %c0_i32_0 = arith.constant 0 : i32
    %c0_i32_1 = arith.constant 0 : i32
    return %c0_i32, %c0_i32_0 : i32, i32
  }
  func.func @transform_8(%arg0: i32) -> (i32, i32) {
    %c0_i32 = arith.constant 0 : i32
    %c0_i32_0 = arith.constant 0 : i32
    %c0_i32_1 = arith.constant 0 : i32
    return %c0_i32, %c0_i32_0 : i32, i32
  }
  func.func @transform_9(%arg0: i32) -> (i32, i32) {
    %c0_i32 = arith.constant 0 : i32
    %c0_i32_0 = arith.constant 0 : i32
    return %arg0, %c0_i32 : i32, i32
  }
}

</mosaic_0001>

<bundles_post_ra>
// kernel: tpu_custom_call.1
= control target key start
LH: loop header
LB: loop body
LE: loop exit
PB: predicated region body
PF: predicated region fallthrough
CT: control target
= control target key end

     0   :  { %14 = vsyncpa [#allocation3], 0  ;;  %s3840_s0 = inlined_call_operand.hbm [shape: bf16[8,128], index: 0, kind: input, shape index: {}]   ;;  %s3841_s1 = inlined_call_operand.hbm [shape: bf16[128,512], index: 1, kind: input, shape index: {}]   ;;  %s3842_s2 = inlined_call_operand.hbm [shape: f32[1,512], index: 2, kind: input, shape index: {}]   ;;  %s3843_s3 = inlined_call_operand.hbm [shape: bf16[512,512], index: 3, kind: input, shape index: {}]   ;;  %s3844_s4 = inlined_call_operand.vmem [shape: f32[1,512], index: 4, kind: input, shape index: {}]   ;;  %s3845_s5 = inlined_call_operand.hbm [shape: bf16[512,512], index: 5, kind: input, shape index: {}]   ;;  %s3846_s6 = inlined_call_operand.vmem [shape: f32[1,512], index: 6, kind: input, shape index: {}]   ;;  %s3847_s7 = inlined_call_operand.hbm [shape: bf16[512,128], index: 7, kind: input, shape index: {}]   ;;  %s3848_s8 = inlined_call_operand.vmem [shape: f32[1,128], index: 8, kind: input, shape index: {}]   ;;  %s3849_s9 = inlined_call_operand.hbm [shape: f32[8,128], index: 9, kind: output, shape index: {}]  }
   0x1   :  { %15 = vsyncpa [#allocation6], 0 }
   0x2   :  { %16 = vsyncpa [#allocation9], 0 }
   0x3   :  { %17 = vsyncpa [#allocation12], 0 }
   0x4   :  { %18 = vsyncpa [#allocation4], 0  ;;  %s3697_s30 = smov [#allocation5]  }
   0x5   :  { %s34_s10 = sshll.u32 %s3697_s30, 4  ;;  %s35_s10 = int_to_ptr.vmem [resolvable:$true] %s34_s10 }
   0x6   :  { %s3555_s11 = scalar_lea.vmem %s35_s10, 4096  ;;  %p3560_p1 = scmp.lt.s32.totalorder %s35_s10, %s35_s10 }
   0x7   :  { %p3556_p0 = scmp.ne.s32.totalorder %s35_s10, %s3555_s11  ;;  %p3561_p2 = scmp.lt.s32.totalorder %s3555_s11, %s3555_s11 }
   0x9   :  { %p3562_p3 = por %p3561_p2, %p3560_p1 }
   0xb   :  { %p3563_p4 = pnand %p3562_p3, %p3556_p0 }
   0xd   :  { %3566 = shalt.err (!%p3563_p4)
}
   0xe   :  { %s3698_s12 = smov 256   ;;  %s3699_s13 = smov 16  }
   0xf   :  { %40 = dma.hbm_to_vmem [thread:$0]  %s3841_s1, 4096, %s35_s10, [#allocation6], %s3698_s12, %s3698_s12, %s3699_s13  }
  0x10   :  { %s3700_s16 = smov [#allocation8]   ;;  %s3701_s18 = smov [#allocation2]  }
  0x11   :  { %s56_s17 = sshll.u32 %s3700_s16, 4  ;;  %s25_s19 = sshll.u32 %s3701_s18, 4  ;;  %s57_s17 = int_to_ptr.vmem [resolvable:$true] %s56_s17  ;;  %s26_s19 = int_to_ptr.vmem [resolvable:$true] %s25_s19 }
  0x12   :  { %s3575_s20 = scalar_lea.vmem %s57_s17, 16384  ;;  %p3580_p6 = scmp.lt.s32.totalorder %s57_s17, %s57_s17 }
  0x13   :  { %p3576_p5 = scmp.ne.s32.totalorder %s57_s17, %s3575_s20  ;;  %p3581_p7 = scmp.lt.s32.totalorder %s3575_s20, %s3575_s20 }
  0x15   :  { %p3582_p8 = por %p3581_p7, %p3580_p6 }
  0x17   :  { %p3583_p9 = pnand %p3582_p8, %p3576_p5 }
  0x19   :  { %3586 = shalt.err (!%p3583_p9)
}
  0x1a   :  { %62 = dma.hbm_to_vmem [thread:$0]  %s3843_s3, 16384, %s57_s17, [#allocation9], %s3698_s12, %s3698_s12, %s3699_s13  }
  0x1b   :  { %s3595_s1 = scalar_lea.vmem %s26_s19, 64  ;;  %p3600_p11 = scmp.lt.s32.totalorder %s26_s19, %s26_s19 }
  0x1c   :  { %p3596_p10 = scmp.ne.s32.totalorder %s26_s19, %s3595_s1  ;;  %p3601_p12 = scmp.lt.s32.totalorder %s3595_s1, %s3595_s1 }
  0x1e   :  { %p3602_p13 = por %p3601_p12, %p3600_p11 }
  0x20   :  { %p3603_p0 = pnand %p3602_p13, %p3596_p10 }
  0x22   :  { %3606 = shalt.err (!%p3603_p0)
}
  0x23   :  { %28 = dma.hbm_to_vmem [thread:$0]  %s3840_s0, 64, %s26_s19, [#allocation3]  }
  0x24   :  { %s3702_s25 = smov [#allocation7]   ;;  %s3703_s27 = smov [#allocation10]  }
  0x25   :  { %s47_s26 = sshll.u32 %s3702_s25, 4  ;;  %s70_s28 = sshll.u32 %s3703_s27, 4  ;;  %s48_s26 = int_to_ptr.vmem [resolvable:$true] %s47_s26  ;;  %s71_s28 = int_to_ptr.vmem [resolvable:$true] %s70_s28 }
  0x26   :  { %s3615_s29 = scalar_lea.vmem %s48_s26, 64  ;;  %p3620_p2 = scmp.lt.s32.totalorder %s48_s26, %s48_s26 }
  0x27   :  { %p3616_p1 = scmp.ne.s32.totalorder %s48_s26, %s3615_s29  ;;  %p3621_p3 = scmp.lt.s32.totalorder %s3615_s29, %s3615_s29 }
  0x29   :  { %p3622_p4 = por %p3621_p3, %p3620_p2 }
  0x2b   :  { %p3623_p5 = pnand %p3622_p4, %p3616_p1 }
  0x2d   :  { %3626 = shalt.err (!%p3623_p5)
}
  0x2e   :  { %50 = dma.hbm_to_vmem [thread:$0]  %s3842_s2, 64, %s48_s26, [#allocation6]  }
  0x2f   :  { %s3635_s10 = scalar_lea.vmem %s71_s28, 16384  ;;  %p3640_p7 = scmp.lt.s32.totalorder %s71_s28, %s71_s28 }
  0x30   :  { %p3636_p6 = scmp.ne.s32.totalorder %s71_s28, %s3635_s10  ;;  %p3641_p8 = scmp.lt.s32.totalorder %s3635_s10, %s3635_s10 }
  0x32   :  { %p3642_p9 = por %p3641_p8, %p3640_p7 }
  0x34   :  { %p3643_p10 = pnand %p3642_p9, %p3636_p6 }
  0x36   :  { %3646 = shalt.err (!%p3643_p10)
}
  0x37   :  { %76 = dma.hbm_to_vmem [thread:$0]  %s3845_s5, 16384, %s71_s28, [#allocation9], %s3698_s12, %s3698_s12, %s3699_s13  }
  0x38   :  { %s3704_s14 = smov [#allocation11]  }
  0x39   :  { %s84_s15 = sshll.u32 %s3704_s14, 4  ;;  %s85_s15 = int_to_ptr.vmem [resolvable:$true] %s84_s15 }
  0x3a   :  { %s3655_s16 = scalar_lea.vmem %s85_s15, 4096  ;;  %p3660_p12 = scmp.lt.s32.totalorder %s85_s15, %s85_s15 }
  0x3b   :  { %p3656_p11 = scmp.ne.s32.totalorder %s85_s15, %s3655_s16  ;;  %p3661_p13 = scmp.lt.s32.totalorder %s3655_s16, %s3655_s16 }
  0x3d   :  { %p3662_p0 = por %p3661_p13, %p3660_p12 }
  0x3f   :  { %p3663_p1 = pnand %p3662_p0, %p3656_p11 }
  0x41   :  { %3666 = shalt.err (!%p3663_p1)
}
  0x42   :  { %s3705_s2 = smov 64   ;;  %s3706_s17 = smov 4  }
  0x43   :  { %90 = dma.hbm_to_vmem [thread:$0]  %s3847_s7, 4096, %s85_s15, [#allocation12], %s3705_s2, %s3705_s2, %s3706_s17  }
  0x44   :  { %3687 = dma.done.wait [#allocation3], 64  }
  0x45   :  { %3688 = vsyncadd [#allocation3], 4294967232 }
  0x46   :  { %3689 = dma.done.wait [#allocation6], 4160  }
  0x47   :  { %3690 = vsyncadd [#allocation6], 4294963136 }
  0x48   :  { %3691 = dma.done.wait [#allocation9], 32768  }
  0x49   :  { %3692 = vsyncadd [#allocation9], 4294934528 }
  0x4a   :  { %3693 = dma.done.wait [#allocation12], 4096  }
  0x4b   :  { %3694 = vsyncadd [#allocation12], 4294963200  ;;  %v3707_v0 = vmov 0   ;;  %v3081_v1 = vld [vmem:[#allocation5 + $0xe4] ss:$16 sps:$4 sm:$0xff]   ;;  %s3708_s20 = smov [#allocation13]  }
  0x4c   :  { %359 = vmatprep.mubr.bf16.mxu0 %v3707_v0  ;;  %400 = vmatprep.mubr.bf16.mxu1 %v3707_v0  ;;  %v3083_v2 = vld [vmem:[#allocation5 + $0xec] ss:$16 sps:$4 sm:$0xff]   ;;  %v3085_v3 = vld [vmem:[#allocation5 + $0xe0] ss:$16 sps:$4 sm:$0xff]   ;;  %v3086_v4 = vld [vmem:[#allocation5 + $0xe8] ss:$16 sps:$4 sm:$0xff]  }
  0x4d   :  { %327 = vmatprep.subr.bf16.mxu0 %v3081_v1  ;;  %368 = vmatprep.subr.bf16.mxu1 %v3083_v2  ;;  %v3087_v5 = vld [vmem:[#allocation5 + $0xc4] ss:$16 sps:$4 sm:$0xff]   ;;  %v3089_v6 = vld [vmem:[#allocation5 + $0xcc] ss:$16 sps:$4 sm:$0xff]   ;;  %v3091_v7 = vld [vmem:[#allocation5 + $0xc0] ss:$16 sps:$4 sm:$0xff]  }
  0x4e   :  { %328 = vmatpush1.bf16.msra.mxu0 %v3085_v3  ;;  %369 = vmatpush1.bf16.msra.mxu1 %v3086_v4  ;;  %v3092_v8 = vld [vmem:[#allocation5 + $0xc8] ss:$16 sps:$4 sm:$0xff]   ;;  %v3093_v9 = vld [vmem:[#allocation5 + $0xa4] ss:$16 sps:$4 sm:$0xff]   ;;  %v3095_v10 = vld [vmem:[#allocation5 + $0xac] ss:$16 sps:$4 sm:$0xff]  }
  0x4f   :  { %329 = vmatprep.subr.bf16.mxu0 %v3087_v5  ;;  %370 = vmatprep.subr.bf16.mxu1 %v3089_v6  ;;  %v3097_v11 = vld [vmem:[#allocation5 + $0xa0] ss:$16 sps:$4 sm:$0xff]   ;;  %v3098_v12 = vld [vmem:[#allocation5 + $0xa8] ss:$16 sps:$4 sm:$0xff]   ;;  %v3099_v13 = vld [vmem:[#allocation5 + $0x84] ss:$16 sps:$4 sm:$0xff]  }
  0x50   :  { %v3101_v14 = vld [vmem:[#allocation5 + $0x8c] ss:$16 sps:$4 sm:$0xff]   ;;  %v3103_v15 = vld [vmem:[#allocation5 + $0x80] ss:$16 sps:$4 sm:$0xff]   ;;  %v3104_v16 = vld [vmem:[#allocation5 + $0x88] ss:$16 sps:$4 sm:$0xff]  }
  0x51   :  { %v3105_v17 = vld [vmem:[#allocation5 + $0x64] ss:$16 sps:$4 sm:$0xff]   ;;  %v3107_v18 = vld [vmem:[#allocation5 + $0x6c] ss:$16 sps:$4 sm:$0xff]   ;;  %v3109_v19 = vld [vmem:[#allocation5 + $0x60] ss:$16 sps:$4 sm:$0xff]  }
  0x52   :  { %330 = vmatpush1.bf16.msra.mxu0 %v3091_v7  ;;  %371 = vmatpush1.bf16.msra.mxu1 %v3092_v8  ;;  %v3110_v20 = vld [vmem:[#allocation5 + $0x68] ss:$16 sps:$4 sm:$0xff]   ;;  %v3111_v21 = vld [vmem:[#allocation5 + $0x44] ss:$16 sps:$4 sm:$0xff]   ;;  %v3113_v22 = vld [vmem:[#allocation5 + $0x4c] ss:$16 sps:$4 sm:$0xff]  }
  0x53   :  { %331 = vmatprep.subr.bf16.mxu0 %v3093_v9  ;;  %372 = vmatprep.subr.bf16.mxu1 %v3095_v10  ;;  %v3115_v23 = vld [vmem:[#allocation5 + $0x40] ss:$16 sps:$4 sm:$0xff]   ;;  %v3116_v24 = vld [vmem:[#allocation5 + $0x48] ss:$16 sps:$4 sm:$0xff]   ;;  %v3117_v25 = vld [vmem:[#allocation5 + $0x24] ss:$16 sps:$4 sm:$0xff]  }
  0x54   :  { %v3119_v26 = vld [vmem:[#allocation5 + $0x2c] ss:$16 sps:$4 sm:$0xff]   ;;  %v3121_v27 = vld [vmem:[#allocation5 + $0x20] ss:$16 sps:$4 sm:$0xff]   ;;  %v3122_v28 = vld [vmem:[#allocation5 + $0x28] ss:$16 sps:$4 sm:$0xff]  }
  0x55   :  { %v3123_v29 = vld [vmem:[#allocation5 + $0x4] ss:$16 sps:$4 sm:$0xff]   ;;  %v3125_v30 = vld [vmem:[#allocation5 + $0xc] ss:$16 sps:$4 sm:$0xff]   ;;  %v3127_v31 = vld [vmem:[#allocation5] ss:$16 sps:$4 sm:$0xff]  }
  0x56   :  { %332 = vmatpush1.bf16.msra.mxu0 %v3097_v11  ;;  %373 = vmatpush1.bf16.msra.mxu1 %v3098_v12  ;;  %v3128_v32 = vld [vmem:[#allocation5 + $0x8] ss:$16 sps:$4 sm:$0xff]   ;;  %v112_v35 = vld [vmem:[#allocation2] sm:$0xf]  ;;  %v3129_v36 = vld [vmem:[#allocation8 + $0xe0] ss:$16 sps:$4 sm:$0xff]  }
  0x57   :  { %333 = vmatprep.subr.bf16.mxu0 %v3099_v13  ;;  %374 = vmatprep.subr.bf16.mxu1 %v3101_v14  ;;  %v3131_v33 = vld [vmem:[#allocation8 + $0xe4] ss:$16 sps:$4 sm:$0xff]   ;;  %v3132_v37 = vld [vmem:[#allocation8 + $0x2e0] ss:$16 sps:$4 sm:$0xff]   ;;  %s2692_s21 = sshll.u32 %s3708_s20, 4  ;;  %s2693_s21 = int_to_ptr.vmem [resolvable:$true] %s2692_s21 }
  0x58   :  { %v3134_v34 = vld [vmem:[#allocation8 + $0x2e4] ss:$16 sps:$4 sm:$0xff]   ;;  %v3135_v40 = vld [vmem:[#allocation8 + $0xc0] ss:$16 sps:$4 sm:$0xff]   ;;  %s3667_s22 = scalar_lea.vmem %s2693_s21, 128  ;;  %p3672_p3 = scmp.lt.s32.totalorder %s2693_s21, %s2693_s21 }
  0x59   :  { %v3137_v38 = vld [vmem:[#allocation8 + $0xc4] ss:$16 sps:$4 sm:$0xff]   ;;  %v3138_v41 = vld [vmem:[#allocation8 + $0x2c0] ss:$16 sps:$4 sm:$0xff]   ;;  %p3668_p2 = scmp.ne.s32.totalorder %s2693_s21, %s3667_s22  ;;  %p3673_p4 = scmp.lt.s32.totalorder %s3667_s22, %s3667_s22 }
  0x5a   :  { %334 = vmatpush1.bf16.msra.mxu0 %v3103_v15  ;;  %375 = vmatpush1.bf16.msra.mxu1 %v3104_v16  ;;  %v3140_v39 = vld [vmem:[#allocation8 + $0x2c4] ss:$16 sps:$4 sm:$0xff]   ;;  %v3141_v44 = vld [vmem:[#allocation8 + $0xa0] ss:$16 sps:$4 sm:$0xff]  }
  0x5b   :  { %335 = vmatprep.subr.bf16.mxu0 %v3105_v17  ;;  %376 = vmatprep.subr.bf16.mxu1 %v3107_v18  ;;  %v3143_v42 = vld [vmem:[#allocation8 + $0xa4] ss:$16 sps:$4 sm:$0xff]   ;;  %v3144_v45 = vld [vmem:[#allocation8 + $0x2a0] ss:$16 sps:$4 sm:$0xff]   ;;  %p3674_p5 = por %p3673_p4, %p3672_p3 }
  0x5c   :  { %v3146_v43 = vld [vmem:[#allocation8 + $0x2a4] ss:$16 sps:$4 sm:$0xff]   ;;  %v3147_v48 = vld [vmem:[#allocation8 + $0x80] ss:$16 sps:$4 sm:$0xff]  }
  0x5d   :  { %v3149_v46 = vld [vmem:[#allocation8 + $0x84] ss:$16 sps:$4 sm:$0xff]   ;;  %v3150_v49 = vld [vmem:[#allocation8 + $0x280] ss:$16 sps:$4 sm:$0xff]   ;;  %p3675_p6 = pnand %p3674_p5, %p3668_p2 }
  0x5e   :  { %336 = vmatpush1.bf16.msra.mxu0 %v3109_v19  ;;  %377 = vmatpush1.bf16.msra.mxu1 %v3110_v20  ;;  %v3152_v47 = vld [vmem:[#allocation8 + $0x284] ss:$16 sps:$4 sm:$0xff]   ;;  %v3153_v52 = vld [vmem:[#allocation8 + $0x60] ss:$16 sps:$4 sm:$0xff]  }
  0x5f   :  { %337 = vmatprep.subr.bf16.mxu0 %v3111_v21  ;;  %378 = vmatprep.subr.bf16.mxu1 %v3113_v22  ;;  %v3155_v50 = vld [vmem:[#allocation8 + $0x64] ss:$16 sps:$4 sm:$0xff]   ;;  %v3156_v53 = vld [vmem:[#allocation8 + $0x260] ss:$16 sps:$4 sm:$0xff]  }
  0x60   :  { %v3158_v51 = vld [vmem:[#allocation8 + $0x264] ss:$16 sps:$4 sm:$0xff]   ;;  %v3159_v56 = vld [vmem:[#allocation8 + $0x40] ss:$16 sps:$4 sm:$0xff]  }
  0x61   :  { %v3161_v54 = vld [vmem:[#allocation8 + $0x44] ss:$16 sps:$4 sm:$0xff]   ;;  %v3162_v57 = vld [vmem:[#allocation8 + $0x240] ss:$16 sps:$4 sm:$0xff]  }
  0x62   :  { %338 = vmatpush1.bf16.msra.mxu0 %v3115_v23  ;;  %379 = vmatpush1.bf16.msra.mxu1 %v3116_v24  ;;  %v3164_v55 = vld [vmem:[#allocation8 + $0x244] ss:$16 sps:$4 sm:$0xff]   ;;  %v3165_v60 = vld [vmem:[#allocation8 + $0x20] ss:$16 sps:$4 sm:$0xff]  }
  0x63   :  { %339 = vmatprep.subr.bf16.mxu0 %v3117_v25  ;;  %380 = vmatprep.subr.bf16.mxu1 %v3119_v26  ;;  %v3167_v58 = vld [vmem:[#allocation8 + $0x24] ss:$16 sps:$4 sm:$0xff]   ;;  %v3168_v61 = vld [vmem:[#allocation8 + $0x220] ss:$16 sps:$4 sm:$0xff]  }
  0x64   :  { %v3170_v59 = vld [vmem:[#allocation8 + $0x224] ss:$16 sps:$4 sm:$0xff]   ;;  %v3171_v0 = vld [vmem:[#allocation8] ss:$16 sps:$4 sm:$0xff]  }
  0x65   :  { %v3173_v62 = vld [vmem:[#allocation8 + $0x4] ss:$16 sps:$4 sm:$0xff]   ;;  %v3174_v1 = vld [vmem:[#allocation8 + $0x200] ss:$16 sps:$4 sm:$0xff]  }
  0x66   :  { %340 = vmatpush1.bf16.msra.mxu0 %v3121_v27  ;;  %381 = vmatpush1.bf16.msra.mxu1 %v3122_v28  ;;  %v3176_v63 = vld [vmem:[#allocation8 + $0x204] ss:$16 sps:$4 sm:$0xff]   ;;  %v3177_v4 = vld [vmem:[#allocation8 + $0x1e0] ss:$16 sps:$4 sm:$0xff]  }
  0x67   :  { %341 = vmatprep.subr.bf16.mxu0 %v3123_v29  ;;  %382 = vmatprep.subr.bf16.mxu1 %v3125_v30  ;;  %v3179_v2 = vld [vmem:[#allocation8 + $0x1e4] ss:$16 sps:$4 sm:$0xff]   ;;  %v3180_v5 = vld [vmem:[#allocation8 + $0x3e0] ss:$16 sps:$4 sm:$0xff]  }
  0x68   :  { %v3182_v3 = vld [vmem:[#allocation8 + $0x3e4] ss:$16 sps:$4 sm:$0xff]   ;;  %v3183_v8 = vld [vmem:[#allocation8 + $0x1c0] ss:$16 sps:$4 sm:$0xff]  }
  0x69   :  { %v3185_v6 = vld [vmem:[#allocation8 + $0x1c4] ss:$16 sps:$4 sm:$0xff]   ;;  %v3186_v9 = vld [vmem:[#allocation8 + $0x3c0] ss:$16 sps:$4 sm:$0xff]  }
  0x6a   :  { %342 = vmatpush1.bf16.msra.mxu0 %v3127_v31  ;;  %383 = vmatpush1.bf16.msra.mxu1 %v3128_v32  ;;  %v3188_v7 = vld [vmem:[#allocation8 + $0x3c4] ss:$16 sps:$4 sm:$0xff]   ;;  %v3189_v12 = vld [vmem:[#allocation8 + $0x1a0] ss:$16 sps:$4 sm:$0xff]  }
  0x6b   :  { %1207 = vmatprep.subr.bf16.mxu0 %v3131_v33  ;;  %1248 = vmatprep.subr.bf16.mxu1 %v3134_v34  ;;  %v3191_v10 = vld [vmem:[#allocation8 + $0x1a4] ss:$16 sps:$4 sm:$0xff]   ;;  %v3192_v13 = vld [vmem:[#allocation8 + $0x3a0] ss:$16 sps:$4 sm:$0xff]   ;;  %v3227_v34 = vld [vmem:[#allocation8 + $0xec] ss:$16 sps:$4 sm:$0xff]  }
  0x6c   :  { %v3194_v11 = vld [vmem:[#allocation8 + $0x3a4] ss:$16 sps:$4 sm:$0xff]   ;;  %v3195_v16 = vld [vmem:[#allocation8 + $0x180] ss:$16 sps:$4 sm:$0xff]  }
  0x6d   :  { %360 = vmatmul.mubr.bf16.vlgmr.msra.gmra.mxu0 %v112_v35  ;;  %401 = vmatmul.mubr.bf16.vlgmr.msra.gmra.mxu1 %v112_v35  ;;  %v3197_v14 = vld [vmem:[#allocation8 + $0x184] ss:$16 sps:$4 sm:$0xff]   ;;  %v3198_v17 = vld [vmem:[#allocation8 + $0x380] ss:$16 sps:$4 sm:$0xff]   ;;  %v3230_v35 = vld [vmem:[#allocation8 + $0x2ec] ss:$16 sps:$4 sm:$0xff]  }
  0x6e   :  { %1208 = vmatpush1.bf16.msra.mxu0 %v3129_v36  ;;  %1249 = vmatpush1.bf16.msra.mxu1 %v3132_v37  ;;  %v3200_v15 = vld [vmem:[#allocation8 + $0x384] ss:$16 sps:$4 sm:$0xff]   ;;  %v3201_v20 = vld [vmem:[#allocation8 + $0x160] ss:$16 sps:$4 sm:$0xff]   ;;  %v147_v36 = vlaneseq }
  0x6f   :  { %1209 = vmatprep.subr.bf16.mxu0 %v3137_v38  ;;  %1250 = vmatprep.subr.bf16.mxu1 %v3140_v39  ;;  %v3203_v18 = vld [vmem:[#allocation8 + $0x164] ss:$16 sps:$4 sm:$0xff]   ;;  %v3204_v21 = vld [vmem:[#allocation8 + $0x360] ss:$16 sps:$4 sm:$0xff]  }
  0x70   :  { %v3206_v19 = vld [vmem:[#allocation8 + $0x364] ss:$16 sps:$4 sm:$0xff]   ;;  %v3207_v24 = vld [vmem:[#allocation8 + $0x140] ss:$16 sps:$4 sm:$0xff]   ;;  %v148_v37 = vshrl.u32 %v147_v36, 7 }
  0x71   :  { %v3209_v22 = vld [vmem:[#allocation8 + $0x144] ss:$16 sps:$4 sm:$0xff]   ;;  %v3210_v25 = vld [vmem:[#allocation8 + $0x340] ss:$16 sps:$4 sm:$0xff]   ;;  %v3276_v36 = vld [vmem:[#allocation8 + $0x3e8] ss:$16 sps:$4 sm:$0xff]  }
  0x72   :  { %1210 = vmatpush1.bf16.msra.mxu0 %v3135_v40  ;;  %1251 = vmatpush1.bf16.msra.mxu1 %v3138_v41  ;;  %v3212_v23 = vld [vmem:[#allocation8 + $0x344] ss:$16 sps:$4 sm:$0xff]   ;;  %v3213_v28 = vld [vmem:[#allocation8 + $0x120] ss:$16 sps:$4 sm:$0xff]   ;;  %v3786_v38 = vsub.s32 0, %v148_v37  ;;  %v3788_v39 = vsub.s32 2, %v148_v37 }
  0x73   :  { %1211 = vmatprep.subr.bf16.mxu0 %v3143_v42  ;;  %1252 = vmatprep.subr.bf16.mxu1 %v3146_v43  ;;  %v3215_v26 = vld [vmem:[#allocation8 + $0x124] ss:$16 sps:$4 sm:$0xff]   ;;  %v3216_v29 = vld [vmem:[#allocation8 + $0x320] ss:$16 sps:$4 sm:$0xff]   ;;  %v145_v40 = vld [vmem:[#allocation7] sm:$0xf] }
  0x74   :  { %v3218_v27 = vld [vmem:[#allocation8 + $0x324] ss:$16 sps:$4 sm:$0xff]   ;;  %v3219_v32 = vld [vmem:[#allocation8 + $0x100] ss:$16 sps:$4 sm:$0xff]   ;;  %v3790_v41 = vsub.s32 1, %v148_v37  ;;  %v3792_v42 = vsub.s32 3, %v148_v37  ;;  %v150_v43 = vrot.slane %v145_v40, %v3786_v38 }
  0x75   :  { %v3221_v30 = vld [vmem:[#allocation8 + $0x104] ss:$16 sps:$4 sm:$0xff]   ;;  %v3222_v33 = vld [vmem:[#allocation8 + $0x300] ss:$16 sps:$4 sm:$0xff]   ;;  %v3281_v37 = vld [vmem:[#allocation8 + $0x1cc] ss:$16 sps:$4 sm:$0xff]  }
  0x76   :  { %1212 = vmatpush1.bf16.msra.mxu0 %v3141_v44  ;;  %1253 = vmatpush1.bf16.msra.mxu1 %v3144_v45  ;;  %v3224_v31 = vld [vmem:[#allocation8 + $0x304] ss:$16 sps:$4 sm:$0xff]   ;;  %v158_v44 = vrot.slane %v145_v40, %v3788_v39  ;;  %v154_v45 = vrot.slane %v145_v40, %v3790_v41 }
  0x77   :  { %1213 = vmatprep.subr.bf16.mxu0 %v3149_v46  ;;  %1254 = vmatprep.subr.bf16.mxu1 %v3152_v47  ;;  %v162_v46 = vrot.slane %v145_v40, %v3792_v42  ;;  %v3284_v40 = vld [vmem:[#allocation8 + $0x3cc] ss:$16 sps:$4 sm:$0xff]  }
  0x7a   :  { %1214 = vmatpush1.bf16.msra.mxu0 %v3147_v48  ;;  %1255 = vmatpush1.bf16.msra.mxu1 %v3150_v49 }
  0x7b   :  { %1215 = vmatprep.subr.bf16.mxu0 %v3155_v50  ;;  %1256 = vmatprep.subr.bf16.mxu1 %v3158_v51 }
  0x7e   :  { %1216 = vmatpush1.bf16.msra.mxu0 %v3153_v52  ;;  %1257 = vmatpush1.bf16.msra.mxu1 %v3156_v53 }
  0x7f   :  { %1217 = vmatprep.subr.bf16.mxu0 %v3161_v54  ;;  %1258 = vmatprep.subr.bf16.mxu1 %v3164_v55 }
  0x82   :  { %1218 = vmatpush1.bf16.msra.mxu0 %v3159_v56  ;;  %1259 = vmatpush1.bf16.msra.mxu1 %v3162_v57 }
  0x83   :  { %1219 = vmatprep.subr.bf16.mxu0 %v3167_v58  ;;  %1260 = vmatprep.subr.bf16.mxu1 %v3170_v59 }
  0x86   :  { %1220 = vmatpush1.bf16.msra.mxu0 %v3165_v60  ;;  %1261 = vmatpush1.bf16.msra.mxu1 %v3168_v61 }
  0x87   :  { %1221 = vmatprep.subr.bf16.mxu0 %v3173_v62  ;;  %1262 = vmatprep.subr.bf16.mxu1 %v3176_v63 }
  0x8a   :  { %1222 = vmatpush1.bf16.msra.mxu0 %v3171_v0  ;;  %1263 = vmatpush1.bf16.msra.mxu1 %v3174_v1 }
  0x8b   :  { %1223 = vmatprep.subr.bf16.mxu0 %v3179_v2  ;;  %1264 = vmatprep.subr.bf16.mxu1 %v3182_v3  ;;  %v3225_v2 = vld [vmem:[#allocation8 + $0xe8] ss:$16 sps:$4 sm:$0xff]  }
  0x8c   :  { %v3228_v3 = vld [vmem:[#allocation8 + $0x2e8] ss:$16 sps:$4 sm:$0xff]  }
  0x8e   :  { %1224 = vmatpush2.bf16.msra.mxu0 %v3177_v4  ;;  %1265 = vmatpush2.bf16.msra.mxu1 %v3180_v5  ;;  %v3233_v5 = vld [vmem:[#allocation8 + $0xcc] ss:$16 sps:$4 sm:$0xff]  }
  0x8f   :  { %1225 = vmatprep.subr.bf16.mxu0 %v3185_v6  ;;  %1266 = vmatprep.subr.bf16.mxu1 %v3188_v7  ;;  %v3236_v6 = vld [vmem:[#allocation8 + $0x2cc] ss:$16 sps:$4 sm:$0xff]   ;;  %v3231_v7 = vld [vmem:[#allocation8 + $0xc8] ss:$16 sps:$4 sm:$0xff]  }
  0x92   :  { %1226 = vmatpush2.bf16.msra.mxu0 %v3183_v8  ;;  %1267 = vmatpush2.bf16.msra.mxu1 %v3186_v9  ;;  %v3234_v8 = vld [vmem:[#allocation8 + $0x2c8] ss:$16 sps:$4 sm:$0xff]   ;;  %v3239_v9 = vld [vmem:[#allocation8 + $0xac] ss:$16 sps:$4 sm:$0xff]  }
  0x93   :  { %1227 = vmatprep.subr.bf16.mxu0 %v3191_v10  ;;  %1268 = vmatprep.subr.bf16.mxu1 %v3194_v11  ;;  %v3242_v10 = vld [vmem:[#allocation8 + $0x2ac] ss:$16 sps:$4 sm:$0xff]   ;;  %v3237_v11 = vld [vmem:[#allocation8 + $0xa8] ss:$16 sps:$4 sm:$0xff]  }
  0x96   :  { %1228 = vmatpush2.bf16.msra.mxu0 %v3189_v12  ;;  %1269 = vmatpush2.bf16.msra.mxu1 %v3192_v13  ;;  %v3240_v12 = vld [vmem:[#allocation8 + $0x2a8] ss:$16 sps:$4 sm:$0xff]   ;;  %v3245_v13 = vld [vmem:[#allocation8 + $0x8c] ss:$16 sps:$4 sm:$0xff]  }
  0x97   :  { %1229 = vmatprep.subr.bf16.mxu0 %v3197_v14  ;;  %1270 = vmatprep.subr.bf16.mxu1 %v3200_v15  ;;  %v3248_v14 = vld [vmem:[#allocation8 + $0x28c] ss:$16 sps:$4 sm:$0xff]   ;;  %v3243_v15 = vld [vmem:[#allocation8 + $0x88] ss:$16 sps:$4 sm:$0xff]  }
  0x9a   :  { %1230 = vmatpush2.bf16.msra.mxu0 %v3195_v16  ;;  %1271 = vmatpush2.bf16.msra.mxu1 %v3198_v17  ;;  %v3246_v16 = vld [vmem:[#allocation8 + $0x288] ss:$16 sps:$4 sm:$0xff]   ;;  %v3251_v17 = vld [vmem:[#allocation8 + $0x6c] ss:$16 sps:$4 sm:$0xff]  }
  0x9b   :  { %1231 = vmatprep.subr.bf16.mxu0 %v3203_v18  ;;  %1272 = vmatprep.subr.bf16.mxu1 %v3206_v19  ;;  %v3254_v18 = vld [vmem:[#allocation8 + $0x26c] ss:$16 sps:$4 sm:$0xff]   ;;  %v3249_v19 = vld [vmem:[#allocation8 + $0x68] ss:$16 sps:$4 sm:$0xff]  }
  0x9e   :  { %1232 = vmatpush2.bf16.msra.mxu0 %v3201_v20  ;;  %1273 = vmatpush2.bf16.msra.mxu1 %v3204_v21  ;;  %v3252_v20 = vld [vmem:[#allocation8 + $0x268] ss:$16 sps:$4 sm:$0xff]   ;;  %v3257_v21 = vld [vmem:[#allocation8 + $0x4c] ss:$16 sps:$4 sm:$0xff]  }
  0x9f   :  { %1233 = vmatprep.subr.bf16.mxu0 %v3209_v22  ;;  %1274 = vmatprep.subr.bf16.mxu1 %v3212_v23  ;;  %v3260_v22 = vld [vmem:[#allocation8 + $0x24c] ss:$16 sps:$4 sm:$0xff]   ;;  %v3255_v23 = vld [vmem:[#allocation8 + $0x48] ss:$16 sps:$4 sm:$0xff]  }
  0xa2   :  { %1234 = vmatpush2.bf16.msra.mxu0 %v3207_v24  ;;  %1275 = vmatpush2.bf16.msra.mxu1 %v3210_v25  ;;  %v3258_v24 = vld [vmem:[#allocation8 + $0x248] ss:$16 sps:$4 sm:$0xff]   ;;  %v3263_v25 = vld [vmem:[#allocation8 + $0x2c] ss:$16 sps:$4 sm:$0xff]  }
  0xa3   :  { %1235 = vmatprep.subr.bf16.mxu0 %v3215_v26  ;;  %1276 = vmatprep.subr.bf16.mxu1 %v3218_v27  ;;  %v3266_v26 = vld [vmem:[#allocation8 + $0x22c] ss:$16 sps:$4 sm:$0xff]   ;;  %v3261_v27 = vld [vmem:[#allocation8 + $0x28] ss:$16 sps:$4 sm:$0xff]  }
  0xa6   :  { %1236 = vmatpush2.bf16.msra.mxu0 %v3213_v28  ;;  %1277 = vmatpush2.bf16.msra.mxu1 %v3216_v29  ;;  %v3264_v28 = vld [vmem:[#allocation8 + $0x228] ss:$16 sps:$4 sm:$0xff]   ;;  %v3269_v29 = vld [vmem:[#allocation8 + $0xc] ss:$16 sps:$4 sm:$0xff]  }
  0xa7   :  { %1237 = vmatprep.subr.bf16.mxu0 %v3221_v30  ;;  %1278 = vmatprep.subr.bf16.mxu1 %v3224_v31  ;;  %v3272_v30 = vld [vmem:[#allocation8 + $0x20c] ss:$16 sps:$4 sm:$0xff]   ;;  %v3267_v31 = vld [vmem:[#allocation8 + $0x8] ss:$16 sps:$4 sm:$0xff]  }
  0xaa   :  { %1238 = vmatpush2.bf16.msra.mxu0 %v3219_v32  ;;  %1279 = vmatpush2.bf16.msra.mxu1 %v3222_v33  ;;  %v3270_v32 = vld [vmem:[#allocation8 + $0x208] ss:$16 sps:$4 sm:$0xff]   ;;  %v3275_v33 = vld [vmem:[#allocation8 + $0x1ec] ss:$16 sps:$4 sm:$0xff]  }
  0xab   :  { %1289 = vmatprep.subr.bf16.mxu0 %v3227_v34  ;;  %1330 = vmatprep.subr.bf16.mxu1 %v3230_v35  ;;  %v3278_v34 = vld [vmem:[#allocation8 + $0x3ec] ss:$16 sps:$4 sm:$0xff]   ;;  %v3273_v35 = vld [vmem:[#allocation8 + $0x1e8] ss:$16 sps:$4 sm:$0xff]  }
 0x12d   :  { %v361_v47 = vpop.f32.mrf.mxu0  ;;  %v402_v48 = vpop.f32.mrf.mxu1 }
 0x12e   :  { %v362_v49 = vadd.f32 %v361_v47, %v150_v43  ;;  %v403_v50 = vadd.f32 %v402_v48, %v158_v44  ;;  %v3279_v43 = vld [vmem:[#allocation8 + $0x1c8] ss:$16 sps:$4 sm:$0xff]  }
 0x12f   :  { %v363_v51 = vpop.f32.mrf.mxu0  ;;  %v404_v52 = vpop.f32.mrf.mxu1  ;;  %v3282_v44 = vld [vmem:[#allocation8 + $0x3c8] ss:$16 sps:$4 sm:$0xff]  }
 0x130   :  { %v411_v53 = vmax.f32 %v403_v50, 0.0  ;;  %v364_v54 = vadd.f32 %v363_v51, %v154_v45  ;;  %v405_v55 = vadd.f32 %v404_v52, %v162_v46  ;;  %v409_v56 = vmax.f32 %v362_v49, 0.0  ;;  %v3287_v45 = vld [vmem:[#allocation8 + $0x1ac] ss:$16 sps:$4 sm:$0xff]   ;;  %v3285_v47 = vld [vmem:[#allocation8 + $0x1a8] ss:$16 sps:$4 sm:$0xff]  }
 0x131   :  { %v365_v57 = vpop.f32.mrf.mxu0  ;;  %v406_v58 = vpop.f32.mrf.mxu1  ;;  %v3290_v46 = vld [vmem:[#allocation8 + $0x3ac] ss:$16 sps:$4 sm:$0xff]   ;;  %v3288_v48 = vld [vmem:[#allocation8 + $0x3a8] ss:$16 sps:$4 sm:$0xff]  }
 0x132   :  { %v410_v59 = vmax.f32 %v364_v54, 0.0  ;;  %v412_v60 = vmax.f32 %v405_v55, 0.0  ;;  %v3798_v61 = vpack.c.bf16 %v411_v53, %v411_v53  ;;  %v3800_v4 = vpack.c.bf16 %v409_v56, %v409_v56  ;;  %v3293_v49 = vld [vmem:[#allocation8 + $0x18c] ss:$16 sps:$4 sm:$0xff]   ;;  %v3291_v51 = vld [vmem:[#allocation8 + $0x188] ss:$16 sps:$4 sm:$0xff]  }
 0x133   :  { %v366_v62 = vpop.f32.mrf.mxu0  ;;  %v407_v63 = vpop.f32.mrf.mxu1  ;;  %v3296_v50 = vld [vmem:[#allocation8 + $0x38c] ss:$16 sps:$4 sm:$0xff]   ;;  %v3294_v52 = vld [vmem:[#allocation8 + $0x388] ss:$16 sps:$4 sm:$0xff]  }
 0x134   :  { %v414_v0 = vpack.c.bf16 %v410_v59, %v410_v59  ;;  %v416_v1 = vpack.c.bf16 %v412_v60, %v412_v60  ;;  %v3299_v53 = vld [vmem:[#allocation8 + $0x16c] ss:$16 sps:$4 sm:$0xff]   ;;  %v3297_v55 = vld [vmem:[#allocation8 + $0x168] ss:$16 sps:$4 sm:$0xff]  }
 0x135   :  { %v3302_v54 = vld [vmem:[#allocation8 + $0x36c] ss:$16 sps:$4 sm:$0xff]   ;;  %v3300_v56 = vld [vmem:[#allocation8 + $0x368] ss:$16 sps:$4 sm:$0xff]  }
 0x136   :  { %1239 = vmatprep.mubr.bf16.mxu0 %v414_v0  ;;  %1280 = vmatprep.mubr.bf16.mxu1 %v416_v1  ;;  %v3305_v57 = vld [vmem:[#allocation8 + $0x14c] ss:$16 sps:$4 sm:$0xff]   ;;  %v3303_v59 = vld [vmem:[#allocation8 + $0x148] ss:$16 sps:$4 sm:$0xff]  }
 0x137   :  { %1240 = vmatmul.mubr.bf16.vlgmr.msra.gmra.mxu0 %v3800_v4  ;;  %1281 = vmatmul.mubr.bf16.vlgmr.msra.gmra.mxu1 %v3798_v61  ;;  %v3308_v58 = vld [vmem:[#allocation8 + $0x34c] ss:$16 sps:$4 sm:$0xff]   ;;  %v3306_v60 = vld [vmem:[#allocation8 + $0x348] ss:$16 sps:$4 sm:$0xff]  }
 0x138   :  { %1290 = vmatpush1.bf16.msra.mxu0 %v3225_v2  ;;  %1331 = vmatpush1.bf16.msra.mxu1 %v3228_v3  ;;  %v3311_v62 = vld [vmem:[#allocation8 + $0x12c] ss:$16 sps:$4 sm:$0xff]  }
 0x139   :  { %1321 = vmatprep.mubr.bf16.mxu0 %v414_v0  ;;  %1362 = vmatprep.mubr.bf16.mxu1 %v416_v1  ;;  %v3314_v63 = vld [vmem:[#allocation8 + $0x32c] ss:$16 sps:$4 sm:$0xff]   ;;  %v3309_v0 = vld [vmem:[#allocation8 + $0x128] ss:$16 sps:$4 sm:$0xff]  }
 0x13a   :  { %1291 = vmatprep.subr.bf16.mxu0 %v3233_v5  ;;  %1332 = vmatprep.subr.bf16.mxu1 %v3236_v6  ;;  %v3312_v1 = vld [vmem:[#allocation8 + $0x328] ss:$16 sps:$4 sm:$0xff]   ;;  %v3317_v2 = vld [vmem:[#allocation8 + $0x10c] ss:$16 sps:$4 sm:$0xff]  }
 0x13b   :  { %v3320_v3 = vld [vmem:[#allocation8 + $0x30c] ss:$16 sps:$4 sm:$0xff]   ;;  %v3315_v5 = vld [vmem:[#allocation8 + $0x108] ss:$16 sps:$4 sm:$0xff]  }
 0x13c   :  { %1292 = vmatpush1.bf16.msra.mxu0 %v3231_v7  ;;  %1333 = vmatpush1.bf16.msra.mxu1 %v3234_v8  ;;  %v3318_v6 = vld [vmem:[#allocation8 + $0x308] ss:$16 sps:$4 sm:$0xff]   ;;  %v3323_v7 = vld [vmem:[#allocation10 + $0xe4] ss:$16 sps:$4 sm:$0xff]   ;;  %v3321_v8 = vld [vmem:[#allocation10 + $0xe0] ss:$16 sps:$4 sm:$0xff]  }
 0x13d   :  { %1293 = vmatprep.subr.bf16.mxu0 %v3239_v9  ;;  %1334 = vmatprep.subr.bf16.mxu1 %v3242_v10  ;;  %v3326_v9 = vld [vmem:[#allocation10 + $0xc4] ss:$16 sps:$4 sm:$0xff]   ;;  %v3324_v10 = vld [vmem:[#allocation10 + $0xc0] ss:$16 sps:$4 sm:$0xff]  }
 0x140   :  { %1294 = vmatpush1.bf16.msra.mxu0 %v3237_v11  ;;  %1335 = vmatpush1.bf16.msra.mxu1 %v3240_v12  ;;  %v3329_v11 = vld [vmem:[#allocation10 + $0xa4] ss:$16 sps:$4 sm:$0xff]   ;;  %v3327_v12 = vld [vmem:[#allocation10 + $0xa0] ss:$16 sps:$4 sm:$0xff]  }
 0x141   :  { %1295 = vmatprep.subr.bf16.mxu0 %v3245_v13  ;;  %1336 = vmatprep.subr.bf16.mxu1 %v3248_v14  ;;  %v3332_v13 = vld [vmem:[#allocation10 + $0x84] ss:$16 sps:$4 sm:$0xff]   ;;  %v3330_v14 = vld [vmem:[#allocation10 + $0x80] ss:$16 sps:$4 sm:$0xff]  }
 0x144   :  { %1296 = vmatpush1.bf16.msra.mxu0 %v3243_v15  ;;  %1337 = vmatpush1.bf16.msra.mxu1 %v3246_v16  ;;  %v3369_v15 = vld [vmem:[#allocation10 + $0x2e0] ss:$16 sps:$4 sm:$0xff]   ;;  %v3371_v16 = vld [vmem:[#allocation10 + $0x2e4] ss:$16 sps:$4 sm:$0xff]  }
 0x145   :  { %1297 = vmatprep.subr.bf16.mxu0 %v3251_v17  ;;  %1338 = vmatprep.subr.bf16.mxu1 %v3254_v18  ;;  %v3335_v17 = vld [vmem:[#allocation10 + $0x64] ss:$16 sps:$4 sm:$0xff]   ;;  %v3375_v18 = vld [vmem:[#allocation10 + $0x2c0] ss:$16 sps:$4 sm:$0xff]  }
 0x148   :  { %1298 = vmatpush1.bf16.msra.mxu0 %v3249_v19  ;;  %1339 = vmatpush1.bf16.msra.mxu1 %v3252_v20  ;;  %v3338_v19 = vld [vmem:[#allocation10 + $0x44] ss:$16 sps:$4 sm:$0xff]   ;;  %v3336_v20 = vld [vmem:[#allocation10 + $0x40] ss:$16 sps:$4 sm:$0xff]  }
 0x149   :  { %1299 = vmatprep.subr.bf16.mxu0 %v3257_v21  ;;  %1340 = vmatprep.subr.bf16.mxu1 %v3260_v22  ;;  %v3381_v21 = vld [vmem:[#allocation10 + $0x2a0] ss:$16 sps:$4 sm:$0xff]   ;;  %v3383_v22 = vld [vmem:[#allocation10 + $0x2a4] ss:$16 sps:$4 sm:$0xff]  }
 0x14c   :  { %1300 = vmatpush1.bf16.msra.mxu0 %v3255_v23  ;;  %1341 = vmatpush1.bf16.msra.mxu1 %v3258_v24  ;;  %v3341_v23 = vld [vmem:[#allocation10 + $0x24] ss:$16 sps:$4 sm:$0xff]   ;;  %v3339_v24 = vld [vmem:[#allocation10 + $0x20] ss:$16 sps:$4 sm:$0xff]  }
 0x14d   :  { %1301 = vmatprep.subr.bf16.mxu0 %v3263_v25  ;;  %1342 = vmatprep.subr.bf16.mxu1 %v3266_v26  ;;  %v3387_v25 = vld [vmem:[#allocation10 + $0x280] ss:$16 sps:$4 sm:$0xff]   ;;  %v3389_v26 = vld [vmem:[#allocation10 + $0x284] ss:$16 sps:$4 sm:$0xff]  }
 0x150   :  { %1302 = vmatpush1.bf16.msra.mxu0 %v3261_v27  ;;  %1343 = vmatpush1.bf16.msra.mxu1 %v3264_v28  ;;  %v3344_v27 = vld [vmem:[#allocation10 + $0x4] ss:$16 sps:$4 sm:$0xff]   ;;  %v3342_v28 = vld [vmem:[#allocation10] ss:$16 sps:$4 sm:$0xff]  }
 0x151   :  { %1303 = vmatprep.subr.bf16.mxu0 %v3269_v29  ;;  %1344 = vmatprep.subr.bf16.mxu1 %v3272_v30  ;;  %v3393_v29 = vld [vmem:[#allocation10 + $0x260] ss:$16 sps:$4 sm:$0xff]   ;;  %v3395_v30 = vld [vmem:[#allocation10 + $0x264] ss:$16 sps:$4 sm:$0xff]  }
 0x154   :  { %1304 = vmatpush1.bf16.msra.mxu0 %v3267_v31  ;;  %1345 = vmatpush1.bf16.msra.mxu1 %v3270_v32  ;;  %v3347_v31 = vld [vmem:[#allocation10 + $0x1e4] ss:$16 sps:$4 sm:$0xff]   ;;  %v3345_v32 = vld [vmem:[#allocation10 + $0x1e0] ss:$16 sps:$4 sm:$0xff]  }
 0x155   :  { %1305 = vmatprep.subr.bf16.mxu0 %v3275_v33  ;;  %1346 = vmatprep.subr.bf16.mxu1 %v3278_v34  ;;  %v3399_v33 = vld [vmem:[#allocation10 + $0x240] ss:$16 sps:$4 sm:$0xff]   ;;  %v3401_v34 = vld [vmem:[#allocation10 + $0x244] ss:$16 sps:$4 sm:$0xff]  }
 0x158   :  { %1306 = vmatpush2.bf16.msra.mxu0 %v3273_v35  ;;  %1347 = vmatpush2.bf16.msra.mxu1 %v3276_v36  ;;  %v3350_v35 = vld [vmem:[#allocation10 + $0x1c4] ss:$16 sps:$4 sm:$0xff]   ;;  %v3348_v36 = vld [vmem:[#allocation10 + $0x1c0] ss:$16 sps:$4 sm:$0xff]  }
 0x159   :  { %1307 = vmatprep.subr.bf16.mxu0 %v3281_v37  ;;  %1348 = vmatprep.subr.bf16.mxu1 %v3284_v40  ;;  %v3405_v37 = vld [vmem:[#allocation10 + $0x220] ss:$16 sps:$4 sm:$0xff]   ;;  %v3407_v40 = vld [vmem:[#allocation10 + $0x224] ss:$16 sps:$4 sm:$0xff]  }
 0x15c   :  { %1308 = vmatpush2.bf16.msra.mxu0 %v3279_v43  ;;  %1349 = vmatpush2.bf16.msra.mxu1 %v3282_v44  ;;  %v3353_v43 = vld [vmem:[#allocation10 + $0x1a4] ss:$16 sps:$4 sm:$0xff]   ;;  %v3351_v44 = vld [vmem:[#allocation10 + $0x1a0] ss:$16 sps:$4 sm:$0xff]  }
 0x15d   :  { %1309 = vmatprep.subr.bf16.mxu0 %v3287_v45  ;;  %1350 = vmatprep.subr.bf16.mxu1 %v3290_v46  ;;  %v3411_v45 = vld [vmem:[#allocation10 + $0x200] ss:$16 sps:$4 sm:$0xff]   ;;  %v3413_v46 = vld [vmem:[#allocation10 + $0x204] ss:$16 sps:$4 sm:$0xff]  }
 0x160   :  { %1310 = vmatpush2.bf16.msra.mxu0 %v3285_v47  ;;  %1351 = vmatpush2.bf16.msra.mxu1 %v3288_v48  ;;  %v3356_v47 = vld [vmem:[#allocation10 + $0x184] ss:$16 sps:$4 sm:$0xff]   ;;  %v3354_v48 = vld [vmem:[#allocation10 + $0x180] ss:$16 sps:$4 sm:$0xff]  }
 0x161   :  { %1311 = vmatprep.subr.bf16.mxu0 %v3293_v49  ;;  %1352 = vmatprep.subr.bf16.mxu1 %v3296_v50  ;;  %v3417_v49 = vld [vmem:[#allocation10 + $0x3e0] ss:$16 sps:$4 sm:$0xff]   ;;  %v3419_v50 = vld [vmem:[#allocation10 + $0x3e4] ss:$16 sps:$4 sm:$0xff]  }
 0x164   :  { %1312 = vmatpush2.bf16.msra.mxu0 %v3291_v51  ;;  %1353 = vmatpush2.bf16.msra.mxu1 %v3294_v52  ;;  %v3359_v51 = vld [vmem:[#allocation10 + $0x164] ss:$16 sps:$4 sm:$0xff]   ;;  %v3357_v52 = vld [vmem:[#allocation10 + $0x160] ss:$16 sps:$4 sm:$0xff]  }
 0x165   :  { %1313 = vmatprep.subr.bf16.mxu0 %v3299_v53  ;;  %1354 = vmatprep.subr.bf16.mxu1 %v3302_v54  ;;  %v3423_v53 = vld [vmem:[#allocation10 + $0x3c0] ss:$16 sps:$4 sm:$0xff]   ;;  %v3425_v54 = vld [vmem:[#allocation10 + $0x3c4] ss:$16 sps:$4 sm:$0xff]  }
 0x168   :  { %1314 = vmatpush2.bf16.msra.mxu0 %v3297_v55  ;;  %1355 = vmatpush2.bf16.msra.mxu1 %v3300_v56  ;;  %v3362_v55 = vld [vmem:[#allocation10 + $0x144] ss:$16 sps:$4 sm:$0xff]   ;;  %v3360_v56 = vld [vmem:[#allocation10 + $0x140] ss:$16 sps:$4 sm:$0xff]  }
 0x169   :  { %1315 = vmatprep.subr.bf16.mxu0 %v3305_v57  ;;  %1356 = vmatprep.subr.bf16.mxu1 %v3308_v58  ;;  %v3429_v57 = vld [vmem:[#allocation10 + $0x3a0] ss:$16 sps:$4 sm:$0xff]   ;;  %v3431_v58 = vld [vmem:[#allocation10 + $0x3a4] ss:$16 sps:$4 sm:$0xff]  }
 0x16c   :  { %1316 = vmatpush2.bf16.msra.mxu0 %v3303_v59  ;;  %1357 = vmatpush2.bf16.msra.mxu1 %v3306_v60  ;;  %v3365_v59 = vld [vmem:[#allocation10 + $0x124] ss:$16 sps:$4 sm:$0xff]   ;;  %v3363_v60 = vld [vmem:[#allocation10 + $0x120] ss:$16 sps:$4 sm:$0xff]  }
 0x16d   :  { %1317 = vmatprep.subr.bf16.mxu0 %v3311_v62  ;;  %1358 = vmatprep.subr.bf16.mxu1 %v3314_v63  ;;  %v3435_v62 = vld [vmem:[#allocation10 + $0x380] ss:$16 sps:$4 sm:$0xff]   ;;  %v3437_v63 = vld [vmem:[#allocation10 + $0x384] ss:$16 sps:$4 sm:$0xff]  }
 0x170   :  { %1318 = vmatpush2.bf16.msra.mxu0 %v3309_v0  ;;  %1359 = vmatpush2.bf16.msra.mxu1 %v3312_v1  ;;  %v3368_v0 = vld [vmem:[#allocation10 + $0x104] ss:$16 sps:$4 sm:$0xff]   ;;  %v3366_v1 = vld [vmem:[#allocation10 + $0x100] ss:$16 sps:$4 sm:$0xff]  }
 0x171   :  { %1319 = vmatprep.subr.bf16.mxu0 %v3317_v2  ;;  %1360 = vmatprep.subr.bf16.mxu1 %v3320_v3  ;;  %v3441_v2 = vld [vmem:[#allocation10 + $0x360] ss:$16 sps:$4 sm:$0xff]   ;;  %v3443_v3 = vld [vmem:[#allocation10 + $0x364] ss:$16 sps:$4 sm:$0xff]  }
 0x174   :  { %1320 = vmatpush2.bf16.msra.mxu0 %v3315_v5  ;;  %1361 = vmatpush2.bf16.msra.mxu1 %v3318_v6  ;;  %v3374_v5 = vld [vmem:[#allocation10 + $0xec] ss:$16 sps:$4 sm:$0xff]   ;;  %v3447_v6 = vld [vmem:[#allocation10 + $0x340] ss:$16 sps:$4 sm:$0xff]  }
 0x175   :  { %2169 = vmatprep.subr.bf16.mxu0 %v3323_v7  ;;  %2210 = vmatprep.subr.bf16.mxu1 %v3371_v16  ;;  %v3449_v7 = vld [vmem:[#allocation10 + $0x344] ss:$16 sps:$4 sm:$0xff]  }
 0x177   :  { %1322 = vmatmul.mubr.bf16.vlgmr.msra.gmra.mxu0 %v3800_v4  ;;  %1363 = vmatmul.mubr.bf16.vlgmr.msra.gmra.mxu1 %v3798_v61  ;;  %v3333_v4 = vld [vmem:[#allocation10 + $0x60] ss:$16 sps:$4 sm:$0xff]   ;;  %v3377_v61 = vld [vmem:[#allocation10 + $0x2c4] ss:$16 sps:$4 sm:$0xff]  }
 0x178   :  { %2170 = vmatpush1.bf16.msra.mxu0 %v3321_v8  ;;  %2211 = vmatpush1.bf16.msra.mxu1 %v3369_v15  ;;  %v3455_v8 = vld [vmem:[#allocation10 + $0x324] ss:$16 sps:$4 sm:$0xff]  }
 0x179   :  { %2171 = vmatprep.subr.bf16.mxu0 %v3326_v9  ;;  %2212 = vmatprep.subr.bf16.mxu1 %v3377_v61  ;;  %v3453_v9 = vld [vmem:[#allocation10 + $0x320] ss:$16 sps:$4 sm:$0xff]  }
 0x17c   :  { %2172 = vmatpush1.bf16.msra.mxu0 %v3324_v10  ;;  %2213 = vmatpush1.bf16.msra.mxu1 %v3375_v18  ;;  %v3461_v10 = vld [vmem:[#allocation10 + $0x304] ss:$16 sps:$4 sm:$0xff]  }
 0x17d   :  { %2173 = vmatprep.subr.bf16.mxu0 %v3329_v11  ;;  %2214 = vmatprep.subr.bf16.mxu1 %v3383_v22  ;;  %v3459_v11 = vld [vmem:[#allocation10 + $0x300] ss:$16 sps:$4 sm:$0xff]  }
 0x180   :  { %2174 = vmatpush1.bf16.msra.mxu0 %v3327_v12  ;;  %2215 = vmatpush1.bf16.msra.mxu1 %v3381_v21  ;;  %v3467_v12 = vld [vmem:[#allocation10 + $0x2ec] ss:$16 sps:$4 sm:$0xff]  }
 0x181   :  { %2175 = vmatprep.subr.bf16.mxu0 %v3332_v13  ;;  %2216 = vmatprep.subr.bf16.mxu1 %v3389_v26  ;;  %v3809_v13 = vld [vmem:[%s3844_s4] sm:$0xf] }
 0x182   :  { %v554_v15 = vrot.slane %v3809_v13, %v3790_v41 }
 0x184   :  { %2176 = vmatpush1.bf16.msra.mxu0 %v3330_v14  ;;  %2217 = vmatpush1.bf16.msra.mxu1 %v3387_v25  ;;  %v550_v14 = vrot.slane %v3809_v13, %v3786_v38 }
 0x185   :  { %2177 = vmatprep.subr.bf16.mxu0 %v3335_v17  ;;  %2218 = vmatprep.subr.bf16.mxu1 %v3395_v30 }
 0x188   :  { %2178 = vmatpush1.bf16.msra.mxu0 %v3333_v4  ;;  %2219 = vmatpush1.bf16.msra.mxu1 %v3393_v29  ;;  %v3372_v29 = vld [vmem:[#allocation10 + $0xe8] ss:$16 sps:$4 sm:$0xff]  }
 0x189   :  { %2179 = vmatprep.subr.bf16.mxu0 %v3338_v19  ;;  %2220 = vmatprep.subr.bf16.mxu1 %v3401_v34  ;;  %v3384_v34 = vld [vmem:[#allocation10 + $0xa8] ss:$16 sps:$4 sm:$0xff]  }
 0x18c   :  { %2180 = vmatpush1.bf16.msra.mxu0 %v3336_v20  ;;  %2221 = vmatpush1.bf16.msra.mxu1 %v3399_v33  ;;  %v3386_v33 = vld [vmem:[#allocation10 + $0xac] ss:$16 sps:$4 sm:$0xff]  }
 0x18d   :  { %2181 = vmatprep.subr.bf16.mxu0 %v3341_v23  ;;  %2222 = vmatprep.subr.bf16.mxu1 %v3407_v40  ;;  %v3396_v40 = vld [vmem:[#allocation10 + $0x68] ss:$16 sps:$4 sm:$0xff]  }
 0x190   :  { %2182 = vmatpush1.bf16.msra.mxu0 %v3339_v24  ;;  %2223 = vmatpush1.bf16.msra.mxu1 %v3405_v37  ;;  %v3398_v37 = vld [vmem:[#allocation10 + $0x6c] ss:$16 sps:$4 sm:$0xff]  }
 0x191   :  { %2183 = vmatprep.subr.bf16.mxu0 %v3344_v27  ;;  %2224 = vmatprep.subr.bf16.mxu1 %v3413_v46  ;;  %v3408_v46 = vld [vmem:[#allocation10 + $0x28] ss:$16 sps:$4 sm:$0xff]  }
 0x194   :  { %2184 = vmatpush1.bf16.msra.mxu0 %v3342_v28  ;;  %2225 = vmatpush1.bf16.msra.mxu1 %v3411_v45  ;;  %v3410_v45 = vld [vmem:[#allocation10 + $0x2c] ss:$16 sps:$4 sm:$0xff]  }
 0x195   :  { %2185 = vmatprep.subr.bf16.mxu0 %v3347_v31  ;;  %2226 = vmatprep.subr.bf16.mxu1 %v3419_v50  ;;  %v3380_v31 = vld [vmem:[#allocation10 + $0xcc] ss:$16 sps:$4 sm:$0xff]   ;;  %v3420_v50 = vld [vmem:[#allocation10 + $0x1e8] ss:$16 sps:$4 sm:$0xff]  }
 0x198   :  { %2186 = vmatpush2.bf16.msra.mxu0 %v3345_v32  ;;  %2227 = vmatpush2.bf16.msra.mxu1 %v3417_v49  ;;  %v3378_v32 = vld [vmem:[#allocation10 + $0xc8] ss:$16 sps:$4 sm:$0xff]   ;;  %v3422_v49 = vld [vmem:[#allocation10 + $0x1ec] ss:$16 sps:$4 sm:$0xff]  }
 0x199   :  { %2187 = vmatprep.subr.bf16.mxu0 %v3350_v35  ;;  %2228 = vmatprep.subr.bf16.mxu1 %v3425_v54  ;;  %v3392_v35 = vld [vmem:[#allocation10 + $0x8c] ss:$16 sps:$4 sm:$0xff]   ;;  %v3432_v54 = vld [vmem:[#allocation10 + $0x1a8] ss:$16 sps:$4 sm:$0xff]  }
 0x19c   :  { %2188 = vmatpush2.bf16.msra.mxu0 %v3348_v36  ;;  %2229 = vmatpush2.bf16.msra.mxu1 %v3423_v53  ;;  %v3390_v36 = vld [vmem:[#allocation10 + $0x88] ss:$16 sps:$4 sm:$0xff]   ;;  %v3434_v53 = vld [vmem:[#allocation10 + $0x1ac] ss:$16 sps:$4 sm:$0xff]  }
 0x19d   :  { %2189 = vmatprep.subr.bf16.mxu0 %v3353_v43  ;;  %2230 = vmatprep.subr.bf16.mxu1 %v3431_v58  ;;  %v3404_v43 = vld [vmem:[#allocation10 + $0x4c] ss:$16 sps:$4 sm:$0xff]   ;;  %v3444_v58 = vld [vmem:[#allocation10 + $0x168] ss:$16 sps:$4 sm:$0xff]  }
 0x1a0   :  { %2190 = vmatpush2.bf16.msra.mxu0 %v3351_v44  ;;  %2231 = vmatpush2.bf16.msra.mxu1 %v3429_v57  ;;  %v3402_v44 = vld [vmem:[#allocation10 + $0x48] ss:$16 sps:$4 sm:$0xff]   ;;  %v3446_v57 = vld [vmem:[#allocation10 + $0x16c] ss:$16 sps:$4 sm:$0xff]  }
 0x1a1   :  { %2191 = vmatprep.subr.bf16.mxu0 %v3356_v47  ;;  %2232 = vmatprep.subr.bf16.mxu1 %v3437_v63  ;;  %v3416_v47 = vld [vmem:[#allocation10 + $0xc] ss:$16 sps:$4 sm:$0xff]  }
 0x1a2   :  { %v3458_v63 = vld [vmem:[#allocation10 + $0x12c] ss:$16 sps:$4 sm:$0xff]  }
 0x1a4   :  { %2192 = vmatpush2.bf16.msra.mxu0 %v3354_v48  ;;  %2233 = vmatpush2.bf16.msra.mxu1 %v3435_v62  ;;  %v3414_v48 = vld [vmem:[#allocation10 + $0x8] ss:$16 sps:$4 sm:$0xff]  }
 0x1a5   :  { %2193 = vmatprep.subr.bf16.mxu0 %v3359_v51  ;;  %2234 = vmatprep.subr.bf16.mxu1 %v3443_v3  ;;  %v3428_v51 = vld [vmem:[#allocation10 + $0x1cc] ss:$16 sps:$4 sm:$0xff]   ;;  %v3450_v62 = vld [vmem:[#allocation10 + $0x148] ss:$16 sps:$4 sm:$0xff]  }
 0x1a8   :  { %2194 = vmatpush2.bf16.msra.mxu0 %v3357_v52  ;;  %2235 = vmatpush2.bf16.msra.mxu1 %v3441_v2  ;;  %v3426_v52 = vld [vmem:[#allocation10 + $0x1c8] ss:$16 sps:$4 sm:$0xff]  }
 0x1a9   :  { %2195 = vmatprep.subr.bf16.mxu0 %v3362_v55  ;;  %2236 = vmatprep.subr.bf16.mxu1 %v3449_v7  ;;  %v3440_v55 = vld [vmem:[#allocation10 + $0x18c] ss:$16 sps:$4 sm:$0xff]  }
 0x1ac   :  { %2196 = vmatpush2.bf16.msra.mxu0 %v3360_v56  ;;  %2237 = vmatpush2.bf16.msra.mxu1 %v3447_v6  ;;  %v3438_v56 = vld [vmem:[#allocation10 + $0x188] ss:$16 sps:$4 sm:$0xff]  }
 0x1ad   :  { %2197 = vmatprep.subr.bf16.mxu0 %v3365_v59  ;;  %2238 = vmatprep.subr.bf16.mxu1 %v3455_v8  ;;  %v3452_v59 = vld [vmem:[#allocation10 + $0x14c] ss:$16 sps:$4 sm:$0xff]  }
 0x1ae   :  { %v3464_v8 = vld [vmem:[#allocation10 + $0x10c] ss:$16 sps:$4 sm:$0xff]  }
 0x1b0   :  { %2198 = vmatpush2.bf16.msra.mxu0 %v3363_v60  ;;  %2239 = vmatpush2.bf16.msra.mxu1 %v3453_v9  ;;  %v558_v60 = vrot.slane %v3809_v13, %v3788_v39 }
 0x1b1   :  { %2199 = vmatprep.subr.bf16.mxu0 %v3368_v0  ;;  %2240 = vmatprep.subr.bf16.mxu1 %v3461_v10  ;;  %v562_v0 = vrot.slane %v3809_v13, %v3792_v42 }
 0x1b4   :  { %2200 = vmatpush2.bf16.msra.mxu0 %v3366_v1  ;;  %2241 = vmatpush2.bf16.msra.mxu1 %v3459_v11 }
 0x1b5   :  { %2251 = vmatprep.subr.bf16.mxu0 %v3374_v5  ;;  %2292 = vmatprep.subr.bf16.mxu1 %v3467_v12  ;;  %v3456_v5 = vld [vmem:[#allocation10 + $0x128] ss:$16 sps:$4 sm:$0xff]  }
 0x1f7   :  { %v1241_v16 = vpop.f32.mrf.mxu0  ;;  %v1282_v17 = vpop.f32.mrf.mxu1 }
 0x1f8   :  { %v1242_v4 = vadd.f32 %v1241_v16, %v550_v14 }
 0x1f9   :  { %v1243_v18 = vpop.f32.mrf.mxu0  ;;  %v1284_v61 = vpop.f32.mrf.mxu1 }
 0x1fa   :  { %v1283_v19 = vadd.f32 %v1282_v17, %v1242_v4  ;;  %v1244_v20 = vadd.f32 %v1243_v18, %v554_v15  ;;  %v3462_v15 = vld [vmem:[#allocation10 + $0x108] ss:$16 sps:$4 sm:$0xff]  }
 0x1fb   :  { %v1245_v21 = vpop.f32.mrf.mxu0  ;;  %v1286_v22 = vpop.f32.mrf.mxu1 }
 0x1fc   :  { %v1285_v23 = vadd.f32 %v1284_v61, %v1244_v20  ;;  %v1371_v24 = vmax.f32 %v1283_v19, 0.0  ;;  %v3465_v61 = vld [vmem:[#allocation10 + $0x2e8] ss:$16 sps:$4 sm:$0xff]   ;;  %v3470_v20 = vld [vmem:[#allocation10 + $0x2cc] ss:$16 sps:$4 sm:$0xff]  }
 0x1fd   :  { %v1246_v25 = vpop.f32.mrf.mxu0  ;;  %v1287_v26 = vpop.f32.mrf.mxu1  ;;  %v3468_v21 = vld [vmem:[#allocation10 + $0x2c8] ss:$16 sps:$4 sm:$0xff]   ;;  %v3473_v22 = vld [vmem:[#allocation10 + $0x2ac] ss:$16 sps:$4 sm:$0xff]  }
 0x1fe   :  { %v1372_v27 = vmax.f32 %v1285_v23, 0.0  ;;  %v3815_v30 = vpack.c.bf16 %v1371_v24, %v1371_v24  ;;  %v3471_v23 = vld [vmem:[#allocation10 + $0x2a8] ss:$16 sps:$4 sm:$0xff]   ;;  %v3476_v24 = vld [vmem:[#allocation10 + $0x28c] ss:$16 sps:$4 sm:$0xff]  }
 0x1ff   :  { %v3513_v25 = vld [vmem:[#allocation11 + $0x78] sm:$0xff]  }
 0x200   :  { %v1376_v28 = vpack.c.bf16 %v1372_v27, %v1372_v27  ;;  %v3514_v26 = vld [vmem:[#allocation11 + $0x38] sm:$0xff]   ;;  %v3515_v27 = vld [vmem:[#allocation11 + $0x70] sm:$0xff]  }
 0x202   :  { %2201 = vmatprep.mubr.bf16.mxu0 %v1376_v28 }
 0x203   :  { %2202 = vmatmul.mubr.bf16.vlgmr.msra.gmra.mxu0 %v3815_v30 }
 0x204   :  { %2252 = vmatpush1.bf16.msra.mxu0 %v3372_v29  ;;  %2283 = vmatprep.mubr.bf16.mxu0 %v1376_v28  ;;  %v3474_v28 = vld [vmem:[#allocation10 + $0x288] ss:$16 sps:$4 sm:$0xff]   ;;  %v3516_v29 = vld [vmem:[#allocation11 + $0x30] sm:$0xff]  }
 0x205   :  { %2253 = vmatprep.subr.bf16.mxu0 %v3380_v31  ;;  %v3479_v31 = vld [vmem:[#allocation10 + $0x26c] ss:$16 sps:$4 sm:$0xff]  }
 0x208   :  { %2254 = vmatpush1.bf16.msra.mxu0 %v3378_v32  ;;  %v3477_v32 = vld [vmem:[#allocation10 + $0x268] ss:$16 sps:$4 sm:$0xff]  }
 0x209   :  { %2255 = vmatprep.subr.bf16.mxu0 %v3386_v33  ;;  %v3518_v33 = vld [vmem:[#allocation11 + $0x28] sm:$0xff]  }
 0x20c   :  { %2256 = vmatpush1.bf16.msra.mxu0 %v3384_v34  ;;  %v3482_v34 = vld [vmem:[#allocation10 + $0x24c] ss:$16 sps:$4 sm:$0xff]  }
 0x20d   :  { %2257 = vmatprep.subr.bf16.mxu0 %v3392_v35  ;;  %v3519_v35 = vld [vmem:[#allocation11 + $0x60] sm:$0xff]  }
 0x210   :  { %2258 = vmatpush1.bf16.msra.mxu0 %v3390_v36  ;;  %v3480_v36 = vld [vmem:[#allocation10 + $0x248] ss:$16 sps:$4 sm:$0xff]  }
 0x211   :  { %2259 = vmatprep.subr.bf16.mxu0 %v3398_v37  ;;  %v3520_v37 = vld [vmem:[#allocation11 + $0x20] sm:$0xff]  }
 0x214   :  { %2260 = vmatpush1.bf16.msra.mxu0 %v3396_v40  ;;  %v3485_v40 = vld [vmem:[#allocation10 + $0x22c] ss:$16 sps:$4 sm:$0xff]  }
 0x215   :  { %2261 = vmatprep.subr.bf16.mxu0 %v3404_v43  ;;  %v3521_v43 = vld [vmem:[#allocation11 + $0x58] sm:$0xff]  }
 0x218   :  { %2262 = vmatpush1.bf16.msra.mxu0 %v3402_v44  ;;  %v3483_v44 = vld [vmem:[#allocation10 + $0x228] ss:$16 sps:$4 sm:$0xff]  }
 0x219   :  { %2263 = vmatprep.subr.bf16.mxu0 %v3410_v45  ;;  %v3522_v45 = vld [vmem:[#allocation11 + $0x18] sm:$0xff]  }
 0x21c   :  { %2264 = vmatpush1.bf16.msra.mxu0 %v3408_v46  ;;  %v3488_v46 = vld [vmem:[#allocation10 + $0x20c] ss:$16 sps:$4 sm:$0xff]  }
 0x21d   :  { %2265 = vmatprep.subr.bf16.mxu0 %v3416_v47  ;;  %v3523_v47 = vld [vmem:[#allocation11 + $0x50] sm:$0xff]  }
 0x220   :  { %2266 = vmatpush1.bf16.msra.mxu0 %v3414_v48  ;;  %v3486_v48 = vld [vmem:[#allocation10 + $0x208] ss:$16 sps:$4 sm:$0xff]  }
 0x221   :  { %2267 = vmatprep.subr.bf16.mxu0 %v3422_v49  ;;  %v3524_v49 = vld [vmem:[#allocation11 + $0x10] sm:$0xff]  }
 0x224   :  { %2268 = vmatpush2.bf16.msra.mxu0 %v3420_v50  ;;  %v3491_v50 = vld [vmem:[#allocation10 + $0x3ec] ss:$16 sps:$4 sm:$0xff]  }
 0x225   :  { %2269 = vmatprep.subr.bf16.mxu0 %v3428_v51  ;;  %v3489_v51 = vld [vmem:[#allocation10 + $0x3e8] ss:$16 sps:$4 sm:$0xff]  }
 0x228   :  { %2270 = vmatpush2.bf16.msra.mxu0 %v3426_v52  ;;  %v3494_v52 = vld [vmem:[#allocation10 + $0x3cc] ss:$16 sps:$4 sm:$0xff]  }
 0x229   :  { %2271 = vmatprep.subr.bf16.mxu0 %v3434_v53  ;;  %v3492_v53 = vld [vmem:[#allocation10 + $0x3c8] ss:$16 sps:$4 sm:$0xff]  }
 0x22c   :  { %2272 = vmatpush2.bf16.msra.mxu0 %v3432_v54  ;;  %v3497_v54 = vld [vmem:[#allocation10 + $0x3ac] ss:$16 sps:$4 sm:$0xff]  }
 0x22d   :  { %2273 = vmatprep.subr.bf16.mxu0 %v3440_v55  ;;  %v3495_v55 = vld [vmem:[#allocation10 + $0x3a8] ss:$16 sps:$4 sm:$0xff]  }
 0x230   :  { %2274 = vmatpush2.bf16.msra.mxu0 %v3438_v56  ;;  %v3500_v56 = vld [vmem:[#allocation10 + $0x38c] ss:$16 sps:$4 sm:$0xff]  }
 0x231   :  { %2275 = vmatprep.subr.bf16.mxu0 %v3446_v57  ;;  %v3498_v57 = vld [vmem:[#allocation10 + $0x388] ss:$16 sps:$4 sm:$0xff]  }
 0x234   :  { %2276 = vmatpush2.bf16.msra.mxu0 %v3444_v58  ;;  %v3503_v58 = vld [vmem:[#allocation10 + $0x36c] ss:$16 sps:$4 sm:$0xff]  }
 0x235   :  { %2277 = vmatprep.subr.bf16.mxu0 %v3452_v59  ;;  %v3501_v59 = vld [vmem:[#allocation10 + $0x368] ss:$16 sps:$4 sm:$0xff]  }
 0x237   :  { %v1323_v1 = vpop.f32.mrf.mxu0  ;;  %v1364_v2 = vpop.f32.mrf.mxu1 }
 0x238   :  { %v1324_v3 = vadd.f32 %v1323_v1, %v558_v60  ;;  %2278 = vmatpush2.bf16.msra.mxu0 %v3450_v62  ;;  %v3506_v60 = vld [vmem:[#allocation10 + $0x34c] ss:$16 sps:$4 sm:$0xff]   ;;  %v3504_v62 = vld [vmem:[#allocation10 + $0x348] ss:$16 sps:$4 sm:$0xff]  }
 0x239   :  { %v1325_v6 = vpop.f32.mrf.mxu0  ;;  %v1366_v7 = vpop.f32.mrf.mxu1  ;;  %2279 = vmatprep.subr.bf16.mxu0 %v3458_v63  ;;  %v3509_v63 = vld [vmem:[#allocation10 + $0x32c] ss:$16 sps:$4 sm:$0xff]  }
 0x23a   :  { %v1365_v9 = vadd.f32 %v1364_v2, %v1324_v3  ;;  %v1326_v10 = vadd.f32 %v1325_v6, %v562_v0  ;;  %v3507_v0 = vld [vmem:[#allocation10 + $0x328] ss:$16 sps:$4 sm:$0xff]   ;;  %v3512_v1 = vld [vmem:[#allocation10 + $0x30c] ss:$16 sps:$4 sm:$0xff]   ;;  %v3527_v6 = vld [vmem:[#allocation11 + $0x40] sm:$0xff]  }
 0x23b   :  { %v1327_v11 = vpop.f32.mrf.mxu0  ;;  %v1368_v12 = vpop.f32.mrf.mxu1  ;;  %v3510_v2 = vld [vmem:[#allocation10 + $0x308] ss:$16 sps:$4 sm:$0xff]  }
 0x23c   :  { %v1367_v14 = vadd.f32 %v1366_v7, %v1326_v10  ;;  %2280 = vmatpush2.bf16.msra.mxu0 %v3456_v5  ;;  %v1373_v16 = vmax.f32 %v1365_v9, 0.0  ;;  %v3525_v3 = vld [vmem:[#allocation11 + $0x48] sm:$0xff]   ;;  %v3528_v7 = vld [vmem:[#allocation11] sm:$0xff]   ;;  %v3530_v9 = vld [vmem:[#allocation11 + $0xb8] sm:$0xff]  }
 0x23d   :  { %v1328_v17 = vpop.f32.mrf.mxu0  ;;  %v1369_v4 = vpop.f32.mrf.mxu1  ;;  %2281 = vmatprep.subr.bf16.mxu0 %v3464_v8  ;;  %v3526_v5 = vld [vmem:[#allocation11 + $0x8] sm:$0xff]   ;;  %v3529_v8 = vld [vmem:[#allocation11 + $0xf8] sm:$0xff]   ;;  %v3531_v10 = vld [vmem:[#allocation11 + $0xf0] sm:$0xff]  }
 0x23e   :  { %v1374_v13 = vmax.f32 %v1367_v14, 0.0  ;;  %v3822_v19 = vpack.c.bf16 %v1373_v16, %v1373_v16  ;;  %v3532_v11 = vld [vmem:[#allocation11 + $0xb0] sm:$0xff]   ;;  %v3533_v12 = vld [vmem:[#allocation11 + $0xe8] sm:$0xff]   ;;  %v3536_v16 = vld [vmem:[#allocation11 + $0xa0] sm:$0xff]  }
 0x23f   :  { %v3534_v14 = vld [vmem:[#allocation11 + $0xa8] sm:$0xff]   ;;  %v3537_v17 = vld [vmem:[#allocation11 + $0xd8] sm:$0xff]  }
 0x240   :  { %v1378_v18 = vpack.c.bf16 %v1374_v13, %v1374_v13  ;;  %2282 = vmatpush2.bf16.msra.mxu0 %v3462_v15  ;;  %v3535_v15 = vld [vmem:[#allocation11 + $0xe0] sm:$0xff]   ;;  %v3538_v4 = vld [vmem:[#allocation11 + $0x98] sm:$0xff]   ;;  %v3539_v13 = vld [vmem:[#allocation11 + $0xd0] sm:$0xff]  }
 0x241   :  { %3025 = vmatprep.subr.bf16.mxu0 %v3513_v25 }
 0x242   :  { %2242 = vmatprep.mubr.bf16.mxu1 %v1378_v18 }
 0x243   :  { %2243 = vmatmul.mubr.bf16.vlgmr.msra.gmra.mxu1 %v3822_v19  ;;  %2284 = vmatmul.mubr.bf16.vlgmr.msra.gmra.mxu0 %v3815_v30  ;;  %v3517_v30 = vld [vmem:[#allocation11 + $0x68] sm:$0xff]  }
 0x244   :  { %2293 = vmatpush1.bf16.msra.mxu1 %v3465_v61  ;;  %2324 = vmatprep.mubr.bf16.mxu1 %v1378_v18  ;;  %v3540_v18 = vld [vmem:[#allocation11 + $0x90] sm:$0xff]  }
 0x245   :  { %2294 = vmatprep.subr.bf16.mxu1 %v3470_v20  ;;  %3026 = vmatpush3.bf16.msra.mxu0 %v3514_v26  ;;  %v3542_v20 = vld [vmem:[#allocation11 + $0x88] sm:$0xff]   ;;  %v1507_v26 = vld [vmem:[%s3846_s6] sm:$0xf] }
 0x246   :  { %3027 = vmatprep.subr.bf16.mxu0 %v3515_v27  ;;  %v1512_v27 = vrot.slane %v1507_v26, %v3786_v38  ;;  %v1520_v38 = vrot.slane %v1507_v26, %v3788_v39 }
 0x248   :  { %2295 = vmatpush1.bf16.msra.mxu1 %v3468_v21 }
 0x249   :  { %2296 = vmatprep.subr.bf16.mxu1 %v3473_v22  ;;  %3028 = vmatpush3.bf16.msra.mxu0 %v3516_v29 }
 0x24a   :  { %3029 = vmatprep.subr.bf16.mxu0 %v3517_v30 }
 0x24c   :  { %2297 = vmatpush1.bf16.msra.mxu1 %v3471_v23  ;;  %v3543_v23 = vld [vmem:[#allocation11 + $0xc0] sm:$0xff]  }
 0x24d   :  { %2298 = vmatprep.subr.bf16.mxu1 %v3476_v24  ;;  %3030 = vmatpush3.bf16.msra.mxu0 %v3518_v33  ;;  %v3544_v24 = vld [vmem:[#allocation11 + $0x80] sm:$0xff]  }
 0x24e   :  { %3031 = vmatprep.subr.bf16.mxu0 %v3519_v35 }
 0x250   :  { %2299 = vmatpush1.bf16.msra.mxu1 %v3474_v28  ;;  %v1516_v28 = vrot.slane %v1507_v26, %v3790_v41  ;;  %v1524_v41 = vrot.slane %v1507_v26, %v3792_v42  ;;  %v2992_v42 = vld [vmem:[%s3848_s8] ss:$0 sm:$0xff] }
 0x251   :  { %2300 = vmatprep.subr.bf16.mxu1 %v3479_v31  ;;  %3032 = vmatpush3.bf16.msra.mxu0 %v3520_v37 }
 0x252   :  { %3033 = vmatprep.subr.bf16.mxu0 %v3521_v43 }
 0x254   :  { %2301 = vmatpush1.bf16.msra.mxu1 %v3477_v32 }
 0x255   :  { %2302 = vmatprep.subr.bf16.mxu1 %v3482_v34  ;;  %3034 = vmatpush3.bf16.msra.mxu0 %v3522_v45 }
 0x256   :  { %3035 = vmatprep.subr.bf16.mxu0 %v3523_v47 }
 0x258   :  { %2303 = vmatpush1.bf16.msra.mxu1 %v3480_v36 }
 0x259   :  { %2304 = vmatprep.subr.bf16.mxu1 %v3485_v40  ;;  %3036 = vmatpush3.bf16.msra.mxu0 %v3524_v49 }
 0x25a   :  { %3037 = vmatprep.subr.bf16.mxu0 %v3525_v3 }
 0x25c   :  { %2305 = vmatpush1.bf16.msra.mxu1 %v3483_v44 }
 0x25d   :  { %2306 = vmatprep.subr.bf16.mxu1 %v3488_v46  ;;  %3038 = vmatpush3.bf16.msra.mxu0 %v3526_v5 }
 0x25e   :  { %3039 = vmatprep.subr.bf16.mxu0 %v3527_v6 }
 0x260   :  { %2307 = vmatpush1.bf16.msra.mxu1 %v3486_v48 }
 0x261   :  { %2308 = vmatprep.subr.bf16.mxu1 %v3491_v50  ;;  %3040 = vmatpush3.bf16.msra.mxu0 %v3528_v7 }
 0x264   :  { %2309 = vmatpush2.bf16.msra.mxu1 %v3489_v51 }
 0x265   :  { %2310 = vmatprep.subr.bf16.mxu1 %v3494_v52 }
 0x268   :  { %2311 = vmatpush2.bf16.msra.mxu1 %v3492_v53 }
 0x269   :  { %2312 = vmatprep.subr.bf16.mxu1 %v3497_v54 }
 0x26c   :  { %2313 = vmatpush2.bf16.msra.mxu1 %v3495_v55 }
 0x26d   :  { %2314 = vmatprep.subr.bf16.mxu1 %v3500_v56 }
 0x270   :  { %2315 = vmatpush2.bf16.msra.mxu1 %v3498_v57 }
 0x271   :  { %2316 = vmatprep.subr.bf16.mxu1 %v3503_v58 }
 0x274   :  { %2317 = vmatpush2.bf16.msra.mxu1 %v3501_v59 }
 0x275   :  { %2318 = vmatprep.subr.bf16.mxu1 %v3506_v60 }
 0x278   :  { %2319 = vmatpush2.bf16.msra.mxu1 %v3504_v62 }
 0x279   :  { %2320 = vmatprep.subr.bf16.mxu1 %v3509_v63 }
 0x27c   :  { %2321 = vmatpush2.bf16.msra.mxu1 %v3507_v0 }
 0x27d   :  { %2322 = vmatprep.subr.bf16.mxu1 %v3512_v1 }
 0x280   :  { %2323 = vmatpush2.bf16.msra.mxu1 %v3510_v2 }
 0x281   :  { %3047 = vmatprep.subr.bf16.mxu1 %v3529_v8 }
 0x283   :  { %2325 = vmatmul.mubr.bf16.vlgmr.msra.gmra.mxu1 %v3822_v19  ;;  %v3541_v19 = vld [vmem:[#allocation11 + $0xc8] sm:$0xff]  }
 0x284   :  { %3048 = vmatpush3.bf16.msra.mxu1 %v3530_v9 }
 0x285   :  { %3049 = vmatprep.subr.bf16.mxu1 %v3531_v10 }
 0x288   :  { %3050 = vmatpush3.bf16.msra.mxu1 %v3532_v11 }
 0x289   :  { %3051 = vmatprep.subr.bf16.mxu1 %v3533_v12 }
 0x28c   :  { %3052 = vmatpush3.bf16.msra.mxu1 %v3534_v14 }
 0x28d   :  { %3053 = vmatprep.subr.bf16.mxu1 %v3535_v15 }
 0x290   :  { %3054 = vmatpush3.bf16.msra.mxu1 %v3536_v16 }
 0x291   :  { %3055 = vmatprep.subr.bf16.mxu1 %v3537_v17 }
 0x294   :  { %3056 = vmatpush3.bf16.msra.mxu1 %v3538_v4 }
 0x295   :  { %3057 = vmatprep.subr.bf16.mxu1 %v3539_v13 }
 0x298   :  { %3058 = vmatpush3.bf16.msra.mxu1 %v3540_v18 }
 0x299   :  { %3059 = vmatprep.subr.bf16.mxu1 %v3541_v19 }
 0x29c   :  { %3060 = vmatpush3.bf16.msra.mxu1 %v3542_v20 }
 0x29d   :  { %3061 = vmatprep.subr.bf16.mxu1 %v3543_v23 }
 0x2a0   :  { %3062 = vmatpush3.bf16.msra.mxu1 %v3544_v24 }
 0x2c3   :  { %v2203_v61 = vpop.f32.mrf.mxu0 }
 0x2c4   :  { %v2204_v29 = vadd.f32 %v2203_v61, %v1512_v27 }
 0x2c5   :  { %v2205_v21 = vpop.f32.mrf.mxu0 }
 0x2c6   :  { %v2206_v32 = vadd.f32 %v2205_v21, %v1516_v28 }
 0x2c7   :  { %v2207_v22 = vpop.f32.mrf.mxu0 }
 0x2c9   :  { %v2208_v25 = vpop.f32.mrf.mxu0 }
 0x303   :  { %v2244_v31 = vpop.f32.mrf.mxu1  ;;  %v2285_v30 = vpop.f32.mrf.mxu0 }
 0x304   :  { %v2245_v33 = vadd.f32 %v2244_v31, %v2204_v29  ;;  %v2286_v49 = vadd.f32 %v2285_v30, %v1520_v38 }
 0x305   :  { %v2246_v34 = vpop.f32.mrf.mxu1  ;;  %v2287_v35 = vpop.f32.mrf.mxu0 }
 0x306   :  { %v2247_v36 = vadd.f32 %v2246_v34, %v2206_v32  ;;  %v2333_v37 = vmax.f32 %v2245_v33, 0.0  ;;  %v2288_v51 = vadd.f32 %v2287_v35, %v1524_v41 }
 0x307   :  { %v2248_v40 = vpop.f32.mrf.mxu1  ;;  %v2289_v43 = vpop.f32.mrf.mxu0 }
 0x308   :  { %v2334_v44 = vmax.f32 %v2247_v36, 0.0  ;;  %v2337_v48 = vpack.c.bf16 %v2333_v37, %v2333_v37 }
 0x309   :  { %v2249_v45 = vpop.f32.mrf.mxu1  ;;  %v2290_v46 = vpop.f32.mrf.mxu0 }
 0x30a   :  { %v2338_v47 = vpack.c.bf16 %v2334_v44, %v2334_v44 }
 0x30c   :  { %2636 = vmatprep.mubr.bf16.mxu0 %v2338_v47 }
 0x30d   :  { %2637 = vmatmul.mubr.bf16.vlgmr.msra.gmra.mxu0 %v2337_v48 }
 0x343   :  { %v2326_v50 = vpop.f32.mrf.mxu1 }
 0x344   :  { %v2327_v52 = vadd.f32 %v2326_v50, %v2286_v49 }
 0x345   :  { %v2328_v53 = vpop.f32.mrf.mxu1 }
 0x346   :  { %v2329_v54 = vadd.f32 %v2328_v53, %v2288_v51  ;;  %v2335_v55 = vmax.f32 %v2327_v52, 0.0 }
 0x347   :  { %v2330_v56 = vpop.f32.mrf.mxu1 }
 0x348   :  { %v2336_v57 = vmax.f32 %v2329_v54, 0.0  ;;  %v2339_v60 = vpack.c.bf16 %v2335_v55, %v2335_v55 }
 0x349   :  { %v2331_v58 = vpop.f32.mrf.mxu1 }
 0x34a   :  { %v2340_v59 = vpack.c.bf16 %v2336_v57, %v2336_v57 }
 0x34c   :  { %2676 = vmatprep.mubr.bf16.mxu1 %v2340_v59 }
 0x34d   :  { %2677 = vmatmul.mubr.bf16.vlgmr.msra.gmra.mxu1 %v2339_v60 }
 0x3cd   :  { %v3041_v62 = vpop.f32.mrf.mxu0 }
 0x3cf   :  { %v3042_v63 = vpop.f32.mrf.mxu0 }
 0x3d0   :  { %v3043_v1 = vadd.f32 %v3042_v63, %v3041_v62 }
 0x3d1   :  { %v3044_v0 = vpop.f32.mrf.mxu0 }
 0x3d2   :  { %v2639_v5 = vadd.f32 %v3043_v1, %v2992_v42 }
 0x3d3   :  { %v3045_v39 = vpop.f32.mrf.mxu0 }
 0x40d   :  { %v3063_v2 = vpop.f32.mrf.mxu1 }
 0x40f   :  { %v3064_v3 = vpop.f32.mrf.mxu1 }
 0x410   :  { %v3065_v6 = vadd.f32 %v3064_v3, %v3063_v2 }
 0x411   :  { %v3066_v7 = vpop.f32.mrf.mxu1 }
 0x412   :  { %v2679_v8 = vadd.f32 %v3065_v6, %v2639_v5 }
 0x413   :  { %v3067_v9 = vpop.f32.mrf.mxu1 }
 0x414   :  { %3545 = vtanh.f32 %v2679_v8 }
 0x421   :  { %v3546_v10 = vpop.eup %3545 }
 0x422   :  { %2685 = vst [vmem:[#allocation13] sm:$0xff] %v3546_v10 }
 0x423   :  { %3678 = shalt.err (!%p3675_p6)
}
 0x424   :  { %2695 = dma.vmem_to_hbm [thread:$0]  %s2693_s21, 128, %s3849_s9, [#allocation4]  }
 0x425   :  { %3695 = dma.done.wait [#allocation4], 128  }
 0x426   :  { %3696 = vsyncadd [#allocation4], 4294967168 }
 0x427   :  { %2699 = vsyncpa [#allocation3], 1 }
 0x428   :  { %2700 = vsyncpa [#allocation6], 1 }
 0x429   :  { %2701 = vsyncpa [#allocation9], 1 }
 0x42a   :  { %2702 = vsyncpa [#allocation12], 1 }
 0x42b   :  { %2703 = vsyncpa [#allocation4], 1 }

// kernel: tpu_custom_call.1
= control target key start
LH: loop header
LB: loop body
LE: loop exit
PB: predicated region body
PF: predicated region fallthrough
CT: control target
= control target key end

     0   :  { %14 = vsyncpa [#allocation3], 0  ;;  %s3840_s0 = inlined_call_operand.hbm [shape: bf16[8,128], index: 0, kind: input, shape index: {}]   ;;  %s3841_s1 = inlined_call_operand.hbm [shape: bf16[128,512], index: 1, kind: input, shape index: {}]   ;;  %s3842_s2 = inlined_call_operand.hbm [shape: f32[1,512], index: 2, kind: input, shape index: {}]   ;;  %s3843_s3 = inlined_call_operand.hbm [shape: bf16[512,512], index: 3, kind: input, shape index: {}]   ;;  %s3844_s4 = inlined_call_operand.vmem [shape: f32[1,512], index: 4, kind: input, shape index: {}]   ;;  %s3845_s5 = inlined_call_operand.hbm [shape: bf16[512,512], index: 5, kind: input, shape index: {}]   ;;  %s3846_s6 = inlined_call_operand.vmem [shape: f32[1,512], index: 6, kind: input, shape index: {}]   ;;  %s3847_s7 = inlined_call_operand.hbm [shape: bf16[512,128], index: 7, kind: input, shape index: {}]   ;;  %s3848_s8 = inlined_call_operand.vmem [shape: f32[1,128], index: 8, kind: input, shape index: {}]   ;;  %s3849_s9 = inlined_call_operand.hbm [shape: f32[8,128], index: 9, kind: output, shape index: {}]  }
   0x1   :  { %15 = vsyncpa [#allocation6], 0 }
   0x2   :  { %16 = vsyncpa [#allocation9], 0 }
   0x3   :  { %17 = vsyncpa [#allocation12], 0 }
   0x4   :  { %18 = vsyncpa [#allocation4], 0  ;;  %s3697_s30 = smov [#allocation5]  }
   0x5   :  { %s34_s10 = sshll.u32 %s3697_s30, 4  ;;  %s35_s10 = int_to_ptr.vmem [resolvable:$true] %s34_s10 }
   0x6   :  { %s3555_s11 = scalar_lea.vmem %s35_s10, 4096  ;;  %p3560_p1 = scmp.lt.s32.totalorder %s35_s10, %s35_s10 }
   0x7   :  { %p3556_p0 = scmp.ne.s32.totalorder %s35_s10, %s3555_s11  ;;  %p3561_p2 = scmp.lt.s32.totalorder %s3555_s11, %s3555_s11 }
   0x9   :  { %p3562_p3 = por %p3561_p2, %p3560_p1 }
   0xb   :  { %p3563_p4 = pnand %p3562_p3, %p3556_p0 }
   0xd   :  { %3566 = shalt.err (!%p3563_p4)
}
   0xe   :  { %s3698_s12 = smov 256   ;;  %s3699_s13 = smov 16  }
   0xf   :  { %40 = dma.hbm_to_vmem [thread:$0]  %s3841_s1, 4096, %s35_s10, [#allocation6], %s3698_s12, %s3698_s12, %s3699_s13  }
  0x10   :  { %s3700_s16 = smov [#allocation8]   ;;  %s3701_s18 = smov [#allocation2]  }
  0x11   :  { %s56_s17 = sshll.u32 %s3700_s16, 4  ;;  %s25_s19 = sshll.u32 %s3701_s18, 4  ;;  %s57_s17 = int_to_ptr.vmem [resolvable:$true] %s56_s17  ;;  %s26_s19 = int_to_ptr.vmem [resolvable:$true] %s25_s19 }
  0x12   :  { %s3575_s20 = scalar_lea.vmem %s57_s17, 16384  ;;  %p3580_p6 = scmp.lt.s32.totalorder %s57_s17, %s57_s17 }
  0x13   :  { %p3576_p5 = scmp.ne.s32.totalorder %s57_s17, %s3575_s20  ;;  %p3581_p7 = scmp.lt.s32.totalorder %s3575_s20, %s3575_s20 }
  0x15   :  { %p3582_p8 = por %p3581_p7, %p3580_p6 }
  0x17   :  { %p3583_p9 = pnand %p3582_p8, %p3576_p5 }
  0x19   :  { %3586 = shalt.err (!%p3583_p9)
}
  0x1a   :  { %62 = dma.hbm_to_vmem [thread:$0]  %s3843_s3, 16384, %s57_s17, [#allocation9], %s3698_s12, %s3698_s12, %s3699_s13  }
  0x1b   :  { %s3595_s1 = scalar_lea.vmem %s26_s19, 64  ;;  %p3600_p11 = scmp.lt.s32.totalorder %s26_s19, %s26_s19 }
  0x1c   :  { %p3596_p10 = scmp.ne.s32.totalorder %s26_s19, %s3595_s1  ;;  %p3601_p12 = scmp.lt.s32.totalorder %s3595_s1, %s3595_s1 }
  0x1e   :  { %p3602_p13 = por %p3601_p12, %p3600_p11 }
  0x20   :  { %p3603_p0 = pnand %p3602_p13, %p3596_p10 }
  0x22   :  { %3606 = shalt.err (!%p3603_p0)
}
  0x23   :  { %28 = dma.hbm_to_vmem [thread:$0]  %s3840_s0, 64, %s26_s19, [#allocation3]  }
  0x24   :  { %s3702_s25 = smov [#allocation7]   ;;  %s3703_s27 = smov [#allocation10]  }
  0x25   :  { %s47_s26 = sshll.u32 %s3702_s25, 4  ;;  %s70_s28 = sshll.u32 %s3703_s27, 4  ;;  %s48_s26 = int_to_ptr.vmem [resolvable:$true] %s47_s26  ;;  %s71_s28 = int_to_ptr.vmem [resolvable:$true] %s70_s28 }
  0x26   :  { %s3615_s29 = scalar_lea.vmem %s48_s26, 64  ;;  %p3620_p2 = scmp.lt.s32.totalorder %s48_s26, %s48_s26 }
  0x27   :  { %p3616_p1 = scmp.ne.s32.totalorder %s48_s26, %s3615_s29  ;;  %p3621_p3 = scmp.lt.s32.totalorder %s3615_s29, %s3615_s29 }
  0x29   :  { %p3622_p4 = por %p3621_p3, %p3620_p2 }
  0x2b   :  { %p3623_p5 = pnand %p3622_p4, %p3616_p1 }
  0x2d   :  { %3626 = shalt.err (!%p3623_p5)
}
  0x2e   :  { %50 = dma.hbm_to_vmem [thread:$0]  %s3842_s2, 64, %s48_s26, [#allocation6]  }
  0x2f   :  { %s3635_s10 = scalar_lea.vmem %s71_s28, 16384  ;;  %p3640_p7 = scmp.lt.s32.totalorder %s71_s28, %s71_s28 }
  0x30   :  { %p3636_p6 = scmp.ne.s32.totalorder %s71_s28, %s3635_s10  ;;  %p3641_p8 = scmp.lt.s32.totalorder %s3635_s10, %s3635_s10 }
  0x32   :  { %p3642_p9 = por %p3641_p8, %p3640_p7 }
  0x34   :  { %p3643_p10 = pnand %p3642_p9, %p3636_p6 }
  0x36   :  { %3646 = shalt.err (!%p3643_p10)
}
  0x37   :  { %76 = dma.hbm_to_vmem [thread:$0]  %s3845_s5, 16384, %s71_s28, [#allocation9], %s3698_s12, %s3698_s12, %s3699_s13  }
  0x38   :  { %s3704_s14 = smov [#allocation11]  }
  0x39   :  { %s84_s15 = sshll.u32 %s3704_s14, 4  ;;  %s85_s15 = int_to_ptr.vmem [resolvable:$true] %s84_s15 }
  0x3a   :  { %s3655_s16 = scalar_lea.vmem %s85_s15, 4096  ;;  %p3660_p12 = scmp.lt.s32.totalorder %s85_s15, %s85_s15 }
  0x3b   :  { %p3656_p11 = scmp.ne.s32.totalorder %s85_s15, %s3655_s16  ;;  %p3661_p13 = scmp.lt.s32.totalorder %s3655_s16, %s3655_s16 }
  0x3d   :  { %p3662_p0 = por %p3661_p13, %p3660_p12 }
  0x3f   :  { %p3663_p1 = pnand %p3662_p0, %p3656_p11 }
  0x41   :  { %3666 = shalt.err (!%p3663_p1)
}
  0x42   :  { %s3705_s2 = smov 64   ;;  %s3706_s17 = smov 4  }
  0x43   :  { %90 = dma.hbm_to_vmem [thread:$0]  %s3847_s7, 4096, %s85_s15, [#allocation12], %s3705_s2, %s3705_s2, %s3706_s17  }
  0x44   :  { %3687 = dma.done.wait [#allocation3], 64  }
  0x45   :  { %3688 = vsyncadd [#allocation3], 4294967232 }
  0x46   :  { %3689 = dma.done.wait [#allocation6], 4160  }
  0x47   :  { %3690 = vsyncadd [#allocation6], 4294963136 }
  0x48   :  { %3691 = dma.done.wait [#allocation9], 32768  }
  0x49   :  { %3692 = vsyncadd [#allocation9], 4294934528 }
  0x4a   :  { %3693 = dma.done.wait [#allocation12], 4096  }
  0x4b   :  { %3694 = vsyncadd [#allocation12], 4294963200  ;;  %v3707_v0 = vmov 0   ;;  %v3081_v1 = vld [vmem:[#allocation5 + $0xe4] ss:$16 sps:$4 sm:$0xff]   ;;  %s3708_s20 = smov [#allocation13]  }
  0x4c   :  { %359 = vmatprep.mubr.bf16.mxu0 %v3707_v0  ;;  %400 = vmatprep.mubr.bf16.mxu1 %v3707_v0  ;;  %v3083_v2 = vld [vmem:[#allocation5 + $0xec] ss:$16 sps:$4 sm:$0xff]   ;;  %v3085_v3 = vld [vmem:[#allocation5 + $0xe0] ss:$16 sps:$4 sm:$0xff]   ;;  %v3086_v4 = vld [vmem:[#allocation5 + $0xe8] ss:$16 sps:$4 sm:$0xff]  }
  0x4d   :  { %327 = vmatprep.subr.bf16.mxu0 %v3081_v1  ;;  %368 = vmatprep.subr.bf16.mxu1 %v3083_v2  ;;  %v3087_v5 = vld [vmem:[#allocation5 + $0xc4] ss:$16 sps:$4 sm:$0xff]   ;;  %v3089_v6 = vld [vmem:[#allocation5 + $0xcc] ss:$16 sps:$4 sm:$0xff]   ;;  %v3091_v7 = vld [vmem:[#allocation5 + $0xc0] ss:$16 sps:$4 sm:$0xff]  }
  0x4e   :  { %328 = vmatpush1.bf16.msra.mxu0 %v3085_v3  ;;  %369 = vmatpush1.bf16.msra.mxu1 %v3086_v4  ;;  %v3092_v8 = vld [vmem:[#allocation5 + $0xc8] ss:$16 sps:$4 sm:$0xff]   ;;  %v3093_v9 = vld [vmem:[#allocation5 + $0xa4] ss:$16 sps:$4 sm:$0xff]   ;;  %v3095_v10 = vld [vmem:[#allocation5 + $0xac] ss:$16 sps:$4 sm:$0xff]  }
  0x4f   :  { %329 = vmatprep.subr.bf16.mxu0 %v3087_v5  ;;  %370 = vmatprep.subr.bf16.mxu1 %v3089_v6  ;;  %v3097_v11 = vld [vmem:[#allocation5 + $0xa0] ss:$16 sps:$4 sm:$0xff]   ;;  %v3098_v12 = vld [vmem:[#allocation5 + $0xa8] ss:$16 sps:$4 sm:$0xff]   ;;  %v3099_v13 = vld [vmem:[#allocation5 + $0x84] ss:$16 sps:$4 sm:$0xff]  }
  0x50   :  { %v3101_v14 = vld [vmem:[#allocation5 + $0x8c] ss:$16 sps:$4 sm:$0xff]   ;;  %v3103_v15 = vld [vmem:[#allocation5 + $0x80] ss:$16 sps:$4 sm:$0xff]   ;;  %v3104_v16 = vld [vmem:[#allocation5 + $0x88] ss:$16 sps:$4 sm:$0xff]  }
  0x51   :  { %v3105_v17 = vld [vmem:[#allocation5 + $0x64] ss:$16 sps:$4 sm:$0xff]   ;;  %v3107_v18 = vld [vmem:[#allocation5 + $0x6c] ss:$16 sps:$4 sm:$0xff]   ;;  %v3109_v19 = vld [vmem:[#allocation5 + $0x60] ss:$16 sps:$4 sm:$0xff]  }
  0x52   :  { %330 = vmatpush1.bf16.msra.mxu0 %v3091_v7  ;;  %371 = vmatpush1.bf16.msra.mxu1 %v3092_v8  ;;  %v3110_v20 = vld [vmem:[#allocation5 + $0x68] ss:$16 sps:$4 sm:$0xff]   ;;  %v3111_v21 = vld [vmem:[#allocation5 + $0x44] ss:$16 sps:$4 sm:$0xff]   ;;  %v3113_v22 = vld [vmem:[#allocation5 + $0x4c] ss:$16 sps:$4 sm:$0xff]  }
  0x53   :  { %331 = vmatprep.subr.bf16.mxu0 %v3093_v9  ;;  %372 = vmatprep.subr.bf16.mxu1 %v3095_v10  ;;  %v3115_v23 = vld [vmem:[#allocation5 + $0x40] ss:$16 sps:$4 sm:$0xff]   ;;  %v3116_v24 = vld [vmem:[#allocation5 + $0x48] ss:$16 sps:$4 sm:$0xff]   ;;  %v3117_v25 = vld [vmem:[#allocation5 + $0x24] ss:$16 sps:$4 sm:$0xff]  }
  0x54   :  { %v3119_v26 = vld [vmem:[#allocation5 + $0x2c] ss:$16 sps:$4 sm:$0xff]   ;;  %v3121_v27 = vld [vmem:[#allocation5 + $0x20] ss:$16 sps:$4 sm:$0xff]   ;;  %v3122_v28 = vld [vmem:[#allocation5 + $0x28] ss:$16 sps:$4 sm:$0xff]  }
  0x55   :  { %v3123_v29 = vld [vmem:[#allocation5 + $0x4] ss:$16 sps:$4 sm:$0xff]   ;;  %v3125_v30 = vld [vmem:[#allocation5 + $0xc] ss:$16 sps:$4 sm:$0xff]   ;;  %v3127_v31 = vld [vmem:[#allocation5] ss:$16 sps:$4 sm:$0xff]  }
  0x56   :  { %332 = vmatpush1.bf16.msra.mxu0 %v3097_v11  ;;  %373 = vmatpush1.bf16.msra.mxu1 %v3098_v12  ;;  %v3128_v32 = vld [vmem:[#allocation5 + $0x8] ss:$16 sps:$4 sm:$0xff]   ;;  %v112_v35 = vld [vmem:[#allocation2] sm:$0xf]  ;;  %v3129_v36 = vld [vmem:[#allocation8 + $0xe0] ss:$16 sps:$4 sm:$0xff]  }
  0x57   :  { %333 = vmatprep.subr.bf16.mxu0 %v3099_v13  ;;  %374 = vmatprep.subr.bf16.mxu1 %v3101_v14  ;;  %v3131_v33 = vld [vmem:[#allocation8 + $0xe4] ss:$16 sps:$4 sm:$0xff]   ;;  %v3132_v37 = vld [vmem:[#allocation8 + $0x2e0] ss:$16 sps:$4 sm:$0xff]   ;;  %s2692_s21 = sshll.u32 %s3708_s20, 4  ;;  %s2693_s21 = int_to_ptr.vmem [resolvable:$true] %s2692_s21 }
  0x58   :  { %v3134_v34 = vld [vmem:[#allocation8 + $0x2e4] ss:$16 sps:$4 sm:$0xff]   ;;  %v3135_v40 = vld [vmem:[#allocation8 + $0xc0] ss:$16 sps:$4 sm:$0xff]   ;;  %s3667_s22 = scalar_lea.vmem %s2693_s21, 128  ;;  %p3672_p3 = scmp.lt.s32.totalorder %s2693_s21, %s2693_s21 }
  0x59   :  { %v3137_v38 = vld [vmem:[#allocation8 + $0xc4] ss:$16 sps:$4 sm:$0xff]   ;;  %v3138_v41 = vld [vmem:[#allocation8 + $0x2c0] ss:$16 sps:$4 sm:$0xff]   ;;  %p3668_p2 = scmp.ne.s32.totalorder %s2693_s21, %s3667_s22  ;;  %p3673_p4 = scmp.lt.s32.totalorder %s3667_s22, %s3667_s22 }
  0x5a   :  { %334 = vmatpush1.bf16.msra.mxu0 %v3103_v15  ;;  %375 = vmatpush1.bf16.msra.mxu1 %v3104_v16  ;;  %v3140_v39 = vld [vmem:[#allocation8 + $0x2c4] ss:$16 sps:$4 sm:$0xff]   ;;  %v3141_v44 = vld [vmem:[#allocation8 + $0xa0] ss:$16 sps:$4 sm:$0xff]  }
  0x5b   :  { %335 = vmatprep.subr.bf16.mxu0 %v3105_v17  ;;  %376 = vmatprep.subr.bf16.mxu1 %v3107_v18  ;;  %v3143_v42 = vld [vmem:[#allocation8 + $0xa4] ss:$16 sps:$4 sm:$0xff]   ;;  %v3144_v45 = vld [vmem:[#allocation8 + $0x2a0] ss:$16 sps:$4 sm:$0xff]   ;;  %p3674_p5 = por %p3673_p4, %p3672_p3 }
  0x5c   :  { %v3146_v43 = vld [vmem:[#allocation8 + $0x2a4] ss:$16 sps:$4 sm:$0xff]   ;;  %v3147_v48 = vld [vmem:[#allocation8 + $0x80] ss:$16 sps:$4 sm:$0xff]  }
  0x5d   :  { %v3149_v46 = vld [vmem:[#allocation8 + $0x84] ss:$16 sps:$4 sm:$0xff]   ;;  %v3150_v49 = vld [vmem:[#allocation8 + $0x280] ss:$16 sps:$4 sm:$0xff]   ;;  %p3675_p6 = pnand %p3674_p5, %p3668_p2 }
  0x5e   :  { %336 = vmatpush1.bf16.msra.mxu0 %v3109_v19  ;;  %377 = vmatpush1.bf16.msra.mxu1 %v3110_v20  ;;  %v3152_v47 = vld [vmem:[#allocation8 + $0x284] ss:$16 sps:$4 sm:$0xff]   ;;  %v3153_v52 = vld [vmem:[#allocation8 + $0x60] ss:$16 sps:$4 sm:$0xff]  }
  0x5f   :  { %337 = vmatprep.subr.bf16.mxu0 %v3111_v21  ;;  %378 = vmatprep.subr.bf16.mxu1 %v3113_v22  ;;  %v3155_v50 = vld [vmem:[#allocation8 + $0x64] ss:$16 sps:$4 sm:$0xff]   ;;  %v3156_v53 = vld [vmem:[#allocation8 + $0x260] ss:$16 sps:$4 sm:$0xff]  }
  0x60   :  { %v3158_v51 = vld [vmem:[#allocation8 + $0x264] ss:$16 sps:$4 sm:$0xff]   ;;  %v3159_v56 = vld [vmem:[#allocation8 + $0x40] ss:$16 sps:$4 sm:$0xff]  }
  0x61   :  { %v3161_v54 = vld [vmem:[#allocation8 + $0x44] ss:$16 sps:$4 sm:$0xff]   ;;  %v3162_v57 = vld [vmem:[#allocation8 + $0x240] ss:$16 sps:$4 sm:$0xff]  }
  0x62   :  { %338 = vmatpush1.bf16.msra.mxu0 %v3115_v23  ;;  %379 = vmatpush1.bf16.msra.mxu1 %v3116_v24  ;;  %v3164_v55 = vld [vmem:[#allocation8 + $0x244] ss:$16 sps:$4 sm:$0xff]   ;;  %v3165_v60 = vld [vmem:[#allocation8 + $0x20] ss:$16 sps:$4 sm:$0xff]  }
  0x63   :  { %339 = vmatprep.subr.bf16.mxu0 %v3117_v25  ;;  %380 = vmatprep.subr.bf16.mxu1 %v3119_v26  ;;  %v3167_v58 = vld [vmem:[#allocation8 + $0x24] ss:$16 sps:$4 sm:$0xff]   ;;  %v3168_v61 = vld [vmem:[#allocation8 + $0x220] ss:$16 sps:$4 sm:$0xff]  }
  0x64   :  { %v3170_v59 = vld [vmem:[#allocation8 + $0x224] ss:$16 sps:$4 sm:$0xff]   ;;  %v3171_v0 = vld [vmem:[#allocation8] ss:$16 sps:$4 sm:$0xff]  }
  0x65   :  { %v3173_v62 = vld [vmem:[#allocation8 + $0x4] ss:$16 sps:$4 sm:$0xff]   ;;  %v3174_v1 = vld [vmem:[#allocation8 + $0x200] ss:$16 sps:$4 sm:$0xff]  }
  0x66   :  { %340 = vmatpush1.bf16.msra.mxu0 %v3121_v27  ;;  %381 = vmatpush1.bf16.msra.mxu1 %v3122_v28  ;;  %v3176_v63 = vld [vmem:[#allocation8 + $0x204] ss:$16 sps:$4 sm:$0xff]   ;;  %v3177_v4 = vld [vmem:[#allocation8 + $0x1e0] ss:$16 sps:$4 sm:$0xff]  }
  0x67   :  { %341 = vmatprep.subr.bf16.mxu0 %v3123_v29  ;;  %382 = vmatprep.subr.bf16.mxu1 %v3125_v30  ;;  %v3179_v2 = vld [vmem:[#allocation8 + $0x1e4] ss:$16 sps:$4 sm:$0xff]   ;;  %v3180_v5 = vld [vmem:[#allocation8 + $0x3e0] ss:$16 sps:$4 sm:$0xff]  }
  0x68   :  { %v3182_v3 = vld [vmem:[#allocation8 + $0x3e4] ss:$16 sps:$4 sm:$0xff]   ;;  %v3183_v8 = vld [vmem:[#allocation8 + $0x1c0] ss:$16 sps:$4 sm:$0xff]  }
  0x69   :  { %v3185_v6 = vld [vmem:[#allocation8 + $0x1c4] ss:$16 sps:$4 sm:$0xff]   ;;  %v3186_v9 = vld [vmem:[#allocation8 + $0x3c0] ss:$16 sps:$4 sm:$0xff]  }
  0x6a   :  { %342 = vmatpush1.bf16.msra.mxu0 %v3127_v31  ;;  %383 = vmatpush1.bf16.msra.mxu1 %v3128_v32  ;;  %v3188_v7 = vld [vmem:[#allocation8 + $0x3c4] ss:$16 sps:$4 sm:$0xff]   ;;  %v3189_v12 = vld [vmem:[#allocation8 + $0x1a0] ss:$16 sps:$4 sm:$0xff]  }
  0x6b   :  { %1207 = vmatprep.subr.bf16.mxu0 %v3131_v33  ;;  %1248 = vmatprep.subr.bf16.mxu1 %v3134_v34  ;;  %v3191_v10 = vld [vmem:[#allocation8 + $0x1a4] ss:$16 sps:$4 sm:$0xff]   ;;  %v3192_v13 = vld [vmem:[#allocation8 + $0x3a0] ss:$16 sps:$4 sm:$0xff]   ;;  %v3227_v34 = vld [vmem:[#allocation8 + $0xec] ss:$16 sps:$4 sm:$0xff]  }
  0x6c   :  { %v3194_v11 = vld [vmem:[#allocation8 + $0x3a4] ss:$16 sps:$4 sm:$0xff]   ;;  %v3195_v16 = vld [vmem:[#allocation8 + $0x180] ss:$16 sps:$4 sm:$0xff]  }
  0x6d   :  { %360 = vmatmul.mubr.bf16.vlgmr.msra.gmra.mxu0 %v112_v35  ;;  %401 = vmatmul.mubr.bf16.vlgmr.msra.gmra.mxu1 %v112_v35  ;;  %v3197_v14 = vld [vmem:[#allocation8 + $0x184] ss:$16 sps:$4 sm:$0xff]   ;;  %v3198_v17 = vld [vmem:[#allocation8 + $0x380] ss:$16 sps:$4 sm:$0xff]   ;;  %v3230_v35 = vld [vmem:[#allocation8 + $0x2ec] ss:$16 sps:$4 sm:$0xff]  }
  0x6e   :  { %1208 = vmatpush1.bf16.msra.mxu0 %v3129_v36  ;;  %1249 = vmatpush1.bf16.msra.mxu1 %v3132_v37  ;;  %v3200_v15 = vld [vmem:[#allocation8 + $0x384] ss:$16 sps:$4 sm:$0xff]   ;;  %v3201_v20 = vld [vmem:[#allocation8 + $0x160] ss:$16 sps:$4 sm:$0xff]   ;;  %v147_v36 = vlaneseq }
  0x6f   :  { %1209 = vmatprep.subr.bf16.mxu0 %v3137_v38  ;;  %1250 = vmatprep.subr.bf16.mxu1 %v3140_v39  ;;  %v3203_v18 = vld [vmem:[#allocation8 + $0x164] ss:$16 sps:$4 sm:$0xff]   ;;  %v3204_v21 = vld [vmem:[#allocation8 + $0x360] ss:$16 sps:$4 sm:$0xff]  }
  0x70   :  { %v3206_v19 = vld [vmem:[#allocation8 + $0x364] ss:$16 sps:$4 sm:$0xff]   ;;  %v3207_v24 = vld [vmem:[#allocation8 + $0x140] ss:$16 sps:$4 sm:$0xff]   ;;  %v148_v37 = vshrl.u32 %v147_v36, 7 }
  0x71   :  { %v3209_v22 = vld [vmem:[#allocation8 + $0x144] ss:$16 sps:$4 sm:$0xff]   ;;  %v3210_v25 = vld [vmem:[#allocation8 + $0x340] ss:$16 sps:$4 sm:$0xff]   ;;  %v3276_v36 = vld [vmem:[#allocation8 + $0x3e8] ss:$16 sps:$4 sm:$0xff]  }
  0x72   :  { %1210 = vmatpush1.bf16.msra.mxu0 %v3135_v40  ;;  %1251 = vmatpush1.bf16.msra.mxu1 %v3138_v41  ;;  %v3212_v23 = vld [vmem:[#allocation8 + $0x344] ss:$16 sps:$4 sm:$0xff]   ;;  %v3213_v28 = vld [vmem:[#allocation8 + $0x120] ss:$16 sps:$4 sm:$0xff]   ;;  %v3786_v38 = vsub.s32 0, %v148_v37  ;;  %v3788_v39 = vsub.s32 2, %v148_v37 }
  0x73   :  { %1211 = vmatprep.subr.bf16.mxu0 %v3143_v42  ;;  %1252 = vmatprep.subr.bf16.mxu1 %v3146_v43  ;;  %v3215_v26 = vld [vmem:[#allocation8 + $0x124] ss:$16 sps:$4 sm:$0xff]   ;;  %v3216_v29 = vld [vmem:[#allocation8 + $0x320] ss:$16 sps:$4 sm:$0xff]   ;;  %v145_v40 = vld [vmem:[#allocation7] sm:$0xf] }
  0x74   :  { %v3218_v27 = vld [vmem:[#allocation8 + $0x324] ss:$16 sps:$4 sm:$0xff]   ;;  %v3219_v32 = vld [vmem:[#allocation8 + $0x100] ss:$16 sps:$4 sm:$0xff]   ;;  %v3790_v41 = vsub.s32 1, %v148_v37  ;;  %v3792_v42 = vsub.s32 3, %v148_v37  ;;  %v150_v43 = vrot.slane %v145_v40, %v3786_v38 }
  0x75   :  { %v3221_v30 = vld [vmem:[#allocation8 + $0x104] ss:$16 sps:$4 sm:$0xff]   ;;  %v3222_v33 = vld [vmem:[#allocation8 + $0x300] ss:$16 sps:$4 sm:$0xff]   ;;  %v3281_v37 = vld [vmem:[#allocation8 + $0x1cc] ss:$16 sps:$4 sm:$0xff]  }
  0x76   :  { %1212 = vmatpush1.bf16.msra.mxu0 %v3141_v44  ;;  %1253 = vmatpush1.bf16.msra.mxu1 %v3144_v45  ;;  %v3224_v31 = vld [vmem:[#allocation8 + $0x304] ss:$16 sps:$4 sm:$0xff]   ;;  %v158_v44 = vrot.slane %v145_v40, %v3788_v39  ;;  %v154_v45 = vrot.slane %v145_v40, %v3790_v41 }
  0x77   :  { %1213 = vmatprep.subr.bf16.mxu0 %v3149_v46  ;;  %1254 = vmatprep.subr.bf16.mxu1 %v3152_v47  ;;  %v162_v46 = vrot.slane %v145_v40, %v3792_v42  ;;  %v3284_v40 = vld [vmem:[#allocation8 + $0x3cc] ss:$16 sps:$4 sm:$0xff]  }
  0x7a   :  { %1214 = vmatpush1.bf16.msra.mxu0 %v3147_v48  ;;  %1255 = vmatpush1.bf16.msra.mxu1 %v3150_v49 }
  0x7b   :  { %1215 = vmatprep.subr.bf16.mxu0 %v3155_v50  ;;  %1256 = vmatprep.subr.bf16.mxu1 %v3158_v51 }
  0x7e   :  { %1216 = vmatpush1.bf16.msra.mxu0 %v3153_v52  ;;  %1257 = vmatpush1.bf16.msra.mxu1 %v3156_v53 }
  0x7f   :  { %1217 = vmatprep.subr.bf16.mxu0 %v3161_v54  ;;  %1258 = vmatprep.subr.bf16.mxu1 %v3164_v55 }
  0x82   :  { %1218 = vmatpush1.bf16.msra.mxu0 %v3159_v56  ;;  %1259 = vmatpush1.bf16.msra.mxu1 %v3162_v57 }
  0x83   :  { %1219 = vmatprep.subr.bf16.mxu0 %v3167_v58  ;;  %1260 = vmatprep.subr.bf16.mxu1 %v3170_v59 }
  0x86   :  { %1220 = vmatpush1.bf16.msra.mxu0 %v3165_v60  ;;  %1261 = vmatpush1.bf16.msra.mxu1 %v3168_v61 }
  0x87   :  { %1221 = vmatprep.subr.bf16.mxu0 %v3173_v62  ;;  %1262 = vmatprep.subr.bf16.mxu1 %v3176_v63 }
  0x8a   :  { %1222 = vmatpush1.bf16.msra.mxu0 %v3171_v0  ;;  %1263 = vmatpush1.bf16.msra.mxu1 %v3174_v1 }
  0x8b   :  { %1223 = vmatprep.subr.bf16.mxu0 %v3179_v2  ;;  %1264 = vmatprep.subr.bf16.mxu1 %v3182_v3  ;;  %v3225_v2 = vld [vmem:[#allocation8 + $0xe8] ss:$16 sps:$4 sm:$0xff]  }
  0x8c   :  { %v3228_v3 = vld [vmem:[#allocation8 + $0x2e8] ss:$16 sps:$4 sm:$0xff]  }
  0x8e   :  { %1224 = vmatpush2.bf16.msra.mxu0 %v3177_v4  ;;  %1265 = vmatpush2.bf16.msra.mxu1 %v3180_v5  ;;  %v3233_v5 = vld [vmem:[#allocation8 + $0xcc] ss:$16 sps:$4 sm:$0xff]  }
  0x8f   :  { %1225 = vmatprep.subr.bf16.mxu0 %v3185_v6  ;;  %1266 = vmatprep.subr.bf16.mxu1 %v3188_v7  ;;  %v3236_v6 = vld [vmem:[#allocation8 + $0x2cc] ss:$16 sps:$4 sm:$0xff]   ;;  %v3231_v7 = vld [vmem:[#allocation8 + $0xc8] ss:$16 sps:$4 sm:$0xff]  }
  0x92   :  { %1226 = vmatpush2.bf16.msra.mxu0 %v3183_v8  ;;  %1267 = vmatpush2.bf16.msra.mxu1 %v3186_v9  ;;  %v3234_v8 = vld [vmem:[#allocation8 + $0x2c8] ss:$16 sps:$4 sm:$0xff]   ;;  %v3239_v9 = vld [vmem:[#allocation8 + $0xac] ss:$16 sps:$4 sm:$0xff]  }
  0x93   :  { %1227 = vmatprep.subr.bf16.mxu0 %v3191_v10  ;;  %1268 = vmatprep.subr.bf16.mxu1 %v3194_v11  ;;  %v3242_v10 = vld [vmem:[#allocation8 + $0x2ac] ss:$16 sps:$4 sm:$0xff]   ;;  %v3237_v11 = vld [vmem:[#allocation8 + $0xa8] ss:$16 sps:$4 sm:$0xff]  }
  0x96   :  { %1228 = vmatpush2.bf16.msra.mxu0 %v3189_v12  ;;  %1269 = vmatpush2.bf16.msra.mxu1 %v3192_v13  ;;  %v3240_v12 = vld [vmem:[#allocation8 + $0x2a8] ss:$16 sps:$4 sm:$0xff]   ;;  %v3245_v13 = vld [vmem:[#allocation8 + $0x8c] ss:$16 sps:$4 sm:$0xff]  }
  0x97   :  { %1229 = vmatprep.subr.bf16.mxu0 %v3197_v14  ;;  %1270 = vmatprep.subr.bf16.mxu1 %v3200_v15  ;;  %v3248_v14 = vld [vmem:[#allocation8 + $0x28c] ss:$16 sps:$4 sm:$0xff]   ;;  %v3243_v15 = vld [vmem:[#allocation8 + $0x88] ss:$16 sps:$4 sm:$0xff]  }
  0x9a   :  { %1230 = vmatpush2.bf16.msra.mxu0 %v3195_v16  ;;  %1271 = vmatpush2.bf16.msra.mxu1 %v3198_v17  ;;  %v3246_v16 = vld [vmem:[#allocation8 + $0x288] ss:$16 sps:$4 sm:$0xff]   ;;  %v3251_v17 = vld [vmem:[#allocation8 + $0x6c] ss:$16 sps:$4 sm:$0xff]  }
  0x9b   :  { %1231 = vmatprep.subr.bf16.mxu0 %v3203_v18  ;;  %1272 = vmatprep.subr.bf16.mxu1 %v3206_v19  ;;  %v3254_v18 = vld [vmem:[#allocation8 + $0x26c] ss:$16 sps:$4 sm:$0xff]   ;;  %v3249_v19 = vld [vmem:[#allocation8 + $0x68] ss:$16 sps:$4 sm:$0xff]  }
  0x9e   :  { %1232 = vmatpush2.bf16.msra.mxu0 %v3201_v20  ;;  %1273 = vmatpush2.bf16.msra.mxu1 %v3204_v21  ;;  %v3252_v20 = vld [vmem:[#allocation8 + $0x268] ss:$16 sps:$4 sm:$0xff]   ;;  %v3257_v21 = vld [vmem:[#allocation8 + $0x4c] ss:$16 sps:$4 sm:$0xff]  }
  0x9f   :  { %1233 = vmatprep.subr.bf16.mxu0 %v3209_v22  ;;  %1274 = vmatprep.subr.bf16.mxu1 %v3212_v23  ;;  %v3260_v22 = vld [vmem:[#allocation8 + $0x24c] ss:$16 sps:$4 sm:$0xff]   ;;  %v3255_v23 = vld [vmem:[#allocation8 + $0x48] ss:$16 sps:$4 sm:$0xff]  }
  0xa2   :  { %1234 = vmatpush2.bf16.msra.mxu0 %v3207_v24  ;;  %1275 = vmatpush2.bf16.msra.mxu1 %v3210_v25  ;;  %v3258_v24 = vld [vmem:[#allocation8 + $0x248] ss:$16 sps:$4 sm:$0xff]   ;;  %v3263_v25 = vld [vmem:[#allocation8 + $0x2c] ss:$16 sps:$4 sm:$0xff]  }
  0xa3   :  { %1235 = vmatprep.subr.bf16.mxu0 %v3215_v26  ;;  %1276 = vmatprep.subr.bf16.mxu1 %v3218_v27  ;;  %v3266_v26 = vld [vmem:[#allocation8 + $0x22c] ss:$16 sps:$4 sm:$0xff]   ;;  %v3261_v27 = vld [vmem:[#allocation8 + $0x28] ss:$16 sps:$4 sm:$0xff]  }
  0xa6   :  { %1236 = vmatpush2.bf16.msra.mxu0 %v3213_v28  ;;  %1277 = vmatpush2.bf16.msra.mxu1 %v3216_v29  ;;  %v3264_v28 = vld [vmem:[#allocation8 + $0x228] ss:$16 sps:$4 sm:$0xff]   ;;  %v3269_v29 = vld [vmem:[#allocation8 + $0xc] ss:$16 sps:$4 sm:$0xff]  }
  0xa7   :  { %1237 = vmatprep.subr.bf16.mxu0 %v3221_v30  ;;  %1278 = vmatprep.subr.bf16.mxu1 %v3224_v31  ;;  %v3272_v30 = vld [vmem:[#allocation8 + $0x20c] ss:$16 sps:$4 sm:$0xff]   ;;  %v3267_v31 = vld [vmem:[#allocation8 + $0x8] ss:$16 sps:$4 sm:$0xff]  }
  0xaa   :  { %1238 = vmatpush2.bf16.msra.mxu0 %v3219_v32  ;;  %1279 = vmatpush2.bf16.msra.mxu1 %v3222_v33  ;;  %v3270_v32 = vld [vmem:[#allocation8 + $0x208] ss:$16 sps:$4 sm:$0xff]   ;;  %v3275_v33 = vld [vmem:[#allocation8 + $0x1ec] ss:$16 sps:$4 sm:$0xff]  }
  0xab   :  { %1289 = vmatprep.subr.bf16.mxu0 %v3227_v34  ;;  %1330 = vmatprep.subr.bf16.mxu1 %v3230_v35  ;;  %v3278_v34 = vld [vmem:[#allocation8 + $0x3ec] ss:$16 sps:$4 sm:$0xff]   ;;  %v3273_v35 = vld [vmem:[#allocation8 + $0x1e8] ss:$16 sps:$4 sm:$0xff]  }
 0x12d   :  { %v361_v47 = vpop.f32.mrf.mxu0  ;;  %v402_v48 = vpop.f32.mrf.mxu1 }
 0x12e   :  { %v362_v49 = vadd.f32 %v361_v47, %v150_v43  ;;  %v403_v50 = vadd.f32 %v402_v48, %v158_v44  ;;  %v3279_v43 = vld [vmem:[#allocation8 + $0x1c8] ss:$16 sps:$4 sm:$0xff]  }
 0x12f   :  { %v363_v51 = vpop.f32.mrf.mxu0  ;;  %v404_v52 = vpop.f32.mrf.mxu1  ;;  %v3282_v44 = vld [vmem:[#allocation8 + $0x3c8] ss:$16 sps:$4 sm:$0xff]  }
 0x130   :  { %v411_v53 = vmax.f32 %v403_v50, 0.0  ;;  %v364_v54 = vadd.f32 %v363_v51, %v154_v45  ;;  %v405_v55 = vadd.f32 %v404_v52, %v162_v46  ;;  %v409_v56 = vmax.f32 %v362_v49, 0.0  ;;  %v3287_v45 = vld [vmem:[#allocation8 + $0x1ac] ss:$16 sps:$4 sm:$0xff]   ;;  %v3285_v47 = vld [vmem:[#allocation8 + $0x1a8] ss:$16 sps:$4 sm:$0xff]  }
 0x131   :  { %v365_v57 = vpop.f32.mrf.mxu0  ;;  %v406_v58 = vpop.f32.mrf.mxu1  ;;  %v3290_v46 = vld [vmem:[#allocation8 + $0x3ac] ss:$16 sps:$4 sm:$0xff]   ;;  %v3288_v48 = vld [vmem:[#allocation8 + $0x3a8] ss:$16 sps:$4 sm:$0xff]  }
 0x132   :  { %v410_v59 = vmax.f32 %v364_v54, 0.0  ;;  %v412_v60 = vmax.f32 %v405_v55, 0.0  ;;  %v3798_v61 = vpack.c.bf16 %v411_v53, %v411_v53  ;;  %v3800_v4 = vpack.c.bf16 %v409_v56, %v409_v56  ;;  %v3293_v49 = vld [vmem:[#allocation8 + $0x18c] ss:$16 sps:$4 sm:$0xff]   ;;  %v3291_v51 = vld [vmem:[#allocation8 + $0x188] ss:$16 sps:$4 sm:$0xff]  }
 0x133   :  { %v366_v62 = vpop.f32.mrf.mxu0  ;;  %v407_v63 = vpop.f32.mrf.mxu1  ;;  %v3296_v50 = vld [vmem:[#allocation8 + $0x38c] ss:$16 sps:$4 sm:$0xff]   ;;  %v3294_v52 = vld [vmem:[#allocation8 + $0x388] ss:$16 sps:$4 sm:$0xff]  }
 0x134   :  { %v414_v0 = vpack.c.bf16 %v410_v59, %v410_v59  ;;  %v416_v1 = vpack.c.bf16 %v412_v60, %v412_v60  ;;  %v3299_v53 = vld [vmem:[#allocation8 + $0x16c] ss:$16 sps:$4 sm:$0xff]   ;;  %v3297_v55 = vld [vmem:[#allocation8 + $0x168] ss:$16 sps:$4 sm:$0xff]  }
 0x135   :  { %v3302_v54 = vld [vmem:[#allocation8 + $0x36c] ss:$16 sps:$4 sm:$0xff]   ;;  %v3300_v56 = vld [vmem:[#allocation8 + $0x368] ss:$16 sps:$4 sm:$0xff]  }
 0x136   :  { %1239 = vmatprep.mubr.bf16.mxu0 %v414_v0  ;;  %1280 = vmatprep.mubr.bf16.mxu1 %v416_v1  ;;  %v3305_v57 = vld [vmem:[#allocation8 + $0x14c] ss:$16 sps:$4 sm:$0xff]   ;;  %v3303_v59 = vld [vmem:[#allocation8 + $0x148] ss:$16 sps:$4 sm:$0xff]  }
 0x137   :  { %1240 = vmatmul.mubr.bf16.vlgmr.msra.gmra.mxu0 %v3800_v4  ;;  %1281 = vmatmul.mubr.bf16.vlgmr.msra.gmra.mxu1 %v3798_v61  ;;  %v3308_v58 = vld [vmem:[#allocation8 + $0x34c] ss:$16 sps:$4 sm:$0xff]   ;;  %v3306_v60 = vld [vmem:[#allocation8 + $0x348] ss:$16 sps:$4 sm:$0xff]  }
 0x138   :  { %1290 = vmatpush1.bf16.msra.mxu0 %v3225_v2  ;;  %1331 = vmatpush1.bf16.msra.mxu1 %v3228_v3  ;;  %v3311_v62 = vld [vmem:[#allocation8 + $0x12c] ss:$16 sps:$4 sm:$0xff]  }
 0x139   :  { %1321 = vmatprep.mubr.bf16.mxu0 %v414_v0  ;;  %1362 = vmatprep.mubr.bf16.mxu1 %v416_v1  ;;  %v3314_v63 = vld [vmem:[#allocation8 + $0x32c] ss:$16 sps:$4 sm:$0xff]   ;;  %v3309_v0 = vld [vmem:[#allocation8 + $0x128] ss:$16 sps:$4 sm:$0xff]  }
 0x13a   :  { %1291 = vmatprep.subr.bf16.mxu0 %v3233_v5  ;;  %1332 = vmatprep.subr.bf16.mxu1 %v3236_v6  ;;  %v3312_v1 = vld [vmem:[#allocation8 + $0x328] ss:$16 sps:$4 sm:$0xff]   ;;  %v3317_v2 = vld [vmem:[#allocation8 + $0x10c] ss:$16 sps:$4 sm:$0xff]  }
 0x13b   :  { %v3320_v3 = vld [vmem:[#allocation8 + $0x30c] ss:$16 sps:$4 sm:$0xff]   ;;  %v3315_v5 = vld [vmem:[#allocation8 + $0x108] ss:$16 sps:$4 sm:$0xff]  }
 0x13c   :  { %1292 = vmatpush1.bf16.msra.mxu0 %v3231_v7  ;;  %1333 = vmatpush1.bf16.msra.mxu1 %v3234_v8  ;;  %v3318_v6 = vld [vmem:[#allocation8 + $0x308] ss:$16 sps:$4 sm:$0xff]   ;;  %v3323_v7 = vld [vmem:[#allocation10 + $0xe4] ss:$16 sps:$4 sm:$0xff]   ;;  %v3321_v8 = vld [vmem:[#allocation10 + $0xe0] ss:$16 sps:$4 sm:$0xff]  }
 0x13d   :  { %1293 = vmatprep.subr.bf16.mxu0 %v3239_v9  ;;  %1334 = vmatprep.subr.bf16.mxu1 %v3242_v10  ;;  %v3326_v9 = vld [vmem:[#allocation10 + $0xc4] ss:$16 sps:$4 sm:$0xff]   ;;  %v3324_v10 = vld [vmem:[#allocation10 + $0xc0] ss:$16 sps:$4 sm:$0xff]  }
 0x140   :  { %1294 = vmatpush1.bf16.msra.mxu0 %v3237_v11  ;;  %1335 = vmatpush1.bf16.msra.mxu1 %v3240_v12  ;;  %v3329_v11 = vld [vmem:[#allocation10 + $0xa4] ss:$16 sps:$4 sm:$0xff]   ;;  %v3327_v12 = vld [vmem:[#allocation10 + $0xa0] ss:$16 sps:$4 sm:$0xff]  }
 0x141   :  { %1295 = vmatprep.subr.bf16.mxu0 %v3245_v13  ;;  %1336 = vmatprep.subr.bf16.mxu1 %v3248_v14  ;;  %v3332_v13 = vld [vmem:[#allocation10 + $0x84] ss:$16 sps:$4 sm:$0xff]   ;;  %v3330_v14 = vld [vmem:[#allocation10 + $0x80] ss:$16 sps:$4 sm:$0xff]  }
 0x144   :  { %1296 = vmatpush1.bf16.msra.mxu0 %v3243_v15  ;;  %1337 = vmatpush1.bf16.msra.mxu1 %v3246_v16  ;;  %v3369_v15 = vld [vmem:[#allocation10 + $0x2e0] ss:$16 sps:$4 sm:$0xff]   ;;  %v3371_v16 = vld [vmem:[#allocation10 + $0x2e4] ss:$16 sps:$4 sm:$0xff]  }
 0x145   :  { %1297 = vmatprep.subr.bf16.mxu0 %v3251_v17  ;;  %1338 = vmatprep.subr.bf16.mxu1 %v3254_v18  ;;  %v3335_v17 = vld [vmem:[#allocation10 + $0x64] ss:$16 sps:$4 sm:$0xff]   ;;  %v3375_v18 = vld [vmem:[#allocation10 + $0x2c0] ss:$16 sps:$4 sm:$0xff]  }
 0x148   :  { %1298 = vmatpush1.bf16.msra.mxu0 %v3249_v19  ;;  %1339 = vmatpush1.bf16.msra.mxu1 %v3252_v20  ;;  %v3338_v19 = vld [vmem:[#allocation10 + $0x44] ss:$16 sps:$4 sm:$0xff]   ;;  %v3336_v20 = vld [vmem:[#allocation10 + $0x40] ss:$16 sps:$4 sm:$0xff]  }
 0x149   :  { %1299 = vmatprep.subr.bf16.mxu0 %v3257_v21  ;;  %1340 = vmatprep.subr.bf16.mxu1 %v3260_v22  ;;  %v3381_v21 = vld [vmem:[#allocation10 + $0x2a0] ss:$16 sps:$4 sm:$0xff]   ;;  %v3383_v22 = vld [vmem:[#allocation10 + $0x2a4] ss:$16 sps:$4 sm:$0xff]  }
 0x14c   :  { %1300 = vmatpush1.bf16.msra.mxu0 %v3255_v23  ;;  %1341 = vmatpush1.bf16.msra.mxu1 %v3258_v24  ;;  %v3341_v23 = vld [vmem:[#allocation10 + $0x24] ss:$16 sps:$4 sm:$0xff]   ;;  %v3339_v24 = vld [vmem:[#allocation10 + $0x20] ss:$16 sps:$4 sm:$0xff]  }
 0x14d   :  { %1301 = vmatprep.subr.bf16.mxu0 %v3263_v25  ;;  %1342 = vmatprep.subr.bf16.mxu1 %v3266_v26  ;;  %v3387_v25 = vld [vmem:[#allocation10 + $0x280] ss:$16 sps:$4 sm:$0xff]   ;;  %v3389_v26 = vld [vmem:[#allocation10 + $0x284] ss:$16 sps:$4 sm:$0xff]  }
 0x150   :  { %1302 = vmatpush1.bf16.msra.mxu0 %v3261_v27  ;;  %1343 = vmatpush1.bf16.msra.mxu1 %v3264_v28  ;;  %v3344_v27 = vld [vmem:[#allocation10 + $0x4] ss:$16 sps:$4 sm:$0xff]   ;;  %v3342_v28 = vld [vmem:[#allocation10] ss:$16 sps:$4 sm:$0xff]  }
 0x151   :  { %1303 = vmatprep.subr.bf16.mxu0 %v3269_v29  ;;  %1344 = vmatprep.subr.bf16.mxu1 %v3272_v30  ;;  %v3393_v29 = vld [vmem:[#allocation10 + $0x260] ss:$16 sps:$4 sm:$0xff]   ;;  %v3395_v30 = vld [vmem:[#allocation10 + $0x264] ss:$16 sps:$4 sm:$0xff]  }
 0x154   :  { %1304 = vmatpush1.bf16.msra.mxu0 %v3267_v31  ;;  %1345 = vmatpush1.bf16.msra.mxu1 %v3270_v32  ;;  %v3347_v31 = vld [vmem:[#allocation10 + $0x1e4] ss:$16 sps:$4 sm:$0xff]   ;;  %v3345_v32 = vld [vmem:[#allocation10 + $0x1e0] ss:$16 sps:$4 sm:$0xff]  }
 0x155   :  { %1305 = vmatprep.subr.bf16.mxu0 %v3275_v33  ;;  %1346 = vmatprep.subr.bf16.mxu1 %v3278_v34  ;;  %v3399_v33 = vld [vmem:[#allocation10 + $0x240] ss:$16 sps:$4 sm:$0xff]   ;;  %v3401_v34 = vld [vmem:[#allocation10 + $0x244] ss:$16 sps:$4 sm:$0xff]  }
 0x158   :  { %1306 = vmatpush2.bf16.msra.mxu0 %v3273_v35  ;;  %1347 = vmatpush2.bf16.msra.mxu1 %v3276_v36  ;;  %v3350_v35 = vld [vmem:[#allocation10 + $0x1c4] ss:$16 sps:$4 sm:$0xff]   ;;  %v3348_v36 = vld [vmem:[#allocation10 + $0x1c0] ss:$16 sps:$4 sm:$0xff]  }
 0x159   :  { %1307 = vmatprep.subr.bf16.mxu0 %v3281_v37  ;;  %1348 = vmatprep.subr.bf16.mxu1 %v3284_v40  ;;  %v3405_v37 = vld [vmem:[#allocation10 + $0x220] ss:$16 sps:$4 sm:$0xff]   ;;  %v3407_v40 = vld [vmem:[#allocation10 + $0x224] ss:$16 sps:$4 sm:$0xff]  }
 0x15c   :  { %1308 = vmatpush2.bf16.msra.mxu0 %v3279_v43  ;;  %1349 = vmatpush2.bf16.msra.mxu1 %v3282_v44  ;;  %v3353_v43 = vld [vmem:[#allocation10 + $0x1a4] ss:$16 sps:$4 sm:$0xff]   ;;  %v3351_v44 = vld [vmem:[#allocation10 + $0x1a0] ss:$16 sps:$4 sm:$0xff]  }
 0x15d   :  { %1309 = vmatprep.subr.bf16.mxu0 %v3287_v45  ;;  %1350 = vmatprep.subr.bf16.mxu1 %v3290_v46  ;;  %v3411_v45 = vld [vmem:[#allocation10 + $0x200] ss:$16 sps:$4 sm:$0xff]   ;;  %v3413_v46 = vld [vmem:[#allocation10 + $0x204] ss:$16 sps:$4 sm:$0xff]  }
 0x160   :  { %1310 = vmatpush2.bf16.msra.mxu0 %v3285_v47  ;;  %1351 = vmatpush2.bf16.msra.mxu1 %v3288_v48  ;;  %v3356_v47 = vld [vmem:[#allocation10 + $0x184] ss:$16 sps:$4 sm:$0xff]   ;;  %v3354_v48 = vld [vmem:[#allocation10 + $0x180] ss:$16 sps:$4 sm:$0xff]  }
 0x161   :  { %1311 = vmatprep.subr.bf16.mxu0 %v3293_v49  ;;  %1352 = vmatprep.subr.bf16.mxu1 %v3296_v50  ;;  %v3417_v49 = vld [vmem:[#allocation10 + $0x3e0] ss:$16 sps:$4 sm:$0xff]   ;;  %v3419_v50 = vld [vmem:[#allocation10 + $0x3e4] ss:$16 sps:$4 sm:$0xff]  }
 0x164   :  { %1312 = vmatpush2.bf16.msra.mxu0 %v3291_v51  ;;  %1353 = vmatpush2.bf16.msra.mxu1 %v3294_v52  ;;  %v3359_v51 = vld [vmem:[#allocation10 + $0x164] ss:$16 sps:$4 sm:$0xff]   ;;  %v3357_v52 = vld [vmem:[#allocation10 + $0x160] ss:$16 sps:$4 sm:$0xff]  }
 0x165   :  { %1313 = vmatprep.subr.bf16.mxu0 %v3299_v53  ;;  %1354 = vmatprep.subr.bf16.mxu1 %v3302_v54  ;;  %v3423_v53 = vld [vmem:[#allocation10 + $0x3c0] ss:$16 sps:$4 sm:$0xff]   ;;  %v3425_v54 = vld [vmem:[#allocation10 + $0x3c4] ss:$16 sps:$4 sm:$0xff]  }
 0x168   :  { %1314 = vmatpush2.bf16.msra.mxu0 %v3297_v55  ;;  %1355 = vmatpush2.bf16.msra.mxu1 %v3300_v56  ;;  %v3362_v55 = vld [vmem:[#allocation10 + $0x144] ss:$16 sps:$4 sm:$0xff]   ;;  %v3360_v56 = vld [vmem:[#allocation10 + $0x140] ss:$16 sps:$4 sm:$0xff]  }
 0x169   :  { %1315 = vmatprep.subr.bf16.mxu0 %v3305_v57  ;;  %1356 = vmatprep.subr.bf16.mxu1 %v3308_v58  ;;  %v3429_v57 = vld [vmem:[#allocation10 + $0x3a0] ss:$16 sps:$4 sm:$0xff]   ;;  %v3431_v58 = vld [vmem:[#allocation10 + $0x3a4] ss:$16 sps:$4 sm:$0xff]  }
 0x16c   :  { %1316 = vmatpush2.bf16.msra.mxu0 %v3303_v59  ;;  %1357 = vmatpush2.bf16.msra.mxu1 %v3306_v60  ;;  %v3365_v59 = vld [vmem:[#allocation10 + $0x124] ss:$16 sps:$4 sm:$0xff]   ;;  %v3363_v60 = vld [vmem:[#allocation10 + $0x120] ss:$16 sps:$4 sm:$0xff]  }
 0x16d   :  { %1317 = vmatprep.subr.bf16.mxu0 %v3311_v62  ;;  %1358 = vmatprep.subr.bf16.mxu1 %v3314_v63  ;;  %v3435_v62 = vld [vmem:[#allocation10 + $0x380] ss:$16 sps:$4 sm:$0xff]   ;;  %v3437_v63 = vld [vmem:[#allocation10 + $0x384] ss:$16 sps:$4 sm:$0xff]  }
 0x170   :  { %1318 = vmatpush2.bf16.msra.mxu0 %v3309_v0  ;;  %1359 = vmatpush2.bf16.msra.mxu1 %v3312_v1  ;;  %v3368_v0 = vld [vmem:[#allocation10 + $0x104] ss:$16 sps:$4 sm:$0xff]   ;;  %v3366_v1 = vld [vmem:[#allocation10 + $0x100] ss:$16 sps:$4 sm:$0xff]  }
 0x171   :  { %1319 = vmatprep.subr.bf16.mxu0 %v3317_v2  ;;  %1360 = vmatprep.subr.bf16.mxu1 %v3320_v3  ;;  %v3441_v2 = vld [vmem:[#allocation10 + $0x360] ss:$16 sps:$4 sm:$0xff]   ;;  %v3443_v3 = vld [vmem:[#allocation10 + $0x364] ss:$16 sps:$4 sm:$0xff]  }
 0x174   :  { %1320 = vmatpush2.bf16.msra.mxu0 %v3315_v5  ;;  %1361 = vmatpush2.bf16.msra.mxu1 %v3318_v6  ;;  %v3374_v5 = vld [vmem:[#allocation10 + $0xec] ss:$16 sps:$4 sm:$0xff]   ;;  %v3447_v6 = vld [vmem:[#allocation10 + $0x340] ss:$16 sps:$4 sm:$0xff]  }
 0x175   :  { %2169 = vmatprep.subr.bf16.mxu0 %v3323_v7  ;;  %2210 = vmatprep.subr.bf16.mxu1 %v3371_v16  ;;  %v3449_v7 = vld [vmem:[#allocation10 + $0x344] ss:$16 sps:$4 sm:$0xff]  }
 0x177   :  { %1322 = vmatmul.mubr.bf16.vlgmr.msra.gmra.mxu0 %v3800_v4  ;;  %1363 = vmatmul.mubr.bf16.vlgmr.msra.gmra.mxu1 %v3798_v61  ;;  %v3333_v4 = vld [vmem:[#allocation10 + $0x60] ss:$16 sps:$4 sm:$0xff]   ;;  %v3377_v61 = vld [vmem:[#allocation10 + $0x2c4] ss:$16 sps:$4 sm:$0xff]  }
 0x178   :  { %2170 = vmatpush1.bf16.msra.mxu0 %v3321_v8  ;;  %2211 = vmatpush1.bf16.msra.mxu1 %v3369_v15  ;;  %v3455_v8 = vld [vmem:[#allocation10 + $0x324] ss:$16 sps:$4 sm:$0xff]  }
 0x179   :  { %2171 = vmatprep.subr.bf16.mxu0 %v3326_v9  ;;  %2212 = vmatprep.subr.bf16.mxu1 %v3377_v61  ;;  %v3453_v9 = vld [vmem:[#allocation10 + $0x320] ss:$16 sps:$4 sm:$0xff]  }
 0x17c   :  { %2172 = vmatpush1.bf16.msra.mxu0 %v3324_v10  ;;  %2213 = vmatpush1.bf16.msra.mxu1 %v3375_v18  ;;  %v3461_v10 = vld [vmem:[#allocation10 + $0x304] ss:$16 sps:$4 sm:$0xff]  }
 0x17d   :  { %2173 = vmatprep.subr.bf16.mxu0 %v3329_v11  ;;  %2214 = vmatprep.subr.bf16.mxu1 %v3383_v22  ;;  %v3459_v11 = vld [vmem:[#allocation10 + $0x300] ss:$16 sps:$4 sm:$0xff]  }
 0x180   :  { %2174 = vmatpush1.bf16.msra.mxu0 %v3327_v12  ;;  %2215 = vmatpush1.bf16.msra.mxu1 %v3381_v21  ;;  %v3467_v12 = vld [vmem:[#allocation10 + $0x2ec] ss:$16 sps:$4 sm:$0xff]  }
 0x181   :  { %2175 = vmatprep.subr.bf16.mxu0 %v3332_v13  ;;  %2216 = vmatprep.subr.bf16.mxu1 %v3389_v26  ;;  %v3809_v13 = vld [vmem:[%s3844_s4] sm:$0xf] }
 0x182   :  { %v554_v15 = vrot.slane %v3809_v13, %v3790_v41 }
 0x184   :  { %2176 = vmatpush1.bf16.msra.mxu0 %v3330_v14  ;;  %2217 = vmatpush1.bf16.msra.mxu1 %v3387_v25  ;;  %v550_v14 = vrot.slane %v3809_v13, %v3786_v38 }
 0x185   :  { %2177 = vmatprep.subr.bf16.mxu0 %v3335_v17  ;;  %2218 = vmatprep.subr.bf16.mxu1 %v3395_v30 }
 0x188   :  { %2178 = vmatpush1.bf16.msra.mxu0 %v3333_v4  ;;  %2219 = vmatpush1.bf16.msra.mxu1 %v3393_v29  ;;  %v3372_v29 = vld [vmem:[#allocation10 + $0xe8] ss:$16 sps:$4 sm:$0xff]  }
 0x189   :  { %2179 = vmatprep.subr.bf16.mxu0 %v3338_v19  ;;  %2220 = vmatprep.subr.bf16.mxu1 %v3401_v34  ;;  %v3384_v34 = vld [vmem:[#allocation10 + $0xa8] ss:$16 sps:$4 sm:$0xff]  }
 0x18c   :  { %2180 = vmatpush1.bf16.msra.mxu0 %v3336_v20  ;;  %2221 = vmatpush1.bf16.msra.mxu1 %v3399_v33  ;;  %v3386_v33 = vld [vmem:[#allocation10 + $0xac] ss:$16 sps:$4 sm:$0xff]  }
 0x18d   :  { %2181 = vmatprep.subr.bf16.mxu0 %v3341_v23  ;;  %2222 = vmatprep.subr.bf16.mxu1 %v3407_v40  ;;  %v3396_v40 = vld [vmem:[#allocation10 + $0x68] ss:$16 sps:$4 sm:$0xff]  }
 0x190   :  { %2182 = vmatpush1.bf16.msra.mxu0 %v3339_v24  ;;  %2223 = vmatpush1.bf16.msra.mxu1 %v3405_v37  ;;  %v3398_v37 = vld [vmem:[#allocation10 + $0x6c] ss:$16 sps:$4 sm:$0xff]  }
 0x191   :  { %2183 = vmatprep.subr.bf16.mxu0 %v3344_v27  ;;  %2224 = vmatprep.subr.bf16.mxu1 %v3413_v46  ;;  %v3408_v46 = vld [vmem:[#allocation10 + $0x28] ss:$16 sps:$4 sm:$0xff]  }
 0x194   :  { %2184 = vmatpush1.bf16.msra.mxu0 %v3342_v28  ;;  %2225 = vmatpush1.bf16.msra.mxu1 %v3411_v45  ;;  %v3410_v45 = vld [vmem:[#allocation10 + $0x2c] ss:$16 sps:$4 sm:$0xff]  }
 0x195   :  { %2185 = vmatprep.subr.bf16.mxu0 %v3347_v31  ;;  %2226 = vmatprep.subr.bf16.mxu1 %v3419_v50  ;;  %v3380_v31 = vld [vmem:[#allocation10 + $0xcc] ss:$16 sps:$4 sm:$0xff]   ;;  %v3420_v50 = vld [vmem:[#allocation10 + $0x1e8] ss:$16 sps:$4 sm:$0xff]  }
 0x198   :  { %2186 = vmatpush2.bf16.msra.mxu0 %v3345_v32  ;;  %2227 = vmatpush2.bf16.msra.mxu1 %v3417_v49  ;;  %v3378_v32 = vld [vmem:[#allocation10 + $0xc8] ss:$16 sps:$4 sm:$0xff]   ;;  %v3422_v49 = vld [vmem:[#allocation10 + $0x1ec] ss:$16 sps:$4 sm:$0xff]  }
 0x199   :  { %2187 = vmatprep.subr.bf16.mxu0 %v3350_v35  ;;  %2228 = vmatprep.subr.bf16.mxu1 %v3425_v54  ;;  %v3392_v35 = vld [vmem:[#allocation10 + $0x8c] ss:$16 sps:$4 sm:$0xff]   ;;  %v3432_v54 = vld [vmem:[#allocation10 + $0x1a8] ss:$16 sps:$4 sm:$0xff]  }
 0x19c   :  { %2188 = vmatpush2.bf16.msra.mxu0 %v3348_v36  ;;  %2229 = vmatpush2.bf16.msra.mxu1 %v3423_v53  ;;  %v3390_v36 = vld [vmem:[#allocation10 + $0x88] ss:$16 sps:$4 sm:$0xff]   ;;  %v3434_v53 = vld [vmem:[#allocation10 + $0x1ac] ss:$16 sps:$4 sm:$0xff]  }
 0x19d   :  { %2189 = vmatprep.subr.bf16.mxu0 %v3353_v43  ;;  %2230 = vmatprep.subr.bf16.mxu1 %v3431_v58  ;;  %v3404_v43 = vld [vmem:[#allocation10 + $0x4c] ss:$16 sps:$4 sm:$0xff]   ;;  %v3444_v58 = vld [vmem:[#allocation10 + $0x168] ss:$16 sps:$4 sm:$0xff]  }
 0x1a0   :  { %2190 = vmatpush2.bf16.msra.mxu0 %v3351_v44  ;;  %2231 = vmatpush2.bf16.msra.mxu1 %v3429_v57  ;;  %v3402_v44 = vld [vmem:[#allocation10 + $0x48] ss:$16 sps:$4 sm:$0xff]   ;;  %v3446_v57 = vld [vmem:[#allocation10 + $0x16c] ss:$16 sps:$4 sm:$0xff]  }
 0x1a1   :  { %2191 = vmatprep.subr.bf16.mxu0 %v3356_v47  ;;  %2232 = vmatprep.subr.bf16.mxu1 %v3437_v63  ;;  %v3416_v47 = vld [vmem:[#allocation10 + $0xc] ss:$16 sps:$4 sm:$0xff]  }
 0x1a2   :  { %v3458_v63 = vld [vmem:[#allocation10 + $0x12c] ss:$16 sps:$4 sm:$0xff]  }
 0x1a4   :  { %2192 = vmatpush2.bf16.msra.mxu0 %v3354_v48  ;;  %2233 = vmatpush2.bf16.msra.mxu1 %v3435_v62  ;;  %v3414_v48 = vld [vmem:[#allocation10 + $0x8] ss:$16 sps:$4 sm:$0xff]  }
 0x1a5   :  { %2193 = vmatprep.subr.bf16.mxu0 %v3359_v51  ;;  %2234 = vmatprep.subr.bf16.mxu1 %v3443_v3  ;;  %v3428_v51 = vld [vmem:[#allocation10 + $0x1cc] ss:$16 sps:$4 sm:$0xff]   ;;  %v3450_v62 = vld [vmem:[#allocation10 + $0x148] ss:$16 sps:$4 sm:$0xff]  }
 0x1a8   :  { %2194 = vmatpush2.bf16.msra.mxu0 %v3357_v52  ;;  %2235 = vmatpush2.bf16.msra.mxu1 %v3441_v2  ;;  %v3426_v52 = vld [vmem:[#allocation10 + $0x1c8] ss:$16 sps:$4 sm:$0xff]  }
 0x1a9   :  { %2195 = vmatprep.subr.bf16.mxu0 %v3362_v55  ;;  %2236 = vmatprep.subr.bf16.mxu1 %v3449_v7  ;;  %v3440_v55 = vld [vmem:[#allocation10 + $0x18c] ss:$16 sps:$4 sm:$0xff]  }
 0x1ac   :  { %2196 = vmatpush2.bf16.msra.mxu0 %v3360_v56  ;;  %2237 = vmatpush2.bf16.msra.mxu1 %v3447_v6  ;;  %v3438_v56 = vld [vmem:[#allocation10 + $0x188] ss:$16 sps:$4 sm:$0xff]  }
 0x1ad   :  { %2197 = vmatprep.subr.bf16.mxu0 %v3365_v59  ;;  %2238 = vmatprep.subr.bf16.mxu1 %v3455_v8  ;;  %v3452_v59 = vld [vmem:[#allocation10 + $0x14c] ss:$16 sps:$4 sm:$0xff]  }
 0x1ae   :  { %v3464_v8 = vld [vmem:[#allocation10 + $0x10c] ss:$16 sps:$4 sm:$0xff]  }
 0x1b0   :  { %2198 = vmatpush2.bf16.msra.mxu0 %v3363_v60  ;;  %2239 = vmatpush2.bf16.msra.mxu1 %v3453_v9  ;;  %v558_v60 = vrot.slane %v3809_v13, %v3788_v39 }
 0x1b1   :  { %2199 = vmatprep.subr.bf16.mxu0 %v3368_v0  ;;  %2240 = vmatprep.subr.bf16.mxu1 %v3461_v10  ;;  %v562_v0 = vrot.slane %v3809_v13, %v3792_v42 }
 0x1b4   :  { %2200 = vmatpush2.bf16.msra.mxu0 %v3366_v1  ;;  %2241 = vmatpush2.bf16.msra.mxu1 %v3459_v11 }
 0x1b5   :  { %2251 = vmatprep.subr.bf16.mxu0 %v3374_v5  ;;  %2292 = vmatprep.subr.bf16.mxu1 %v3467_v12  ;;  %v3456_v5 = vld [vmem:[#allocation10 + $0x128] ss:$16 sps:$4 sm:$0xff]  }
 0x1f7   :  { %v1241_v16 = vpop.f32.mrf.mxu0  ;;  %v1282_v17 = vpop.f32.mrf.mxu1 }
 0x1f8   :  { %v1242_v4 = vadd.f32 %v1241_v16, %v550_v14 }
 0x1f9   :  { %v1243_v18 = vpop.f32.mrf.mxu0  ;;  %v1284_v61 = vpop.f32.mrf.mxu1 }
 0x1fa   :  { %v1283_v19 = vadd.f32 %v1282_v17, %v1242_v4  ;;  %v1244_v20 = vadd.f32 %v1243_v18, %v554_v15  ;;  %v3462_v15 = vld [vmem:[#allocation10 + $0x108] ss:$16 sps:$4 sm:$0xff]  }
 0x1fb   :  { %v1245_v21 = vpop.f32.mrf.mxu0  ;;  %v1286_v22 = vpop.f32.mrf.mxu1 }
 0x1fc   :  { %v1285_v23 = vadd.f32 %v1284_v61, %v1244_v20  ;;  %v1371_v24 = vmax.f32 %v1283_v19, 0.0  ;;  %v3465_v61 = vld [vmem:[#allocation10 + $0x2e8] ss:$16 sps:$4 sm:$0xff]   ;;  %v3470_v20 = vld [vmem:[#allocation10 + $0x2cc] ss:$16 sps:$4 sm:$0xff]  }
 0x1fd   :  { %v1246_v25 = vpop.f32.mrf.mxu0  ;;  %v1287_v26 = vpop.f32.mrf.mxu1  ;;  %v3468_v21 = vld [vmem:[#allocation10 + $0x2c8] ss:$16 sps:$4 sm:$0xff]   ;;  %v3473_v22 = vld [vmem:[#allocation10 + $0x2ac] ss:$16 sps:$4 sm:$0xff]  }
 0x1fe   :  { %v1372_v27 = vmax.f32 %v1285_v23, 0.0  ;;  %v3815_v30 = vpack.c.bf16 %v1371_v24, %v1371_v24  ;;  %v3471_v23 = vld [vmem:[#allocation10 + $0x2a8] ss:$16 sps:$4 sm:$0xff]   ;;  %v3476_v24 = vld [vmem:[#allocation10 + $0x28c] ss:$16 sps:$4 sm:$0xff]  }
 0x1ff   :  { %v3513_v25 = vld [vmem:[#allocation11 + $0x78] sm:$0xff]  }
 0x200   :  { %v1376_v28 = vpack.c.bf16 %v1372_v27, %v1372_v27  ;;  %v3514_v26 = vld [vmem:[#allocation11 + $0x38] sm:$0xff]   ;;  %v3515_v27 = vld [vmem:[#allocation11 + $0x70] sm:$0xff]  }
 0x202   :  { %2201 = vmatprep.mubr.bf16.mxu0 %v1376_v28 }
 0x203   :  { %2202 = vmatmul.mubr.bf16.vlgmr.msra.gmra.mxu0 %v3815_v30 }
 0x204   :  { %2252 = vmatpush1.bf16.msra.mxu0 %v3372_v29  ;;  %2283 = vmatprep.mubr.bf16.mxu0 %v1376_v28  ;;  %v3474_v28 = vld [vmem:[#allocation10 + $0x288] ss:$16 sps:$4 sm:$0xff]   ;;  %v3516_v29 = vld [vmem:[#allocation11 + $0x30] sm:$0xff]  }
 0x205   :  { %2253 = vmatprep.subr.bf16.mxu0 %v3380_v31  ;;  %v3479_v31 = vld [vmem:[#allocation10 + $0x26c] ss:$16 sps:$4 sm:$0xff]  }
 0x208   :  { %2254 = vmatpush1.bf16.msra.mxu0 %v3378_v32  ;;  %v3477_v32 = vld [vmem:[#allocation10 + $0x268] ss:$16 sps:$4 sm:$0xff]  }
 0x209   :  { %2255 = vmatprep.subr.bf16.mxu0 %v3386_v33  ;;  %v3518_v33 = vld [vmem:[#allocation11 + $0x28] sm:$0xff]  }
 0x20c   :  { %2256 = vmatpush1.bf16.msra.mxu0 %v3384_v34  ;;  %v3482_v34 = vld [vmem:[#allocation10 + $0x24c] ss:$16 sps:$4 sm:$0xff]  }
 0x20d   :  { %2257 = vmatprep.subr.bf16.mxu0 %v3392_v35  ;;  %v3519_v35 = vld [vmem:[#allocation11 + $0x60] sm:$0xff]  }
 0x210   :  { %2258 = vmatpush1.bf16.msra.mxu0 %v3390_v36  ;;  %v3480_v36 = vld [vmem:[#allocation10 + $0x248] ss:$16 sps:$4 sm:$0xff]  }
 0x211   :  { %2259 = vmatprep.subr.bf16.mxu0 %v3398_v37  ;;  %v3520_v37 = vld [vmem:[#allocation11 + $0x20] sm:$0xff]  }
 0x214   :  { %2260 = vmatpush1.bf16.msra.mxu0 %v3396_v40  ;;  %v3485_v40 = vld [vmem:[#allocation10 + $0x22c] ss:$16 sps:$4 sm:$0xff]  }
 0x215   :  { %2261 = vmatprep.subr.bf16.mxu0 %v3404_v43  ;;  %v3521_v43 = vld [vmem:[#allocation11 + $0x58] sm:$0xff]  }
 0x218   :  { %2262 = vmatpush1.bf16.msra.mxu0 %v3402_v44  ;;  %v3483_v44 = vld [vmem:[#allocation10 + $0x228] ss:$16 sps:$4 sm:$0xff]  }
 0x219   :  { %2263 = vmatprep.subr.bf16.mxu0 %v3410_v45  ;;  %v3522_v45 = vld [vmem:[#allocation11 + $0x18] sm:$0xff]  }
 0x21c   :  { %2264 = vmatpush1.bf16.msra.mxu0 %v3408_v46  ;;  %v3488_v46 = vld [vmem:[#allocation10 + $0x20c] ss:$16 sps:$4 sm:$0xff]  }
 0x21d   :  { %2265 = vmatprep.subr.bf16.mxu0 %v3416_v47  ;;  %v3523_v47 = vld [vmem:[#allocation11 + $0x50] sm:$0xff]  }
 0x220   :  { %2266 = vmatpush1.bf16.msra.mxu0 %v3414_v48  ;;  %v3486_v48 = vld [vmem:[#allocation10 + $0x208] ss:$16 sps:$4 sm:$0xff]  }
 0x221   :  { %2267 = vmatprep.subr.bf16.mxu0 %v3422_v49  ;;  %v3524_v49 = vld [vmem:[#allocation11 + $0x10] sm:$0xff]  }
 0x224   :  { %2268 = vmatpush2.bf16.msra.mxu0 %v3420_v50  ;;  %v3491_v50 = vld [vmem:[#allocation10 + $0x3ec] ss:$16 sps:$4 sm:$0xff]  }
 0x225   :  { %2269 = vmatprep.subr.bf16.mxu0 %v3428_v51  ;;  %v3489_v51 = vld [vmem:[#allocation10 + $0x3e8] ss:$16 sps:$4 sm:$0xff]  }
 0x228   :  { %2270 = vmatpush2.bf16.msra.mxu0 %v3426_v52  ;;  %v3494_v52 = vld [vmem:[#allocation10 + $0x3cc] ss:$16 sps:$4 sm:$0xff]  }
 0x229   :  { %2271 = vmatprep.subr.bf16.mxu0 %v3434_v53  ;;  %v3492_v53 = vld [vmem:[#allocation10 + $0x3c8] ss:$16 sps:$4 sm:$0xff]  }
 0x22c   :  { %2272 = vmatpush2.bf16.msra.mxu0 %v3432_v54  ;;  %v3497_v54 = vld [vmem:[#allocation10 + $0x3ac] ss:$16 sps:$4 sm:$0xff]  }
 0x22d   :  { %2273 = vmatprep.subr.bf16.mxu0 %v3440_v55  ;;  %v3495_v55 = vld [vmem:[#allocation10 + $0x3a8] ss:$16 sps:$4 sm:$0xff]  }
 0x230   :  { %2274 = vmatpush2.bf16.msra.mxu0 %v3438_v56  ;;  %v3500_v56 = vld [vmem:[#allocation10 + $0x38c] ss:$16 sps:$4 sm:$0xff]  }
 0x231   :  { %2275 = vmatprep.subr.bf16.mxu0 %v3446_v57  ;;  %v3498_v57 = vld [vmem:[#allocation10 + $0x388] ss:$16 sps:$4 sm:$0xff]  }
 0x234   :  { %2276 = vmatpush2.bf16.msra.mxu0 %v3444_v58  ;;  %v3503_v58 = vld [vmem:[#allocation10 + $0x36c] ss:$16 sps:$4 sm:$0xff]  }
 0x235   :  { %2277 = vmatprep.subr.bf16.mxu0 %v3452_v59  ;;  %v3501_v59 = vld [vmem:[#allocation10 + $0x368] ss:$16 sps:$4 sm:$0xff]  }
 0x237   :  { %v1323_v1 = vpop.f32.mrf.mxu0  ;;  %v1364_v2 = vpop.f32.mrf.mxu1 }
 0x238   :  { %v1324_v3 = vadd.f32 %v1323_v1, %v558_v60  ;;  %2278 = vmatpush2.bf16.msra.mxu0 %v3450_v62  ;;  %v3506_v60 = vld [vmem:[#allocation10 + $0x34c] ss:$16 sps:$4 sm:$0xff]   ;;  %v3504_v62 = vld [vmem:[#allocation10 + $0x348] ss:$16 sps:$4 sm:$0xff]  }
 0x239   :  { %v1325_v6 = vpop.f32.mrf.mxu0  ;;  %v1366_v7 = vpop.f32.mrf.mxu1  ;;  %2279 = vmatprep.subr.bf16.mxu0 %v3458_v63  ;;  %v3509_v63 = vld [vmem:[#allocation10 + $0x32c] ss:$16 sps:$4 sm:$0xff]  }
 0x23a   :  { %v1365_v9 = vadd.f32 %v1364_v2, %v1324_v3  ;;  %v1326_v10 = vadd.f32 %v1325_v6, %v562_v0  ;;  %v3507_v0 = vld [vmem:[#allocation10 + $0x328] ss:$16 sps:$4 sm:$0xff]   ;;  %v3512_v1 = vld [vmem:[#allocation10 + $0x30c] ss:$16 sps:$4 sm:$0xff]   ;;  %v3527_v6 = vld [vmem:[#allocation11 + $0x40] sm:$0xff]  }
 0x23b   :  { %v1327_v11 = vpop.f32.mrf.mxu0  ;;  %v1368_v12 = vpop.f32.mrf.mxu1  ;;  %v3510_v2 = vld [vmem:[#allocation10 + $0x308] ss:$16 sps:$4 sm:$0xff]  }
 0x23c   :  { %v1367_v14 = vadd.f32 %v1366_v7, %v1326_v10  ;;  %2280 = vmatpush2.bf16.msra.mxu0 %v3456_v5  ;;  %v1373_v16 = vmax.f32 %v1365_v9, 0.0  ;;  %v3525_v3 = vld [vmem:[#allocation11 + $0x48] sm:$0xff]   ;;  %v3528_v7 = vld [vmem:[#allocation11] sm:$0xff]   ;;  %v3530_v9 = vld [vmem:[#allocation11 + $0xb8] sm:$0xff]  }
 0x23d   :  { %v1328_v17 = vpop.f32.mrf.mxu0  ;;  %v1369_v4 = vpop.f32.mrf.mxu1  ;;  %2281 = vmatprep.subr.bf16.mxu0 %v3464_v8  ;;  %v3526_v5 = vld [vmem:[#allocation11 + $0x8] sm:$0xff]   ;;  %v3529_v8 = vld [vmem:[#allocation11 + $0xf8] sm:$0xff]   ;;  %v3531_v10 = vld [vmem:[#allocation11 + $0xf0] sm:$0xff]  }
 0x23e   :  { %v1374_v13 = vmax.f32 %v1367_v14, 0.0  ;;  %v3822_v19 = vpack.c.bf16 %v1373_v16, %v1373_v16  ;;  %v3532_v11 = vld [vmem:[#allocation11 + $0xb0] sm:$0xff]   ;;  %v3533_v12 = vld [vmem:[#allocation11 + $0xe8] sm:$0xff]   ;;  %v3536_v16 = vld [vmem:[#allocation11 + $0xa0] sm:$0xff]  }
 0x23f   :  { %v3534_v14 = vld [vmem:[#allocation11 + $0xa8] sm:$0xff]   ;;  %v3537_v17 = vld [vmem:[#allocation11 + $0xd8] sm:$0xff]  }
 0x240   :  { %v1378_v18 = vpack.c.bf16 %v1374_v13, %v1374_v13  ;;  %2282 = vmatpush2.bf16.msra.mxu0 %v3462_v15  ;;  %v3535_v15 = vld [vmem:[#allocation11 + $0xe0] sm:$0xff]   ;;  %v3538_v4 = vld [vmem:[#allocation11 + $0x98] sm:$0xff]   ;;  %v3539_v13 = vld [vmem:[#allocation11 + $0xd0] sm:$0xff]  }
 0x241   :  { %3025 = vmatprep.subr.bf16.mxu0 %v3513_v25 }
 0x242   :  { %2242 = vmatprep.mubr.bf16.mxu1 %v1378_v18 }
 0x243   :  { %2243 = vmatmul.mubr.bf16.vlgmr.msra.gmra.mxu1 %v3822_v19  ;;  %2284 = vmatmul.mubr.bf16.vlgmr.msra.gmra.mxu0 %v3815_v30  ;;  %v3517_v30 = vld [vmem:[#allocation11 + $0x68] sm:$0xff]  }
 0x244   :  { %2293 = vmatpush1.bf16.msra.mxu1 %v3465_v61  ;;  %2324 = vmatprep.mubr.bf16.mxu1 %v1378_v18  ;;  %v3540_v18 = vld [vmem:[#allocation11 + $0x90] sm:$0xff]  }
 0x245   :  { %2294 = vmatprep.subr.bf16.mxu1 %v3470_v20  ;;  %3026 = vmatpush3.bf16.msra.mxu0 %v3514_v26  ;;  %v3542_v20 = vld [vmem:[#allocation11 + $0x88] sm:$0xff]   ;;  %v1507_v26 = vld [vmem:[%s3846_s6] sm:$0xf] }
 0x246   :  { %3027 = vmatprep.subr.bf16.mxu0 %v3515_v27  ;;  %v1512_v27 = vrot.slane %v1507_v26, %v3786_v38  ;;  %v1520_v38 = vrot.slane %v1507_v26, %v3788_v39 }
 0x248   :  { %2295 = vmatpush1.bf16.msra.mxu1 %v3468_v21 }
 0x249   :  { %2296 = vmatprep.subr.bf16.mxu1 %v3473_v22  ;;  %3028 = vmatpush3.bf16.msra.mxu0 %v3516_v29 }
 0x24a   :  { %3029 = vmatprep.subr.bf16.mxu0 %v3517_v30 }
 0x24c   :  { %2297 = vmatpush1.bf16.msra.mxu1 %v3471_v23  ;;  %v3543_v23 = vld [vmem:[#allocation11 + $0xc0] sm:$0xff]  }
 0x24d   :  { %2298 = vmatprep.subr.bf16.mxu1 %v3476_v24  ;;  %3030 = vmatpush3.bf16.msra.mxu0 %v3518_v33  ;;  %v3544_v24 = vld [vmem:[#allocation11 + $0x80] sm:$0xff]  }
 0x24e   :  { %3031 = vmatprep.subr.bf16.mxu0 %v3519_v35 }
 0x250   :  { %2299 = vmatpush1.bf16.msra.mxu1 %v3474_v28  ;;  %v1516_v28 = vrot.slane %v1507_v26, %v3790_v41  ;;  %v1524_v41 = vrot.slane %v1507_v26, %v3792_v42  ;;  %v2992_v42 = vld [vmem:[%s3848_s8] ss:$0 sm:$0xff] }
 0x251   :  { %2300 = vmatprep.subr.bf16.mxu1 %v3479_v31  ;;  %3032 = vmatpush3.bf16.msra.mxu0 %v3520_v37 }
 0x252   :  { %3033 = vmatprep.subr.bf16.mxu0 %v3521_v43 }
 0x254   :  { %2301 = vmatpush1.bf16.msra.mxu1 %v3477_v32 }
 0x255   :  { %2302 = vmatprep.subr.bf16.mxu1 %v3482_v34  ;;  %3034 = vmatpush3.bf16.msra.mxu0 %v3522_v45 }
 0x256   :  { %3035 = vmatprep.subr.bf16.mxu0 %v3523_v47 }
 0x258   :  { %2303 = vmatpush1.bf16.msra.mxu1 %v3480_v36 }
 0x259   :  { %2304 = vmatprep.subr.bf16.mxu1 %v3485_v40  ;;  %3036 = vmatpush3.bf16.msra.mxu0 %v3524_v49 }
 0x25a   :  { %3037 = vmatprep.subr.bf16.mxu0 %v3525_v3 }
 0x25c   :  { %2305 = vmatpush1.bf16.msra.mxu1 %v3483_v44 }
 0x25d   :  { %2306 = vmatprep.subr.bf16.mxu1 %v3488_v46  ;;  %3038 = vmatpush3.bf16.msra.mxu0 %v3526_v5 }
 0x25e   :  { %3039 = vmatprep.subr.bf16.mxu0 %v3527_v6 }
 0x260   :  { %2307 = vmatpush1.bf16.msra.mxu1 %v3486_v48 }
 0x261   :  { %2308 = vmatprep.subr.bf16.mxu1 %v3491_v50  ;;  %3040 = vmatpush3.bf16.msra.mxu0 %v3528_v7 }
 0x264   :  { %2309 = vmatpush2.bf16.msra.mxu1 %v3489_v51 }
 0x265   :  { %2310 = vmatprep.subr.bf16.mxu1 %v3494_v52 }
 0x268   :  { %2311 = vmatpush2.bf16.msra.mxu1 %v3492_v53 }
 0x269   :  { %2312 = vmatprep.subr.bf16.mxu1 %v3497_v54 }
 0x26c   :  { %2313 = vmatpush2.bf16.msra.mxu1 %v3495_v55 }
 0x26d   :  { %2314 = vmatprep.subr.bf16.mxu1 %v3500_v56 }
 0x270   :  { %2315 = vmatpush2.bf16.msra.mxu1 %v3498_v57 }
 0x271   :  { %2316 = vmatprep.subr.bf16.mxu1 %v3503_v58 }
 0x274   :  { %2317 = vmatpush2.bf16.msra.mxu1 %v3501_v59 }
 0x275   :  { %2318 = vmatprep.subr.bf16.mxu1 %v3506_v60 }
 0x278   :  { %2319 = vmatpush2.bf16.msra.mxu1 %v3504_v62 }
 0x279   :  { %2320 = vmatprep.subr.bf16.mxu1 %v3509_v63 }
 0x27c   :  { %2321 = vmatpush2.bf16.msra.mxu1 %v3507_v0 }
 0x27d   :  { %2322 = vmatprep.subr.bf16.mxu1 %v3512_v1 }
 0x280   :  { %2323 = vmatpush2.bf16.msra.mxu1 %v3510_v2 }
 0x281   :  { %3047 = vmatprep.subr.bf16.mxu1 %v3529_v8 }
 0x283   :  { %2325 = vmatmul.mubr.bf16.vlgmr.msra.gmra.mxu1 %v3822_v19  ;;  %v3541_v19 = vld [vmem:[#allocation11 + $0xc8] sm:$0xff]  }
 0x284   :  { %3048 = vmatpush3.bf16.msra.mxu1 %v3530_v9 }
 0x285   :  { %3049 = vmatprep.subr.bf16.mxu1 %v3531_v10 }
 0x288   :  { %3050 = vmatpush3.bf16.msra.mxu1 %v3532_v11 }
 0x289   :  { %3051 = vmatprep.subr.bf16.mxu1 %v3533_v12 }
 0x28c   :  { %3052 = vmatpush3.bf16.msra.mxu1 %v3534_v14 }
 0x28d   :  { %3053 = vmatprep.subr.bf16.mxu1 %v3535_v15 }
 0x290   :  { %3054 = vmatpush3.bf16.msra.mxu1 %v3536_v16 }
 0x291   :  { %3055 = vmatprep.subr.bf16.mxu1 %v3537_v17 }
 0x294   :  { %3056 = vmatpush3.bf16.msra.mxu1 %v3538_v4 }
 0x295   :  { %3057 = vmatprep.subr.bf16.mxu1 %v3539_v13 }
 0x298   :  { %3058 = vmatpush3.bf16.msra.mxu1 %v3540_v18 }
 0x299   :  { %3059 = vmatprep.subr.bf16.mxu1 %v3541_v19 }
 0x29c   :  { %3060 = vmatpush3.bf16.msra.mxu1 %v3542_v20 }
 0x29d   :  { %3061 = vmatprep.subr.bf16.mxu1 %v3543_v23 }
 0x2a0   :  { %3062 = vmatpush3.bf16.msra.mxu1 %v3544_v24 }
 0x2c3   :  { %v2203_v61 = vpop.f32.mrf.mxu0 }
 0x2c4   :  { %v2204_v29 = vadd.f32 %v2203_v61, %v1512_v27 }
 0x2c5   :  { %v2205_v21 = vpop.f32.mrf.mxu0 }
 0x2c6   :  { %v2206_v32 = vadd.f32 %v2205_v21, %v1516_v28 }
 0x2c7   :  { %v2207_v22 = vpop.f32.mrf.mxu0 }
 0x2c9   :  { %v2208_v25 = vpop.f32.mrf.mxu0 }
 0x303   :  { %v2244_v31 = vpop.f32.mrf.mxu1  ;;  %v2285_v30 = vpop.f32.mrf.mxu0 }
 0x304   :  { %v2245_v33 = vadd.f32 %v2244_v31, %v2204_v29  ;;  %v2286_v49 = vadd.f32 %v2285_v30, %v1520_v38 }
 0x305   :  { %v2246_v34 = vpop.f32.mrf.mxu1  ;;  %v2287_v35 = vpop.f32.mrf.mxu0 }
 0x306   :  { %v2247_v36 = vadd.f32 %v2246_v34, %v2206_v32  ;;  %v2333_v37 = vmax.f32 %v2245_v33, 0.0  ;;  %v2288_v51 = vadd.f32 %v2287_v35, %v1524_v41 }
 0x307   :  { %v2248_v40 = vpop.f32.mrf.mxu1  ;;  %v2289_v43 = vpop.f32.mrf.mxu0 }
 0x308   :  { %v2334_v44 = vmax.f32 %v2247_v36, 0.0  ;;  %v2337_v48 = vpack.c.bf16 %v2333_v37, %v2333_v37 }
 0x309   :  { %v2249_v45 = vpop.f32.mrf.mxu1  ;;  %v2290_v46 = vpop.f32.mrf.mxu0 }
 0x30a   :  { %v2338_v47 = vpack.c.bf16 %v2334_v44, %v2334_v44 }
 0x30c   :  { %2636 = vmatprep.mubr.bf16.mxu0 %v2338_v47 }
 0x30d   :  { %2637 = vmatmul.mubr.bf16.vlgmr.msra.gmra.mxu0 %v2337_v48 }
 0x343   :  { %v2326_v50 = vpop.f32.mrf.mxu1 }
 0x344   :  { %v2327_v52 = vadd.f32 %v2326_v50, %v2286_v49 }
 0x345   :  { %v2328_v53 = vpop.f32.mrf.mxu1 }
 0x346   :  { %v2329_v54 = vadd.f32 %v2328_v53, %v2288_v51  ;;  %v2335_v55 = vmax.f32 %v2327_v52, 0.0 }
 0x347   :  { %v2330_v56 = vpop.f32.mrf.mxu1 }
 0x348   :  { %v2336_v57 = vmax.f32 %v2329_v54, 0.0  ;;  %v2339_v60 = vpack.c.bf16 %v2335_v55, %v2335_v55 }
 0x349   :  { %v2331_v58 = vpop.f32.mrf.mxu1 }
 0x34a   :  { %v2340_v59 = vpack.c.bf16 %v2336_v57, %v2336_v57 }
 0x34c   :  { %2676 = vmatprep.mubr.bf16.mxu1 %v2340_v59 }
 0x34d   :  { %2677 = vmatmul.mubr.bf16.vlgmr.msra.gmra.mxu1 %v2339_v60 }
 0x3cd   :  { %v3041_v62 = vpop.f32.mrf.mxu0 }
 0x3cf   :  { %v3042_v63 = vpop.f32.mrf.mxu0 }
 0x3d0   :  { %v3043_v1 = vadd.f32 %v3042_v63, %v3041_v62 }
 0x3d1   :  { %v3044_v0 = vpop.f32.mrf.mxu0 }
 0x3d2   :  { %v2639_v5 = vadd.f32 %v3043_v1, %v2992_v42 }
 0x3d3   :  { %v3045_v39 = vpop.f32.mrf.mxu0 }
 0x40d   :  { %v3063_v2 = vpop.f32.mrf.mxu1 }
 0x40f   :  { %v3064_v3 = vpop.f32.mrf.mxu1 }
 0x410   :  { %v3065_v6 = vadd.f32 %v3064_v3, %v3063_v2 }
 0x411   :  { %v3066_v7 = vpop.f32.mrf.mxu1 }
 0x412   :  { %v2679_v8 = vadd.f32 %v3065_v6, %v2639_v5 }
 0x413   :  { %v3067_v9 = vpop.f32.mrf.mxu1 }
 0x414   :  { %3545 = vtanh.f32 %v2679_v8 }
 0x421   :  { %v3546_v10 = vpop.eup %3545 }
 0x422   :  { %2685 = vst [vmem:[#allocation13] sm:$0xff] %v3546_v10 }
 0x423   :  { %3678 = shalt.err (!%p3675_p6)
}
 0x424   :  { %2695 = dma.vmem_to_hbm [thread:$0]  %s2693_s21, 128, %s3849_s9, [#allocation4]  }
 0x425   :  { %3695 = dma.done.wait [#allocation4], 128  }
 0x426   :  { %3696 = vsyncadd [#allocation4], 4294967168 }
 0x427   :  { %2699 = vsyncpa [#allocation3], 1 }
 0x428   :  { %2700 = vsyncpa [#allocation6], 1 }
 0x429   :  { %2701 = vsyncpa [#allocation9], 1 }
 0x42a   :  { %2702 = vsyncpa [#allocation12], 1 }
 0x42b   :  { %2703 = vsyncpa [#allocation4], 1 }

</bundles_post_ra>
